<compile_context>
chip_gen: v6e
topology: v6e:2x2x1
jax: 0.10.0
libtpu: 0.0.40
codegen_flags: <defaults>
</compile_context>

<pallas_src>
import jax
import jax.numpy as jnp
from jax import lax
from jax.experimental import pallas as pl
from jax.experimental.pallas import tpu as pltpu

# Explicit scoped-VMEM budget: <= physical on every generation (v7x has only
# 64 MiB physical VMEM; v5e/v6e have 128 MiB).
VMEM_LIMIT = 64 * 1024 * 1024


# ------------------------- in-kernel conv helpers ---------------------------

def _rep_pad(x, left, right):
    """ReplicationPad1d along the time (sublane) axis, computed in-kernel."""
    T, C = x.shape
    parts = []
    if left > 0:
        parts.append(jnp.broadcast_to(x[0:1, :], (left, C)))
    parts.append(x)
    if right > 0:
        parts.append(jnp.broadcast_to(x[T - 1:T, :], (right, C)))
    if len(parts) == 1:
        return x
    return jnp.concatenate(parts, axis=0)


def _im2col(x, *, k, d, pad_left, pad_right):
    """[T, C] -> [T, k*C] column matrix for a dilated conv (tap-major)."""
    T = x.shape[0]
    xp = _rep_pad(x, pad_left, pad_right)                          # [T+pl+pr, C]
    return jnp.concatenate(
        [xp[tap * d: tap * d + T, :] for tap in range(k)], axis=-1)


def _dilated_conv(x, w_flat, b, *, k, d, pad_left, pad_right, relu):
    """Dilated Conv1d on [T, C] via a single bf16 im2col matmul.

    w_flat: [k*C_in, C_out] (== torch_weight.permute(2,1,0).reshape(k*C_in, C_out)),
            stored in bf16.    b: [1, C_out] f32.
    """
    cols = _im2col(x.astype(jnp.bfloat16), k=k, d=d,
                   pad_left=pad_left, pad_right=pad_right)
    y = jnp.dot(cols, w_flat, preferred_element_type=jnp.float32) + b
    if relu:
        y = jnp.maximum(y, 0.0)
    return y


# ------------------------- fused encoder kernel ------------------------------
# grid = (path, batch): path 0 = content encoder, path 1 = style encoder.
# Linear(F_in->L) + conv1(k8,d8)+ReLU + conv2(k4,d4)+ReLU + {conv3(k2,d2) +
# shortcut conv4(k8,d8)} where the residual sum is folded into one matmul and
# the k8/d8 im2col of h0 is built once and shared by conv1 and conv4.
# TODO(synk): for very long T on v7x (64 MiB VMEM) add a T-tile grid axis with
# a 56-row halo so whole-sequence residency is not required.

def _encoder_kernel(x_ref, lw_ref, lb_ref, w1_ref, b1_ref, w2_ref, b2_ref,
                    w34_ref, b34_ref, o_ref):
    x = x_ref[...].astype(jnp.bfloat16)                            # [T, F_in]
    h0 = jnp.dot(x, lw_ref[...], preferred_element_type=jnp.float32) + lb_ref[...]

    # Shared k=8/d=8 im2col (used by conv1 and the shortcut conv4).
    cols8 = _im2col(h0.astype(jnp.bfloat16), k=8, d=8,
                    pad_left=28, pad_right=28)                     # [T, 8L] bf16
    h1 = jnp.maximum(
        jnp.dot(cols8, w1_ref[...], preferred_element_type=jnp.float32)
        + b1_ref[...], 0.0)                                        # conv1 + ReLU
    h2 = _dilated_conv(h1, w2_ref[...], b2_ref[...],
                       k=4, d=4, pad_left=6, pad_right=6, relu=True)

    # conv3(h2) + conv4(h0) folded into ONE matmul: [cols2 | cols8] @ [w3; w4].
    cols2 = _im2col(h2.astype(jnp.bfloat16), k=2, d=2, pad_left=1, pad_right=1)
    cols = jnp.concatenate([cols2, cols8], axis=-1)                # [T, 10L]
    o_ref[...] = (jnp.dot(cols, w34_ref[...], preferred_element_type=jnp.float32)
                  + b34_ref[...])


def fused_encoder(x_stack, p):
    # x_stack: [2, B, T, F_in]; params stacked along a leading path axis.
    P, B, T, F_in = x_stack.shape
    L = p["lin_w"].shape[-1]

    def wspec(rows):
        return pl.BlockSpec((None, rows, L), lambda pa, b: (pa, 0, 0))

    return pl.pallas_call(
        _encoder_kernel,
        out_shape=jax.ShapeDtypeStruct((P, B, T, L), jnp.float32),
        grid=(P, B),
        in_specs=[
            pl.BlockSpec((None, None, T, F_in), lambda pa, b: (pa, b, 0, 0)),
            pl.BlockSpec((None, F_in, L), lambda pa, b: (pa, 0, 0)),
            wspec(1),                          # lin_b
            wspec(8 * L), wspec(1),            # conv1
            wspec(4 * L), wspec(1),            # conv2
            wspec(10 * L), wspec(1),           # folded conv3 + shortcut conv4
        ],
        out_specs=pl.BlockSpec((None, None, T, L), lambda pa, b: (pa, b, 0, 0)),
        compiler_params=pltpu.CompilerParams(
            dimension_semantics=("parallel", "parallel"),
            vmem_limit_bytes=VMEM_LIMIT),
    )(x_stack, p["lin_w"], p["lin_b"], p["w1"], p["b1"], p["w2"], p["b2"],
      p["w34"], p["b34"])


# ------------------------------ LSTM kernel ----------------------------------
# Input is the style encoder output [B, T, L] directly (no XLA transpose).
# Gate order i, f, g, o; wih/whh are [L, 4L] bf16; b = b_ih + b_hh [1, 4L] f32.
# TODO(synk): for long T, chunk the hoisted projection over T (emit_pipeline)
# instead of holding the full [B*T, 4L] scratch in VMEM (v7x budget).

def _lstm_last_kernel(x_ref, wih_ref, whh_ref, b_ref, h_ref, xg_ref):
    B, T, L = x_ref.shape

    # Hoisted input projection: one wide [B*T, L] @ [L, 4L] bf16 matmul.
    # xg rows are b-major: row index = b*T + t.
    x = x_ref[...].astype(jnp.bfloat16).reshape(B * T, L)
    xg_ref[...] = (jnp.dot(x, wih_ref[...], preferred_element_type=jnp.float32)
                   + b_ref[...])
    whh = whh_ref[...]                                             # [L, 4L] bf16

    def body(t, carry):
        h, c = carry
        # Gather this step's pre-projected gate rows (one per batch element).
        gx = jnp.concatenate(
            [xg_ref[pl.ds(b * T + t, 1), :] for b in range(B)], axis=0)  # [B,4L]
        gates = gx + jnp.dot(h.astype(jnp.bfloat16), whh,
                             preferred_element_type=jnp.float32)
        i = jax.nn.sigmoid(gates[:, 0:L])
        f = jax.nn.sigmoid(gates[:, L:2 * L])
        g = jnp.tanh(gates[:, 2 * L:3 * L])
        o = jax.nn.sigmoid(gates[:, 3 * L:4 * L])
        c_new = f * c + i * g
        h_new = o * jnp.tanh(c_new)
        return (h_new, c_new)

    h0 = jnp.zeros((B, L), jnp.float32)
    c0 = jnp.zeros((B, L), jnp.float32)
    unroll = True if T <= 32 else 8        # give the LLO scheduler visibility
    h_T, _ = lax.fori_loop(0, T, body, (h0, c0), unroll=unroll)
    h_ref[...] = h_T


def lstm_last(xs_enc, wih, whh, b):
    B, T, L = xs_enc.shape
    return pl.pallas_call(
        _lstm_last_kernel,
        out_shape=jax.ShapeDtypeStruct((B, L), jnp.float32),
        grid=(1,),
        in_specs=[pl.BlockSpec((B, T, L), lambda i: (0, 0, 0)),
                  pl.BlockSpec((L, 4 * L), lambda i: (0, 0)),
                  pl.BlockSpec((L, 4 * L), lambda i: (0, 0)),
                  pl.BlockSpec((1, 4 * L), lambda i: (0, 0))],
        out_specs=pl.BlockSpec((B, L), lambda i: (0, 0)),
        scratch_shapes=[pltpu.VMEM((B * T, 4 * L), jnp.float32)],
        compiler_params=pltpu.CompilerParams(
            dimension_semantics=("arbitrary",),
            vmem_limit_bytes=VMEM_LIMIT),
    )(xs_enc, wih, whh, b)


# --------------------- fused attention + decoder kernel ----------------------
# attention over the alphabet (std-normalised softmax) + style modulation
# (applied to the [A,L] value matrix, exact since style is constant over T) +
# causal decoder block with conv3 + shortcut conv4 + output Linear all folded
# offline into a single [T,16L]@[16L,F_out] matmul.

def _attn_decoder_kernel(q_ref, key_ref, val_ref, style_ref,
                         w1_ref, b1_ref, w2_ref, b2_ref, w34_ref, b34_ref,
                         a_ref, y_ref):
    q = q_ref[...].astype(jnp.bfloat16)                            # [T, L]
    scores = jnp.dot(q, key_ref[...], preferred_element_type=jnp.float32)  # [T,A]
    n = scores.shape[-1]

    # torch.std (unbiased) via one-pass sum / sum-of-squares.
    s1 = jnp.sum(scores, axis=-1, keepdims=True)
    s2 = jnp.sum(scores * scores, axis=-1, keepdims=True)
    var = jnp.maximum(s2 - s1 * s1 * (1.0 / n), 0.0) * (1.0 / (n - 1))
    std = jnp.sqrt(var)
    scores = scores * pl.reciprocal(std + 1e-5, approx=True)       # EUP divide

    scores = scores - jnp.max(scores, axis=-1, keepdims=True)
    e = jnp.exp(scores)
    attn = e / jnp.sum(e, axis=-1, keepdims=True)                  # exact softmax

    # (attn @ value) * style == attn @ (value * style); value is tiny [A, L].
    val_mod = (val_ref[...] * style_ref[...]).astype(jnp.bfloat16)
    lat = jnp.dot(attn.astype(jnp.bfloat16), val_mod,
                  preferred_element_type=jnp.float32)              # [T, L]

    # decoder long path (causal replication pads)
    h = _dilated_conv(lat, w1_ref[...], b1_ref[...],
                      k=2, d=2, pad_left=2, pad_right=0, relu=True)
    h = _dilated_conv(h, w2_ref[...], b2_ref[...],
                      k=4, d=4, pad_left=12, pad_right=0, relu=True)

    # conv3(h) + shortcut conv4(lat) + output Linear: one shared k8/d8 im2col
    # over concat([h, lat]) and one matmul against the pre-folded weights.
    hc = jnp.concatenate([h, lat], axis=-1).astype(jnp.bfloat16)   # [T, 2L]
    cols = _im2col(hc, k=8, d=8, pad_left=56, pad_right=0)         # [T, 16L]
    y_ref[...] = (jnp.dot(cols, w34_ref[...], preferred_element_type=jnp.float32)
                  + b34_ref[...])
    a_ref[...] = attn


def fused_attention_decoder(q, key_mat, value_mat, style, dec):
    B, T, L = q.shape
    A_count = key_mat.shape[-1]
    F_out = dec["w34"].shape[-1]

    def wspec(rows, cols):
        return pl.BlockSpec((rows, cols), lambda i: (0, 0))

    return pl.pallas_call(
        _attn_decoder_kernel,
        out_shape=(jax.ShapeDtypeStruct((B, T, A_count), jnp.float32),
                   jax.ShapeDtypeStruct((B, T, F_out), jnp.float32)),
        grid=(B,),
        in_specs=[
            pl.BlockSpec((None, T, L), lambda i: (i, 0, 0)),       # x_query
            wspec(L, A_count),                                     # key
            wspec(A_count, L),                                     # value
            pl.BlockSpec((None, 1, L), lambda i: (i, 0, 0)),       # style vector
            wspec(2 * L, L), wspec(1, L),                          # dec conv1
            wspec(4 * L, L), wspec(1, L),                          # dec conv2
            wspec(16 * L, F_out), wspec(1, F_out),                 # folded tail
        ],
        out_specs=(pl.BlockSpec((None, T, A_count), lambda i: (i, 0, 0)),
                   pl.BlockSpec((None, T, F_out), lambda i: (i, 0, 0))),
        compiler_params=pltpu.CompilerParams(
            dimension_semantics=("parallel",),
            vmem_limit_bytes=VMEM_LIMIT),
    )(q, key_mat, value_mat, style, dec["w1"], dec["b1"], dec["w2"], dec["b2"],
      dec["w34"], dec["b34"])


# ------------------------------ forward --------------------------------------

def speech_autoencoder_forward(params, x_content, x_style):
    # Fused encoders: both paths in one kernel, grid=(2 paths, B).
    x_stack = jnp.stack([x_content, x_style], axis=0)              # [2, B, T, F_in]
    enc = fused_encoder(x_stack, params["enc"])                    # [2, B, T, L]
    x_query, xs_enc = enc[0], enc[1]

    # Style LSTM -> last hidden state [B, L] (no XLA-side transpose needed).
    h_last = lstm_last(xs_enc, params["lstm_wih"], params["lstm_whh"],
                       params["lstm_b"])
    style_vec = h_last[:, None, :]                                 # [B, 1, L]

    # Fused attention + style modulation + decoder + (folded) output Linear.
    A, y_hat = fused_attention_decoder(x_query, params["key"], params["value"],
                                       style_vec, params["dec"])
    return y_hat, A


# --------------------------- parameters --------------------------------------

def init_raw_params(key, F_in, L, A_count):
    """Raw parameters mirroring the torch module (conv weights im2col-flattened:
    [k*C_in, C_out] == torch_weight.permute(2,1,0).reshape(k*C_in, C_out))."""
    keys = iter(jax.random.split(key, 64))

    def nrm(shape, scale=0.1):
        return scale * jax.random.normal(next(keys), shape, dtype=jnp.float32)

    return {
        "alphabet": nrm((A_count, L), scale=1.0),
        # content (0) and style (1) encoder params stacked on a leading axis.
        "enc": {
            "lin_w": nrm((2, F_in, L)), "lin_b": nrm((2, 1, L)),
            "w1": nrm((2, 8 * L, L)), "b1": nrm((2, 1, L)),
            "w2": nrm((2, 4 * L, L)), "b2": nrm((2, 1, L)),
            "w3": nrm((2, 2 * L, L)), "b3": nrm((2, 1, L)),
            "w4": nrm((2, 8 * L, L)), "b4": nrm((2, 1, L)),
        },
        "dec": {
            "w1": nrm((2 * L, L)), "b1": nrm((1, L)),
            "w2": nrm((4 * L, L)), "b2": nrm((1, L)),
            "w3": nrm((8 * L, L)), "b3": nrm((1, L)),
            "w4": nrm((8 * L, L)), "b4": nrm((1, L)),
        },
        # LSTM gate order i, f, g, o; [L, 4L]; bias = b_ih + b_hh.
        "lstm_wih": nrm((L, 4 * L)), "lstm_whh": nrm((L, 4 * L)),
        "lstm_b": nrm((1, 4 * L)),
        "dec_lin_w": nrm((L, F_in)), "dec_lin_b": nrm((1, F_in)),
    }


def fold_params(raw):
    """Offline (zero runtime cost) algebraic folding + bf16 cast of all MXU
    weight operands.  Exact rewrites of the original forward:
      * encoder: conv3(h2)+conv4(h0) == [cols2|cols8] @ [w3; w4] + (b3+b4)
      * decoder: conv3(h)+conv4(lat) -> Linear folded into the conv weights,
        with rows interleaved per tap to match im2col over concat([h, lat]).
    """
    bf16 = jnp.bfloat16
    enc, dec = raw["enc"], raw["dec"]
    L = dec["w1"].shape[-1]
    lw, lb = raw["dec_lin_w"], raw["dec_lin_b"]
    F_out = lw.shape[-1]

    w3f = dec["w3"] @ lw                                           # [8L, F]
    w4f = dec["w4"] @ lw                                           # [8L, F]
    dec_w34 = jnp.concatenate(
        [w3f.reshape(8, L, F_out), w4f.reshape(8, L, F_out)], axis=1
    ).reshape(16 * L, F_out)                                       # tap-major
    dec_b34 = (dec["b3"] + dec["b4"]) @ lw + lb                    # [1, F]

    return {
        "key": jnp.transpose(raw["alphabet"]).astype(bf16),        # [L, A]
        "value": raw["alphabet"],                                  # [A, L] f32
        "enc": {
            "lin_w": enc["lin_w"].astype(bf16), "lin_b": enc["lin_b"],
            "w1": enc["w1"].astype(bf16), "b1": enc["b1"],
            "w2": enc["w2"].astype(bf16), "b2": enc["b2"],
            "w34": jnp.concatenate([enc["w3"], enc["w4"]], axis=1).astype(bf16),
            "b34": enc["b3"] + enc["b4"],
        },
        "dec": {
            "w1": dec["w1"].astype(bf16), "b1": dec["b1"],
            "w2": dec["w2"].astype(bf16), "b2": dec["b2"],
            "w34": dec_w34.astype(bf16), "b34": dec_b34,
        },
        "lstm_wih": raw["lstm_wih"].astype(bf16),
        "lstm_whh": raw["lstm_whh"].astype(bf16),
        "lstm_b": raw["lstm_b"],
    }


# ------------------------------- main -----------------------------------------

if __name__ == "__main__":
    B, T, F_in, L, A_count = 2, 16, 16, 8, 12

    root = jax.random.PRNGKey(0)
    k_params, k_content, k_style = jax.random.split(root, 3)
    params = fold_params(init_raw_params(k_params, F_in, L, A_count))

    x_content = jax.random.normal(k_content, (B, T, F_in), dtype=jnp.float32)
    x_style = jax.random.normal(k_style, (B, T, F_in), dtype=jnp.float32)

    fwd = jax.jit(speech_autoencoder_forward)
    y_hat, A = fwd(params, x_content, x_style)
    jax.block_until_ready((y_hat, A))

    assert y_hat.shape == (B, T, F_in)
    assert A.shape == (B, T, A_count)
    assert bool(jnp.isfinite(y_hat).all()) and bool(jnp.isfinite(A).all())
    print("KERNEL_OK")
</pallas_src>

<mosaic_0001>
module attributes {stable_mosaic.version = 11 : i64} {
  func.func @_encoder_kernel(%arg0: i32, %arg1: i32, %arg2: memref<1x1x16x16xf32, #tpu.memory_space<vmem>>, %arg3: memref<1x16x8xbf16, #tpu.memory_space<vmem>>, %arg4: memref<1x1x8xf32, #tpu.memory_space<vmem>>, %arg5: memref<1x64x8xbf16, #tpu.memory_space<vmem>>, %arg6: memref<1x1x8xf32, #tpu.memory_space<vmem>>, %arg7: memref<1x32x8xbf16, #tpu.memory_space<vmem>>, %arg8: memref<1x1x8xf32, #tpu.memory_space<vmem>>, %arg9: memref<1x80x8xbf16, #tpu.memory_space<vmem>>, %arg10: memref<1x1x8xf32, #tpu.memory_space<vmem>>, %arg11: memref<1x1x16x8xf32, #tpu.memory_space<vmem>>) attributes {dimension_semantics = [#tpu.dimension_semantics<parallel>, #tpu.dimension_semantics<parallel>], iteration_bounds = array<i64: 2, 2>, scalar_prefetch = 0 : i64, scratch_operands = 0 : i64, tpu.core_type = #tpu.core_type<tc>, window_params = [{transform_indices = @transform_0, window_bounds = array<i64: 1, 1, 16, 16>}, {transform_indices = @transform_1, window_bounds = array<i64: 1, 16, 8>}, {transform_indices = @transform_2, window_bounds = array<i64: 1, 1, 8>}, {transform_indices = @transform_3, window_bounds = array<i64: 1, 64, 8>}, {transform_indices = @transform_4, window_bounds = array<i64: 1, 1, 8>}, {transform_indices = @transform_5, window_bounds = array<i64: 1, 32, 8>}, {transform_indices = @transform_6, window_bounds = array<i64: 1, 1, 8>}, {transform_indices = @transform_7, window_bounds = array<i64: 1, 80, 8>}, {transform_indices = @transform_8, window_bounds = array<i64: 1, 1, 8>}, {transform_indices = @transform_9, window_bounds = array<i64: 1, 1, 16, 8>}]} {
    %c0 = arith.constant 0 : index
    %c0_0 = arith.constant 0 : index
    %c0_1 = arith.constant 0 : index
    %c0_2 = arith.constant 0 : index
    %0 = vector.load %arg2[%c0, %c0_0, %c0_1, %c0_2] : memref<1x1x16x16xf32, #tpu.memory_space<vmem>>, vector<1x1x16x16xf32>
    %1 = vector.shape_cast %0 : vector<1x1x16x16xf32> to vector<16x16xf32>
    %2 = arith.truncf %1 : vector<16x16xf32> to vector<16x16xbf16>
    %c0_3 = arith.constant 0 : index
    %c0_4 = arith.constant 0 : index
    %c0_5 = arith.constant 0 : index
    %3 = vector.load %arg3[%c0_3, %c0_4, %c0_5] : memref<1x16x8xbf16, #tpu.memory_space<vmem>>, vector<1x16x8xbf16>
    %4 = vector.shape_cast %3 : vector<1x16x8xbf16> to vector<16x8xbf16>
    %cst = arith.constant dense<0.000000e+00> : vector<16x8xf32>
    %5 = tpu.matmul %2, %4, %cst {dimension_numbers = #tpu.dot_dimension_numbers<[1], [0], [0], [1], [0, 0, 1, 1], [], []>} : vector<16x16xbf16>, vector<16x8xbf16>, vector<16x8xf32> -> vector<16x8xf32>
    %c0_6 = arith.constant 0 : index
    %c0_7 = arith.constant 0 : index
    %c0_8 = arith.constant 0 : index
    %6 = vector.load %arg4[%c0_6, %c0_7, %c0_8] : memref<1x1x8xf32, #tpu.memory_space<vmem>>, vector<1x1x8xf32>
    %7 = vector.shape_cast %6 : vector<1x1x8xf32> to vector<1x8xf32>
    %8 = vector.broadcast %7 : vector<1x8xf32> to vector<16x8xf32>
    %9 = arith.addf %5, %8 : vector<16x8xf32>
    %10 = arith.truncf %9 : vector<16x8xf32> to vector<16x8xbf16>
    %11 = vector.extract_strided_slice %10 {offsets = [0, 0], sizes = [1, 8], strides = [1, 1]} : vector<16x8xbf16> to vector<1x8xbf16>
    %12 = vector.shape_cast %11 : vector<1x8xbf16> to vector<1x8xbf16>
    %13 = vector.broadcast %12 : vector<1x8xbf16> to vector<28x8xbf16>
    %14 = vector.extract_strided_slice %10 {offsets = [15, 0], sizes = [1, 8], strides = [1, 1]} : vector<16x8xbf16> to vector<1x8xbf16>
    %15 = vector.shape_cast %14 : vector<1x8xbf16> to vector<1x8xbf16>
    %16 = vector.broadcast %15 : vector<1x8xbf16> to vector<28x8xbf16>
    %17 = tpu.concatenate %13, %10, %16 in 0 : vector<28x8xbf16>, vector<16x8xbf16>, vector<28x8xbf16> -> vector<72x8xbf16>
    %18 = vector.extract_strided_slice %17 {offsets = [0, 0], sizes = [16, 8], strides = [1, 1]} : vector<72x8xbf16> to vector<16x8xbf16>
    %19 = vector.extract_strided_slice %17 {offsets = [8, 0], sizes = [16, 8], strides = [1, 1]} : vector<72x8xbf16> to vector<16x8xbf16>
    %20 = vector.extract_strided_slice %17 {offsets = [16, 0], sizes = [16, 8], strides = [1, 1]} : vector<72x8xbf16> to vector<16x8xbf16>
    %21 = vector.extract_strided_slice %17 {offsets = [24, 0], sizes = [16, 8], strides = [1, 1]} : vector<72x8xbf16> to vector<16x8xbf16>
    %22 = vector.extract_strided_slice %17 {offsets = [32, 0], sizes = [16, 8], strides = [1, 1]} : vector<72x8xbf16> to vector<16x8xbf16>
    %23 = vector.extract_strided_slice %17 {offsets = [40, 0], sizes = [16, 8], strides = [1, 1]} : vector<72x8xbf16> to vector<16x8xbf16>
    %24 = vector.extract_strided_slice %17 {offsets = [48, 0], sizes = [16, 8], strides = [1, 1]} : vector<72x8xbf16> to vector<16x8xbf16>
    %25 = vector.extract_strided_slice %17 {offsets = [56, 0], sizes = [16, 8], strides = [1, 1]} : vector<72x8xbf16> to vector<16x8xbf16>
    %26 = tpu.concatenate %18, %19, %20, %21, %22, %23, %24, %25 in 1 : vector<16x8xbf16>, vector<16x8xbf16>, vector<16x8xbf16>, vector<16x8xbf16>, vector<16x8xbf16>, vector<16x8xbf16>, vector<16x8xbf16>, vector<16x8xbf16> -> vector<16x64xbf16>
    %c0_9 = arith.constant 0 : index
    %c0_10 = arith.constant 0 : index
    %c0_11 = arith.constant 0 : index
    %27 = vector.load %arg5[%c0_9, %c0_10, %c0_11] : memref<1x64x8xbf16, #tpu.memory_space<vmem>>, vector<1x64x8xbf16>
    %28 = vector.shape_cast %27 : vector<1x64x8xbf16> to vector<64x8xbf16>
    %cst_12 = arith.constant dense<0.000000e+00> : vector<16x8xf32>
    %29 = tpu.matmul %26, %28, %cst_12 {dimension_numbers = #tpu.dot_dimension_numbers<[1], [0], [0], [1], [0, 0, 1, 1], [], []>} : vector<16x64xbf16>, vector<64x8xbf16>, vector<16x8xf32> -> vector<16x8xf32>
    %c0_13 = arith.constant 0 : index
    %c0_14 = arith.constant 0 : index
    %c0_15 = arith.constant 0 : index
    %30 = vector.load %arg6[%c0_13, %c0_14, %c0_15] : memref<1x1x8xf32, #tpu.memory_space<vmem>>, vector<1x1x8xf32>
    %31 = vector.shape_cast %30 : vector<1x1x8xf32> to vector<1x8xf32>
    %32 = vector.broadcast %31 : vector<1x8xf32> to vector<16x8xf32>
    %33 = arith.addf %29, %32 : vector<16x8xf32>
    %cst_16 = arith.constant 0.000000e+00 : f32
    %34 = vector.broadcast %cst_16 : f32 to vector<16x8xf32>
    %35 = arith.maximumf %33, %34 : vector<16x8xf32>
    %c0_17 = arith.constant 0 : index
    %c0_18 = arith.constant 0 : index
    %c0_19 = arith.constant 0 : index
    %36 = vector.load %arg7[%c0_17, %c0_18, %c0_19] : memref<1x32x8xbf16, #tpu.memory_space<vmem>>, vector<1x32x8xbf16>
    %37 = vector.shape_cast %36 : vector<1x32x8xbf16> to vector<32x8xbf16>
    %c0_20 = arith.constant 0 : index
    %c0_21 = arith.constant 0 : index
    %c0_22 = arith.constant 0 : index
    %38 = vector.load %arg8[%c0_20, %c0_21, %c0_22] : memref<1x1x8xf32, #tpu.memory_space<vmem>>, vector<1x1x8xf32>
    %39 = vector.shape_cast %38 : vector<1x1x8xf32> to vector<1x8xf32>
    %40 = arith.truncf %35 : vector<16x8xf32> to vector<16x8xbf16>
    %41 = vector.extract_strided_slice %40 {offsets = [0, 0], sizes = [1, 8], strides = [1, 1]} : vector<16x8xbf16> to vector<1x8xbf16>
    %42 = vector.shape_cast %41 : vector<1x8xbf16> to vector<1x8xbf16>
    %43 = vector.broadcast %42 : vector<1x8xbf16> to vector<6x8xbf16>
    %44 = vector.extract_strided_slice %40 {offsets = [15, 0], sizes = [1, 8], strides = [1, 1]} : vector<16x8xbf16> to vector<1x8xbf16>
    %45 = vector.shape_cast %44 : vector<1x8xbf16> to vector<1x8xbf16>
    %46 = vector.broadcast %45 : vector<1x8xbf16> to vector<6x8xbf16>
    %47 = tpu.concatenate %43, %40, %46 in 0 : vector<6x8xbf16>, vector<16x8xbf16>, vector<6x8xbf16> -> vector<28x8xbf16>
    %48 = vector.extract_strided_slice %47 {offsets = [0, 0], sizes = [16, 8], strides = [1, 1]} : vector<28x8xbf16> to vector<16x8xbf16>
    %49 = vector.extract_strided_slice %47 {offsets = [4, 0], sizes = [16, 8], strides = [1, 1]} : vector<28x8xbf16> to vector<16x8xbf16>
    %50 = vector.extract_strided_slice %47 {offsets = [8, 0], sizes = [16, 8], strides = [1, 1]} : vector<28x8xbf16> to vector<16x8xbf16>
    %51 = vector.extract_strided_slice %47 {offsets = [12, 0], sizes = [16, 8], strides = [1, 1]} : vector<28x8xbf16> to vector<16x8xbf16>
    %52 = tpu.concatenate %48, %49, %50, %51 in 1 : vector<16x8xbf16>, vector<16x8xbf16>, vector<16x8xbf16>, vector<16x8xbf16> -> vector<16x32xbf16>
    %cst_23 = arith.constant dense<0.000000e+00> : vector<16x8xf32>
    %53 = tpu.matmul %52, %37, %cst_23 {dimension_numbers = #tpu.dot_dimension_numbers<[1], [0], [0], [1], [0, 0, 1, 1], [], []>} : vector<16x32xbf16>, vector<32x8xbf16>, vector<16x8xf32> -> vector<16x8xf32>
    %54 = vector.broadcast %39 : vector<1x8xf32> to vector<16x8xf32>
    %55 = arith.addf %53, %54 : vector<16x8xf32>
    %cst_24 = arith.constant 0.000000e+00 : f32
    %56 = vector.broadcast %cst_24 : f32 to vector<16x8xf32>
    %57 = arith.maximumf %55, %56 : vector<16x8xf32>
    %58 = arith.truncf %57 : vector<16x8xf32> to vector<16x8xbf16>
    %59 = vector.extract_strided_slice %58 {offsets = [0, 0], sizes = [1, 8], strides = [1, 1]} : vector<16x8xbf16> to vector<1x8xbf16>
    %60 = vector.extract_strided_slice %58 {offsets = [15, 0], sizes = [1, 8], strides = [1, 1]} : vector<16x8xbf16> to vector<1x8xbf16>
    %61 = tpu.concatenate %59, %58, %60 in 0 : vector<1x8xbf16>, vector<16x8xbf16>, vector<1x8xbf16> -> vector<18x8xbf16>
    %62 = vector.extract_strided_slice %61 {offsets = [0, 0], sizes = [16, 8], strides = [1, 1]} : vector<18x8xbf16> to vector<16x8xbf16>
    %63 = vector.extract_strided_slice %61 {offsets = [2, 0], sizes = [16, 8], strides = [1, 1]} : vector<18x8xbf16> to vector<16x8xbf16>
    %64 = tpu.concatenate %62, %63 in 1 : vector<16x8xbf16>, vector<16x8xbf16> -> vector<16x16xbf16>
    %65 = tpu.concatenate %64, %26 in 1 : vector<16x16xbf16>, vector<16x64xbf16> -> vector<16x80xbf16>
    %c0_25 = arith.constant 0 : index
    %c0_26 = arith.constant 0 : index
    %c0_27 = arith.constant 0 : index
    %66 = vector.load %arg9[%c0_25, %c0_26, %c0_27] : memref<1x80x8xbf16, #tpu.memory_space<vmem>>, vector<1x80x8xbf16>
    %67 = vector.shape_cast %66 : vector<1x80x8xbf16> to vector<80x8xbf16>
    %cst_28 = arith.constant dense<0.000000e+00> : vector<16x8xf32>
    %68 = tpu.matmul %65, %67, %cst_28 {dimension_numbers = #tpu.dot_dimension_numbers<[1], [0], [0], [1], [0, 0, 1, 1], [], []>} : vector<16x80xbf16>, vector<80x8xbf16>, vector<16x8xf32> -> vector<16x8xf32>
    %c0_29 = arith.constant 0 : index
    %c0_30 = arith.constant 0 : index
    %c0_31 = arith.constant 0 : index
    %69 = vector.load %arg10[%c0_29, %c0_30, %c0_31] : memref<1x1x8xf32, #tpu.memory_space<vmem>>, vector<1x1x8xf32>
    %70 = vector.shape_cast %69 : vector<1x1x8xf32> to vector<1x8xf32>
    %71 = vector.broadcast %70 : vector<1x8xf32> to vector<16x8xf32>
    %72 = arith.addf %68, %71 : vector<16x8xf32>
    %c0_32 = arith.constant 0 : index
    %c0_33 = arith.constant 0 : index
    %c0_34 = arith.constant 0 : index
    %c0_35 = arith.constant 0 : index
    %73 = vector.load %arg11[%c0_32, %c0_33, %c0_34, %c0_35] : memref<1x1x16x8xf32, #tpu.memory_space<vmem>>, vector<1x1x16x8xf32>
    %74 = vector.shape_cast %73 : vector<1x1x16x8xf32> to vector<16x8xf32>
    %75 = vector.shape_cast %72 : vector<16x8xf32> to vector<1x1x16x8xf32>
    tpu.vector_store %arg11[%c0_32, %c0_33, %c0_34, %c0_35], %75 {strides = array<i32>} : memref<1x1x16x8xf32, #tpu.memory_space<vmem>>, vector<1x1x16x8xf32>,
    return
  }
  func.func @transform_0(%arg0: i32, %arg1: i32) -> (i32, i32, i32, i32) {
    %c0_i32 = arith.constant 0 : i32
    %c0_i32_0 = arith.constant 0 : i32
    %c0_i32_1 = arith.constant 0 : i32
    return %arg0, %arg1, %c0_i32, %c0_i32_0 : i32, i32, i32, i32
  }
  func.func @transform_1(%arg0: i32, %arg1: i32) -> (i32, i32, i32) {
    %c0_i32 = arith.constant 0 : i32
    %c0_i32_0 = arith.constant 0 : i32
    %c0_i32_1 = arith.constant 0 : i32
    return %arg0, %c0_i32, %c0_i32_0 : i32, i32, i32
  }
  func.func @transform_2(%arg0: i32, %arg1: i32) -> (i32, i32, i32) {
    %c0_i32 = arith.constant 0 : i32
    %c0_i32_0 = arith.constant 0 : i32
    %c0_i32_1 = arith.constant 0 : i32
    return %arg0, %c0_i32, %c0_i32_0 : i32, i32, i32
  }
  func.func @transform_3(%arg0: i32, %arg1: i32) -> (i32, i32, i32) {
    %c0_i32 = arith.constant 0 : i32
    %c0_i32_0 = arith.constant 0 : i32
    %c0_i32_1 = arith.constant 0 : i32
    return %arg0, %c0_i32, %c0_i32_0 : i32, i32, i32
  }
  func.func @transform_4(%arg0: i32, %arg1: i32) -> (i32, i32, i32) {
    %c0_i32 = arith.constant 0 : i32
    %c0_i32_0 = arith.constant 0 : i32
    %c0_i32_1 = arith.constant 0 : i32
    return %arg0, %c0_i32, %c0_i32_0 : i32, i32, i32
  }
  func.func @transform_5(%arg0: i32, %arg1: i32) -> (i32, i32, i32) {
    %c0_i32 = arith.constant 0 : i32
    %c0_i32_0 = arith.constant 0 : i32
    %c0_i32_1 = arith.constant 0 : i32
    return %arg0, %c0_i32, %c0_i32_0 : i32, i32, i32
  }
  func.func @transform_6(%arg0: i32, %arg1: i32) -> (i32, i32, i32) {
    %c0_i32 = arith.constant 0 : i32
    %c0_i32_0 = arith.constant 0 : i32
    %c0_i32_1 = arith.constant 0 : i32
    return %arg0, %c0_i32, %c0_i32_0 : i32, i32, i32
  }
  func.func @transform_7(%arg0: i32, %arg1: i32) -> (i32, i32, i32) {
    %c0_i32 = arith.constant 0 : i32
    %c0_i32_0 = arith.constant 0 : i32
    %c0_i32_1 = arith.constant 0 : i32
    return %arg0, %c0_i32, %c0_i32_0 : i32, i32, i32
  }
  func.func @transform_8(%arg0: i32, %arg1: i32) -> (i32, i32, i32) {
    %c0_i32 = arith.constant 0 : i32
    %c0_i32_0 = arith.constant 0 : i32
    %c0_i32_1 = arith.constant 0 : i32
    return %arg0, %c0_i32, %c0_i32_0 : i32, i32, i32
  }
  func.func @transform_9(%arg0: i32, %arg1: i32) -> (i32, i32, i32, i32) {
    %c0_i32 = arith.constant 0 : i32
    %c0_i32_0 = arith.constant 0 : i32
    %c0_i32_1 = arith.constant 0 : i32
    return %arg0, %arg1, %c0_i32, %c0_i32_0 : i32, i32, i32, i32
  }
}

module attributes {stable_mosaic.version = 11 : i64} {
  func.func @_lstm_last_kernel(%arg0: i32, %arg1: memref<2x16x8xf32, #tpu.memory_space<vmem>>, %arg2: memref<8x32xbf16, #tpu.memory_space<vmem>>, %arg3: memref<8x32xbf16, #tpu.memory_space<vmem>>, %arg4: memref<1x32xf32, #tpu.memory_space<vmem>>, %arg5: memref<2x8xf32, #tpu.memory_space<vmem>>, %arg6: memref<32x32xf32, #tpu.memory_space<vmem>>) attributes {dimension_semantics = [#tpu.dimension_semantics<arbitrary>], iteration_bounds = array<i64: 1>, scalar_prefetch = 0 : i64, scratch_operands = 1 : i64, tpu.core_type = #tpu.core_type<tc>, window_params = [{pipeline_mode = #tpu.pipeline_mode<synchronous>, transform_indices = @transform_0, window_bounds = array<i64: 2, 16, 8>}, {pipeline_mode = #tpu.pipeline_mode<synchronous>, transform_indices = @transform_1, window_bounds = array<i64: 8, 32>}, {pipeline_mode = #tpu.pipeline_mode<synchronous>, transform_indices = @transform_2, window_bounds = array<i64: 8, 32>}, {pipeline_mode = #tpu.pipeline_mode<synchronous>, transform_indices = @transform_3, window_bounds = array<i64: 1, 32>}, {pipeline_mode = #tpu.pipeline_mode<synchronous>, transform_indices = @transform_4, window_bounds = array<i64: 2, 8>}]} {
    %c0 = arith.constant 0 : index
    %c0_0 = arith.constant 0 : index
    %c0_1 = arith.constant 0 : index
    %0 = vector.load %arg1[%c0, %c0_0, %c0_1] : memref<2x16x8xf32, #tpu.memory_space<vmem>>, vector<2x16x8xf32>
    %1 = arith.truncf %0 : vector<2x16x8xf32> to vector<2x16x8xbf16>
    %2 = vector.shape_cast %1 : vector<2x16x8xbf16> to vector<32x8xbf16>
    %c0_2 = arith.constant 0 : index
    %c0_3 = arith.constant 0 : index
    %3 = vector.load %arg2[%c0_2, %c0_3] : memref<8x32xbf16, #tpu.memory_space<vmem>>, vector<8x32xbf16>
    %cst = arith.constant dense<0.000000e+00> : vector<32x32xf32>
    %4 = tpu.matmul %2, %3, %cst {dimension_numbers = #tpu.dot_dimension_numbers<[1], [0], [0], [1], [0, 0, 1, 1], [], []>} : vector<32x8xbf16>, vector<8x32xbf16>, vector<32x32xf32> -> vector<32x32xf32>
    %c0_4 = arith.constant 0 : index
    %c0_5 = arith.constant 0 : index
    %5 = vector.load %arg4[%c0_4, %c0_5] : memref<1x32xf32, #tpu.memory_space<vmem>>, vector<1x32xf32>
    %6 = vector.broadcast %5 : vector<1x32xf32> to vector<32x32xf32>
    %7 = arith.addf %4, %6 : vector<32x32xf32>
    %c0_6 = arith.constant 0 : index
    %c0_7 = arith.constant 0 : index
    %8 = vector.load %arg6[%c0_6, %c0_7] : memref<32x32xf32, #tpu.memory_space<vmem>>, vector<32x32xf32>
    tpu.vector_store %arg6[%c0_6, %c0_7], %7 {strides = array<i32>} : memref<32x32xf32, #tpu.memory_space<vmem>>, vector<32x32xf32>,
    %c0_8 = arith.constant 0 : index
    %c0_9 = arith.constant 0 : index
    %9 = vector.load %arg3[%c0_8, %c0_9] : memref<8x32xbf16, #tpu.memory_space<vmem>>, vector<8x32xbf16>
    %cst_10 = arith.constant 0.000000e+00 : f32
    %10 = vector.broadcast %cst_10 : f32 to vector<2x8xf32>
    %cst_11 = arith.constant 0.000000e+00 : f32
    %11 = vector.broadcast %cst_11 : f32 to vector<2x8xf32>
    %c0_i32 = arith.constant 0 : i32
    %c0_i32_12 = arith.constant 0 : i32
    %12 = arith.addi %c0_i32_12, %c0_i32 : i32
    %13 = arith.index_cast %12 : i32 to index
    %c0_13 = arith.constant 0 : index
    %14 = vector.load %arg6[%13, %c0_13] : memref<32x32xf32, #tpu.memory_space<vmem>>, vector<1x32xf32>
    %c16_i32 = arith.constant 16 : i32
    %15 = arith.addi %c16_i32, %c0_i32 : i32
    %16 = arith.index_cast %15 : i32 to index
    %c0_14 = arith.constant 0 : index
    %17 = vector.load %arg6[%16, %c0_14] : memref<32x32xf32, #tpu.memory_space<vmem>>, vector<1x32xf32>
    %18 = tpu.concatenate %14, %17 in 0 : vector<1x32xf32>, vector<1x32xf32> -> vector<2x32xf32>
    %19 = arith.truncf %10 : vector<2x8xf32> to vector<2x8xbf16>
    %cst_15 = arith.constant dense<0.000000e+00> : vector<2x32xf32>
    %20 = tpu.matmul %19, %9, %cst_15 {dimension_numbers = #tpu.dot_dimension_numbers<[1], [0], [0], [1], [0, 0, 1, 1], [], []>} : vector<2x8xbf16>, vector<8x32xbf16>, vector<2x32xf32> -> vector<2x32xf32>
    %21 = arith.addf %18, %20 : vector<2x32xf32>
    %22 = vector.extract_strided_slice %21 {offsets = [0, 0], sizes = [2, 8], strides = [1, 1]} : vector<2x32xf32> to vector<2x8xf32>
    %23 = arith.negf %22 : vector<2x8xf32>
    %24 = math.exp %23 : vector<2x8xf32>
    %cst_16 = arith.constant 1.000000e+00 : f32
    %25 = vector.broadcast %cst_16 : f32 to vector<2x8xf32>
    %26 = arith.addf %25, %24 : vector<2x8xf32>
    %27 = arith.divf %25, %26 : vector<2x8xf32>
    %28 = vector.extract_strided_slice %21 {offsets = [0, 8], sizes = [2, 8], strides = [1, 1]} : vector<2x32xf32> to vector<2x8xf32>
    %29 = arith.negf %28 : vector<2x8xf32>
    %30 = math.exp %29 : vector<2x8xf32>
    %cst_17 = arith.constant 1.000000e+00 : f32
    %31 = vector.broadcast %cst_17 : f32 to vector<2x8xf32>
    %32 = arith.addf %31, %30 : vector<2x8xf32>
    %33 = arith.divf %31, %32 : vector<2x8xf32>
    %34 = vector.extract_strided_slice %21 {offsets = [0, 16], sizes = [2, 8], strides = [1, 1]} : vector<2x32xf32> to vector<2x8xf32>
    %35 = math.tanh %34 : vector<2x8xf32>
    %36 = vector.extract_strided_slice %21 {offsets = [0, 24], sizes = [2, 8], strides = [1, 1]} : vector<2x32xf32> to vector<2x8xf32>
    %37 = arith.negf %36 : vector<2x8xf32>
    %38 = math.exp %37 : vector<2x8xf32>
    %cst_18 = arith.constant 1.000000e+00 : f32
    %39 = vector.broadcast %cst_18 : f32 to vector<2x8xf32>
    %40 = arith.addf %39, %38 : vector<2x8xf32>
    %41 = arith.divf %39, %40 : vector<2x8xf32>
    %42 = arith.mulf %33, %11 : vector<2x8xf32>
    %43 = arith.mulf %27, %35 : vector<2x8xf32>
    %44 = arith.addf %42, %43 : vector<2x8xf32>
    %45 = math.tanh %44 : vector<2x8xf32>
    %46 = arith.mulf %41, %45 : vector<2x8xf32>
    %c1_i32 = arith.constant 1 : i32
    %c0_i32_19 = arith.constant 0 : i32
    %47 = arith.addi %c0_i32_19, %c1_i32 : i32
    %48 = arith.index_cast %47 : i32 to index
    %c0_20 = arith.constant 0 : index
    %49 = vector.load %arg6[%48, %c0_20] : memref<32x32xf32, #tpu.memory_space<vmem>>, vector<1x32xf32>
    %c16_i32_21 = arith.constant 16 : i32
    %50 = arith.addi %c16_i32_21, %c1_i32 : i32
    %51 = arith.index_cast %50 : i32 to index
    %c0_22 = arith.constant 0 : index
    %52 = vector.load %arg6[%51, %c0_22] : memref<32x32xf32, #tpu.memory_space<vmem>>, vector<1x32xf32>
    %53 = tpu.concatenate %49, %52 in 0 : vector<1x32xf32>, vector<1x32xf32> -> vector<2x32xf32>
    %54 = arith.truncf %46 : vector<2x8xf32> to vector<2x8xbf16>
    %cst_23 = arith.constant dense<0.000000e+00> : vector<2x32xf32>
    %55 = tpu.matmul %54, %9, %cst_23 {dimension_numbers = #tpu.dot_dimension_numbers<[1], [0], [0], [1], [0, 0, 1, 1], [], []>} : vector<2x8xbf16>, vector<8x32xbf16>, vector<2x32xf32> -> vector<2x32xf32>
    %56 = arith.addf %53, %55 : vector<2x32xf32>
    %57 = vector.extract_strided_slice %56 {offsets = [0, 0], sizes = [2, 8], strides = [1, 1]} : vector<2x32xf32> to vector<2x8xf32>
    %58 = arith.negf %57 : vector<2x8xf32>
    %59 = math.exp %58 : vector<2x8xf32>
    %cst_24 = arith.constant 1.000000e+00 : f32
    %60 = vector.broadcast %cst_24 : f32 to vector<2x8xf32>
    %61 = arith.addf %60, %59 : vector<2x8xf32>
    %62 = arith.divf %60, %61 : vector<2x8xf32>
    %63 = vector.extract_strided_slice %56 {offsets = [0, 8], sizes = [2, 8], strides = [1, 1]} : vector<2x32xf32> to vector<2x8xf32>
    %64 = arith.negf %63 : vector<2x8xf32>
    %65 = math.exp %64 : vector<2x8xf32>
    %cst_25 = arith.constant 1.000000e+00 : f32
    %66 = vector.broadcast %cst_25 : f32 to vector<2x8xf32>
    %67 = arith.addf %66, %65 : vector<2x8xf32>
    %68 = arith.divf %66, %67 : vector<2x8xf32>
    %69 = vector.extract_strided_slice %56 {offsets = [0, 16], sizes = [2, 8], strides = [1, 1]} : vector<2x32xf32> to vector<2x8xf32>
    %70 = math.tanh %69 : vector<2x8xf32>
    %71 = vector.extract_strided_slice %56 {offsets = [0, 24], sizes = [2, 8], strides = [1, 1]} : vector<2x32xf32> to vector<2x8xf32>
    %72 = arith.negf %71 : vector<2x8xf32>
    %73 = math.exp %72 : vector<2x8xf32>
    %cst_26 = arith.constant 1.000000e+00 : f32
    %74 = vector.broadcast %cst_26 : f32 to vector<2x8xf32>
    %75 = arith.addf %74, %73 : vector<2x8xf32>
    %76 = arith.divf %74, %75 : vector<2x8xf32>
    %77 = arith.mulf %68, %44 : vector<2x8xf32>
    %78 = arith.mulf %62, %70 : vector<2x8xf32>
    %79 = arith.addf %77, %78 : vector<2x8xf32>
    %80 = math.tanh %79 : vector<2x8xf32>
    %81 = arith.mulf %76, %80 : vector<2x8xf32>
    %c2_i32 = arith.constant 2 : i32
    %c0_i32_27 = arith.constant 0 : i32
    %82 = arith.addi %c0_i32_27, %c2_i32 : i32
    %83 = arith.index_cast %82 : i32 to index
    %c0_28 = arith.constant 0 : index
    %84 = vector.load %arg6[%83, %c0_28] : memref<32x32xf32, #tpu.memory_space<vmem>>, vector<1x32xf32>
    %c16_i32_29 = arith.constant 16 : i32
    %85 = arith.addi %c16_i32_29, %c2_i32 : i32
    %86 = arith.index_cast %85 : i32 to index
    %c0_30 = arith.constant 0 : index
    %87 = vector.load %arg6[%86, %c0_30] : memref<32x32xf32, #tpu.memory_space<vmem>>, vector<1x32xf32>
    %88 = tpu.concatenate %84, %87 in 0 : vector<1x32xf32>, vector<1x32xf32> -> vector<2x32xf32>
    %89 = arith.truncf %81 : vector<2x8xf32> to vector<2x8xbf16>
    %cst_31 = arith.constant dense<0.000000e+00> : vector<2x32xf32>
    %90 = tpu.matmul %89, %9, %cst_31 {dimension_numbers = #tpu.dot_dimension_numbers<[1], [0], [0], [1], [0, 0, 1, 1], [], []>} : vector<2x8xbf16>, vector<8x32xbf16>, vector<2x32xf32> -> vector<2x32xf32>
    %91 = arith.addf %88, %90 : vector<2x32xf32>
    %92 = vector.extract_strided_slice %91 {offsets = [0, 0], sizes = [2, 8], strides = [1, 1]} : vector<2x32xf32> to vector<2x8xf32>
    %93 = arith.negf %92 : vector<2x8xf32>
    %94 = math.exp %93 : vector<2x8xf32>
    %cst_32 = arith.constant 1.000000e+00 : f32
    %95 = vector.broadcast %cst_32 : f32 to vector<2x8xf32>
    %96 = arith.addf %95, %94 : vector<2x8xf32>
    %97 = arith.divf %95, %96 : vector<2x8xf32>
    %98 = vector.extract_strided_slice %91 {offsets = [0, 8], sizes = [2, 8], strides = [1, 1]} : vector<2x32xf32> to vector<2x8xf32>
    %99 = arith.negf %98 : vector<2x8xf32>
    %100 = math.exp %99 : vector<2x8xf32>
    %cst_33 = arith.constant 1.000000e+00 : f32
    %101 = vector.broadcast %cst_33 : f32 to vector<2x8xf32>
    %102 = arith.addf %101, %100 : vector<2x8xf32>
    %103 = arith.divf %101, %102 : vector<2x8xf32>
    %104 = vector.extract_strided_slice %91 {offsets = [0, 16], sizes = [2, 8], strides = [1, 1]} : vector<2x32xf32> to vector<2x8xf32>
    %105 = math.tanh %104 : vector<2x8xf32>
    %106 = vector.extract_strided_slice %91 {offsets = [0, 24], sizes = [2, 8], strides = [1, 1]} : vector<2x32xf32> to vector<2x8xf32>
    %107 = arith.negf %106 : vector<2x8xf32>
    %108 = math.exp %107 : vector<2x8xf32>
    %cst_34 = arith.constant 1.000000e+00 : f32
    %109 = vector.broadcast %cst_34 : f32 to vector<2x8xf32>
    %110 = arith.addf %109, %108 : vector<2x8xf32>
    %111 = arith.divf %109, %110 : vector<2x8xf32>
    %112 = arith.mulf %103, %79 : vector<2x8xf32>
    %113 = arith.mulf %97, %105 : vector<2x8xf32>
    %114 = arith.addf %112, %113 : vector<2x8xf32>
    %115 = math.tanh %114 : vector<2x8xf32>
    %116 = arith.mulf %111, %115 : vector<2x8xf32>
    %c3_i32 = arith.constant 3 : i32
    %c0_i32_35 = arith.constant 0 : i32
    %117 = arith.addi %c0_i32_35, %c3_i32 : i32
    %118 = arith.index_cast %117 : i32 to index
    %c0_36 = arith.constant 0 : index
    %119 = vector.load %arg6[%118, %c0_36] : memref<32x32xf32, #tpu.memory_space<vmem>>, vector<1x32xf32>
    %c16_i32_37 = arith.constant 16 : i32
    %120 = arith.addi %c16_i32_37, %c3_i32 : i32
    %121 = arith.index_cast %120 : i32 to index
    %c0_38 = arith.constant 0 : index
    %122 = vector.load %arg6[%121, %c0_38] : memref<32x32xf32, #tpu.memory_space<vmem>>, vector<1x32xf32>
    %123 = tpu.concatenate %119, %122 in 0 : vector<1x32xf32>, vector<1x32xf32> -> vector<2x32xf32>
    %124 = arith.truncf %116 : vector<2x8xf32> to vector<2x8xbf16>
    %cst_39 = arith.constant dense<0.000000e+00> : vector<2x32xf32>
    %125 = tpu.matmul %124, %9, %cst_39 {dimension_numbers = #tpu.dot_dimension_numbers<[1], [0], [0], [1], [0, 0, 1, 1], [], []>} : vector<2x8xbf16>, vector<8x32xbf16>, vector<2x32xf32> -> vector<2x32xf32>
    %126 = arith.addf %123, %125 : vector<2x32xf32>
    %127 = vector.extract_strided_slice %126 {offsets = [0, 0], sizes = [2, 8], strides = [1, 1]} : vector<2x32xf32> to vector<2x8xf32>
    %128 = arith.negf %127 : vector<2x8xf32>
    %129 = math.exp %128 : vector<2x8xf32>
    %cst_40 = arith.constant 1.000000e+00 : f32
    %130 = vector.broadcast %cst_40 : f32 to vector<2x8xf32>
    %131 = arith.addf %130, %129 : vector<2x8xf32>
    %132 = arith.divf %130, %131 : vector<2x8xf32>
    %133 = vector.extract_strided_slice %126 {offsets = [0, 8], sizes = [2, 8], strides = [1, 1]} : vector<2x32xf32> to vector<2x8xf32>
    %134 = arith.negf %133 : vector<2x8xf32>
    %135 = math.exp %134 : vector<2x8xf32>
    %cst_41 = arith.constant 1.000000e+00 : f32
    %136 = vector.broadcast %cst_41 : f32 to vector<2x8xf32>
    %137 = arith.addf %136, %135 : vector<2x8xf32>
    %138 = arith.divf %136, %137 : vector<2x8xf32>
    %139 = vector.extract_strided_slice %126 {offsets = [0, 16], sizes = [2, 8], strides = [1, 1]} : vector<2x32xf32> to vector<2x8xf32>
    %140 = math.tanh %139 : vector<2x8xf32>
    %141 = vector.extract_strided_slice %126 {offsets = [0, 24], sizes = [2, 8], strides = [1, 1]} : vector<2x32xf32> to vector<2x8xf32>
    %142 = arith.negf %141 : vector<2x8xf32>
    %143 = math.exp %142 : vector<2x8xf32>
    %cst_42 = arith.constant 1.000000e+00 : f32
    %144 = vector.broadcast %cst_42 : f32 to vector<2x8xf32>
    %145 = arith.addf %144, %143 : vector<2x8xf32>
    %146 = arith.divf %144, %145 : vector<2x8xf32>
    %147 = arith.mulf %138, %114 : vector<2x8xf32>
    %148 = arith.mulf %132, %140 : vector<2x8xf32>
    %149 = arith.addf %147, %148 : vector<2x8xf32>
    %150 = math.tanh %149 : vector<2x8xf32>
    %151 = arith.mulf %146, %150 : vector<2x8xf32>
    %c4_i32 = arith.constant 4 : i32
    %c0_i32_43 = arith.constant 0 : i32
    %152 = arith.addi %c0_i32_43, %c4_i32 : i32
    %153 = arith.index_cast %152 : i32 to index
    %c0_44 = arith.constant 0 : index
    %154 = vector.load %arg6[%153, %c0_44] : memref<32x32xf32, #tpu.memory_space<vmem>>, vector<1x32xf32>
    %c16_i32_45 = arith.constant 16 : i32
    %155 = arith.addi %c16_i32_45, %c4_i32 : i32
    %156 = arith.index_cast %155 : i32 to index
    %c0_46 = arith.constant 0 : index
    %157 = vector.load %arg6[%156, %c0_46] : memref<32x32xf32, #tpu.memory_space<vmem>>, vector<1x32xf32>
    %158 = tpu.concatenate %154, %157 in 0 : vector<1x32xf32>, vector<1x32xf32> -> vector<2x32xf32>
    %159 = arith.truncf %151 : vector<2x8xf32> to vector<2x8xbf16>
    %cst_47 = arith.constant dense<0.000000e+00> : vector<2x32xf32>
    %160 = tpu.matmul %159, %9, %cst_47 {dimension_numbers = #tpu.dot_dimension_numbers<[1], [0], [0], [1], [0, 0, 1, 1], [], []>} : vector<2x8xbf16>, vector<8x32xbf16>, vector<2x32xf32> -> vector<2x32xf32>
    %161 = arith.addf %158, %160 : vector<2x32xf32>
    %162 = vector.extract_strided_slice %161 {offsets = [0, 0], sizes = [2, 8], strides = [1, 1]} : vector<2x32xf32> to vector<2x8xf32>
    %163 = arith.negf %162 : vector<2x8xf32>
    %164 = math.exp %163 : vector<2x8xf32>
    %cst_48 = arith.constant 1.000000e+00 : f32
    %165 = vector.broadcast %cst_48 : f32 to vector<2x8xf32>
    %166 = arith.addf %165, %164 : vector<2x8xf32>
    %167 = arith.divf %165, %166 : vector<2x8xf32>
    %168 = vector.extract_strided_slice %161 {offsets = [0, 8], sizes = [2, 8], strides = [1, 1]} : vector<2x32xf32> to vector<2x8xf32>
    %169 = arith.negf %168 : vector<2x8xf32>
    %170 = math.exp %169 : vector<2x8xf32>
    %cst_49 = arith.constant 1.000000e+00 : f32
    %171 = vector.broadcast %cst_49 : f32 to vector<2x8xf32>
    %172 = arith.addf %171, %170 : vector<2x8xf32>
    %173 = arith.divf %171, %172 : vector<2x8xf32>
    %174 = vector.extract_strided_slice %161 {offsets = [0, 16], sizes = [2, 8], strides = [1, 1]} : vector<2x32xf32> to vector<2x8xf32>
    %175 = math.tanh %174 : vector<2x8xf32>
    %176 = vector.extract_strided_slice %161 {offsets = [0, 24], sizes = [2, 8], strides = [1, 1]} : vector<2x32xf32> to vector<2x8xf32>
    %177 = arith.negf %176 : vector<2x8xf32>
    %178 = math.exp %177 : vector<2x8xf32>
    %cst_50 = arith.constant 1.000000e+00 : f32
    %179 = vector.broadcast %cst_50 : f32 to vector<2x8xf32>
    %180 = arith.addf %179, %178 : vector<2x8xf32>
    %181 = arith.divf %179, %180 : vector<2x8xf32>
    %182 = arith.mulf %173, %149 : vector<2x8xf32>
    %183 = arith.mulf %167, %175 : vector<2x8xf32>
    %184 = arith.addf %182, %183 : vector<2x8xf32>
    %185 = math.tanh %184 : vector<2x8xf32>
    %186 = arith.mulf %181, %185 : vector<2x8xf32>
    %c5_i32 = arith.constant 5 : i32
    %c0_i32_51 = arith.constant 0 : i32
    %187 = arith.addi %c0_i32_51, %c5_i32 : i32
    %188 = arith.index_cast %187 : i32 to index
    %c0_52 = arith.constant 0 : index
    %189 = vector.load %arg6[%188, %c0_52] : memref<32x32xf32, #tpu.memory_space<vmem>>, vector<1x32xf32>
    %c16_i32_53 = arith.constant 16 : i32
    %190 = arith.addi %c16_i32_53, %c5_i32 : i32
    %191 = arith.index_cast %190 : i32 to index
    %c0_54 = arith.constant 0 : index
    %192 = vector.load %arg6[%191, %c0_54] : memref<32x32xf32, #tpu.memory_space<vmem>>, vector<1x32xf32>
    %193 = tpu.concatenate %189, %192 in 0 : vector<1x32xf32>, vector<1x32xf32> -> vector<2x32xf32>
    %194 = arith.truncf %186 : vector<2x8xf32> to vector<2x8xbf16>
    %cst_55 = arith.constant dense<0.000000e+00> : vector<2x32xf32>
    %195 = tpu.matmul %194, %9, %cst_55 {dimension_numbers = #tpu.dot_dimension_numbers<[1], [0], [0], [1], [0, 0, 1, 1], [], []>} : vector<2x8xbf16>, vector<8x32xbf16>, vector<2x32xf32> -> vector<2x32xf32>
    %196 = arith.addf %193, %195 : vector<2x32xf32>
    %197 = vector.extract_strided_slice %196 {offsets = [0, 0], sizes = [2, 8], strides = [1, 1]} : vector<2x32xf32> to vector<2x8xf32>
    %198 = arith.negf %197 : vector<2x8xf32>
    %199 = math.exp %198 : vector<2x8xf32>
    %cst_56 = arith.constant 1.000000e+00 : f32
    %200 = vector.broadcast %cst_56 : f32 to vector<2x8xf32>
    %201 = arith.addf %200, %199 : vector<2x8xf32>
    %202 = arith.divf %200, %201 : vector<2x8xf32>
    %203 = vector.extract_strided_slice %196 {offsets = [0, 8], sizes = [2, 8], strides = [1, 1]} : vector<2x32xf32> to vector<2x8xf32>
    %204 = arith.negf %203 : vector<2x8xf32>
    %205 = math.exp %204 : vector<2x8xf32>
    %cst_57 = arith.constant 1.000000e+00 : f32
    %206 = vector.broadcast %cst_57 : f32 to vector<2x8xf32>
    %207 = arith.addf %206, %205 : vector<2x8xf32>
    %208 = arith.divf %206, %207 : vector<2x8xf32>
    %209 = vector.extract_strided_slice %196 {offsets = [0, 16], sizes = [2, 8], strides = [1, 1]} : vector<2x32xf32> to vector<2x8xf32>
    %210 = math.tanh %209 : vector<2x8xf32>
    %211 = vector.extract_strided_slice %196 {offsets = [0, 24], sizes = [2, 8], strides = [1, 1]} : vector<2x32xf32> to vector<2x8xf32>
    %212 = arith.negf %211 : vector<2x8xf32>
    %213 = math.exp %212 : vector<2x8xf32>
    %cst_58 = arith.constant 1.000000e+00 : f32
    %214 = vector.broadcast %cst_58 : f32 to vector<2x8xf32>
    %215 = arith.addf %214, %213 : vector<2x8xf32>
    %216 = arith.divf %214, %215 : vector<2x8xf32>
    %217 = arith.mulf %208, %184 : vector<2x8xf32>
    %218 = arith.mulf %202, %210 : vector<2x8xf32>
    %219 = arith.addf %217, %218 : vector<2x8xf32>
    %220 = math.tanh %219 : vector<2x8xf32>
    %221 = arith.mulf %216, %220 : vector<2x8xf32>
    %c6_i32 = arith.constant 6 : i32
    %c0_i32_59 = arith.constant 0 : i32
    %222 = arith.addi %c0_i32_59, %c6_i32 : i32
    %223 = arith.index_cast %222 : i32 to index
    %c0_60 = arith.constant 0 : index
    %224 = vector.load %arg6[%223, %c0_60] : memref<32x32xf32, #tpu.memory_space<vmem>>, vector<1x32xf32>
    %c16_i32_61 = arith.constant 16 : i32
    %225 = arith.addi %c16_i32_61, %c6_i32 : i32
    %226 = arith.index_cast %225 : i32 to index
    %c0_62 = arith.constant 0 : index
    %227 = vector.load %arg6[%226, %c0_62] : memref<32x32xf32, #tpu.memory_space<vmem>>, vector<1x32xf32>
    %228 = tpu.concatenate %224, %227 in 0 : vector<1x32xf32>, vector<1x32xf32> -> vector<2x32xf32>
    %229 = arith.truncf %221 : vector<2x8xf32> to vector<2x8xbf16>
    %cst_63 = arith.constant dense<0.000000e+00> : vector<2x32xf32>
    %230 = tpu.matmul %229, %9, %cst_63 {dimension_numbers = #tpu.dot_dimension_numbers<[1], [0], [0], [1], [0, 0, 1, 1], [], []>} : vector<2x8xbf16>, vector<8x32xbf16>, vector<2x32xf32> -> vector<2x32xf32>
    %231 = arith.addf %228, %230 : vector<2x32xf32>
    %232 = vector.extract_strided_slice %231 {offsets = [0, 0], sizes = [2, 8], strides = [1, 1]} : vector<2x32xf32> to vector<2x8xf32>
    %233 = arith.negf %232 : vector<2x8xf32>
    %234 = math.exp %233 : vector<2x8xf32>
    %cst_64 = arith.constant 1.000000e+00 : f32
    %235 = vector.broadcast %cst_64 : f32 to vector<2x8xf32>
    %236 = arith.addf %235, %234 : vector<2x8xf32>
    %237 = arith.divf %235, %236 : vector<2x8xf32>
    %238 = vector.extract_strided_slice %231 {offsets = [0, 8], sizes = [2, 8], strides = [1, 1]} : vector<2x32xf32> to vector<2x8xf32>
    %239 = arith.negf %238 : vector<2x8xf32>
    %240 = math.exp %239 : vector<2x8xf32>
    %cst_65 = arith.constant 1.000000e+00 : f32
    %241 = vector.broadcast %cst_65 : f32 to vector<2x8xf32>
    %242 = arith.addf %241, %240 : vector<2x8xf32>
    %243 = arith.divf %241, %242 : vector<2x8xf32>
    %244 = vector.extract_strided_slice %231 {offsets = [0, 16], sizes = [2, 8], strides = [1, 1]} : vector<2x32xf32> to vector<2x8xf32>
    %245 = math.tanh %244 : vector<2x8xf32>
    %246 = vector.extract_strided_slice %231 {offsets = [0, 24], sizes = [2, 8], strides = [1, 1]} : vector<2x32xf32> to vector<2x8xf32>
    %247 = arith.negf %246 : vector<2x8xf32>
    %248 = math.exp %247 : vector<2x8xf32>
    %cst_66 = arith.constant 1.000000e+00 : f32
    %249 = vector.broadcast %cst_66 : f32 to vector<2x8xf32>
    %250 = arith.addf %249, %248 : vector<2x8xf32>
    %251 = arith.divf %249, %250 : vector<2x8xf32>
    %252 = arith.mulf %243, %219 : vector<2x8xf32>
    %253 = arith.mulf %237, %245 : vector<2x8xf32>
    %254 = arith.addf %252, %253 : vector<2x8xf32>
    %255 = math.tanh %254 : vector<2x8xf32>
    %256 = arith.mulf %251, %255 : vector<2x8xf32>
    %c7_i32 = arith.constant 7 : i32
    %c0_i32_67 = arith.constant 0 : i32
    %257 = arith.addi %c0_i32_67, %c7_i32 : i32
    %258 = arith.index_cast %257 : i32 to index
    %c0_68 = arith.constant 0 : index
    %259 = vector.load %arg6[%258, %c0_68] : memref<32x32xf32, #tpu.memory_space<vmem>>, vector<1x32xf32>
    %c16_i32_69 = arith.constant 16 : i32
    %260 = arith.addi %c16_i32_69, %c7_i32 : i32
    %261 = arith.index_cast %260 : i32 to index
    %c0_70 = arith.constant 0 : index
    %262 = vector.load %arg6[%261, %c0_70] : memref<32x32xf32, #tpu.memory_space<vmem>>, vector<1x32xf32>
    %263 = tpu.concatenate %259, %262 in 0 : vector<1x32xf32>, vector<1x32xf32> -> vector<2x32xf32>
    %264 = arith.truncf %256 : vector<2x8xf32> to vector<2x8xbf16>
    %cst_71 = arith.constant dense<0.000000e+00> : vector<2x32xf32>
    %265 = tpu.matmul %264, %9, %cst_71 {dimension_numbers = #tpu.dot_dimension_numbers<[1], [0], [0], [1], [0, 0, 1, 1], [], []>} : vector<2x8xbf16>, vector<8x32xbf16>, vector<2x32xf32> -> vector<2x32xf32>
    %266 = arith.addf %263, %265 : vector<2x32xf32>
    %267 = vector.extract_strided_slice %266 {offsets = [0, 0], sizes = [2, 8], strides = [1, 1]} : vector<2x32xf32> to vector<2x8xf32>
    %268 = arith.negf %267 : vector<2x8xf32>
    %269 = math.exp %268 : vector<2x8xf32>
    %cst_72 = arith.constant 1.000000e+00 : f32
    %270 = vector.broadcast %cst_72 : f32 to vector<2x8xf32>
    %271 = arith.addf %270, %269 : vector<2x8xf32>
    %272 = arith.divf %270, %271 : vector<2x8xf32>
    %273 = vector.extract_strided_slice %266 {offsets = [0, 8], sizes = [2, 8], strides = [1, 1]} : vector<2x32xf32> to vector<2x8xf32>
    %274 = arith.negf %273 : vector<2x8xf32>
    %275 = math.exp %274 : vector<2x8xf32>
    %cst_73 = arith.constant 1.000000e+00 : f32
    %276 = vector.broadcast %cst_73 : f32 to vector<2x8xf32>
    %277 = arith.addf %276, %275 : vector<2x8xf32>
    %278 = arith.divf %276, %277 : vector<2x8xf32>
    %279 = vector.extract_strided_slice %266 {offsets = [0, 16], sizes = [2, 8], strides = [1, 1]} : vector<2x32xf32> to vector<2x8xf32>
    %280 = math.tanh %279 : vector<2x8xf32>
    %281 = vector.extract_strided_slice %266 {offsets = [0, 24], sizes = [2, 8], strides = [1, 1]} : vector<2x32xf32> to vector<2x8xf32>
    %282 = arith.negf %281 : vector<2x8xf32>
    %283 = math.exp %282 : vector<2x8xf32>
    %cst_74 = arith.constant 1.000000e+00 : f32
    %284 = vector.broadcast %cst_74 : f32 to vector<2x8xf32>
    %285 = arith.addf %284, %283 : vector<2x8xf32>
    %286 = arith.divf %284, %285 : vector<2x8xf32>
    %287 = arith.mulf %278, %254 : vector<2x8xf32>
    %288 = arith.mulf %272, %280 : vector<2x8xf32>
    %289 = arith.addf %287, %288 : vector<2x8xf32>
    %290 = math.tanh %289 : vector<2x8xf32>
    %291 = arith.mulf %286, %290 : vector<2x8xf32>
    %c8_i32 = arith.constant 8 : i32
    %c0_i32_75 = arith.constant 0 : i32
    %292 = arith.addi %c0_i32_75, %c8_i32 : i32
    %293 = arith.index_cast %292 : i32 to index
    %c0_76 = arith.constant 0 : index
    %294 = vector.load %arg6[%293, %c0_76] : memref<32x32xf32, #tpu.memory_space<vmem>>, vector<1x32xf32>
    %c16_i32_77 = arith.constant 16 : i32
    %295 = arith.addi %c16_i32_77, %c8_i32 : i32
    %296 = arith.index_cast %295 : i32 to index
    %c0_78 = arith.constant 0 : index
    %297 = vector.load %arg6[%296, %c0_78] : memref<32x32xf32, #tpu.memory_space<vmem>>, vector<1x32xf32>
    %298 = tpu.concatenate %294, %297 in 0 : vector<1x32xf32>, vector<1x32xf32> -> vector<2x32xf32>
    %299 = arith.truncf %291 : vector<2x8xf32> to vector<2x8xbf16>
    %cst_79 = arith.constant dense<0.000000e+00> : vector<2x32xf32>
    %300 = tpu.matmul %299, %9, %cst_79 {dimension_numbers = #tpu.dot_dimension_numbers<[1], [0], [0], [1], [0, 0, 1, 1], [], []>} : vector<2x8xbf16>, vector<8x32xbf16>, vector<2x32xf32> -> vector<2x32xf32>
    %301 = arith.addf %298, %300 : vector<2x32xf32>
    %302 = vector.extract_strided_slice %301 {offsets = [0, 0], sizes = [2, 8], strides = [1, 1]} : vector<2x32xf32> to vector<2x8xf32>
    %303 = arith.negf %302 : vector<2x8xf32>
    %304 = math.exp %303 : vector<2x8xf32>
    %cst_80 = arith.constant 1.000000e+00 : f32
    %305 = vector.broadcast %cst_80 : f32 to vector<2x8xf32>
    %306 = arith.addf %305, %304 : vector<2x8xf32>
    %307 = arith.divf %305, %306 : vector<2x8xf32>
    %308 = vector.extract_strided_slice %301 {offsets = [0, 8], sizes = [2, 8], strides = [1, 1]} : vector<2x32xf32> to vector<2x8xf32>
    %309 = arith.negf %308 : vector<2x8xf32>
    %310 = math.exp %309 : vector<2x8xf32>
    %cst_81 = arith.constant 1.000000e+00 : f32
    %311 = vector.broadcast %cst_81 : f32 to vector<2x8xf32>
    %312 = arith.addf %311, %310 : vector<2x8xf32>
    %313 = arith.divf %311, %312 : vector<2x8xf32>
    %314 = vector.extract_strided_slice %301 {offsets = [0, 16], sizes = [2, 8], strides = [1, 1]} : vector<2x32xf32> to vector<2x8xf32>
    %315 = math.tanh %314 : vector<2x8xf32>
    %316 = vector.extract_strided_slice %301 {offsets = [0, 24], sizes = [2, 8], strides = [1, 1]} : vector<2x32xf32> to vector<2x8xf32>
    %317 = arith.negf %316 : vector<2x8xf32>
    %318 = math.exp %317 : vector<2x8xf32>
    %cst_82 = arith.constant 1.000000e+00 : f32
    %319 = vector.broadcast %cst_82 : f32 to vector<2x8xf32>
    %320 = arith.addf %319, %318 : vector<2x8xf32>
    %321 = arith.divf %319, %320 : vector<2x8xf32>
    %322 = arith.mulf %313, %289 : vector<2x8xf32>
    %323 = arith.mulf %307, %315 : vector<2x8xf32>
    %324 = arith.addf %322, %323 : vector<2x8xf32>
    %325 = math.tanh %324 : vector<2x8xf32>
    %326 = arith.mulf %321, %325 : vector<2x8xf32>
    %c9_i32 = arith.constant 9 : i32
    %c0_i32_83 = arith.constant 0 : i32
    %327 = arith.addi %c0_i32_83, %c9_i32 : i32
    %328 = arith.index_cast %327 : i32 to index
    %c0_84 = arith.constant 0 : index
    %329 = vector.load %arg6[%328, %c0_84] : memref<32x32xf32, #tpu.memory_space<vmem>>, vector<1x32xf32>
    %c16_i32_85 = arith.constant 16 : i32
    %330 = arith.addi %c16_i32_85, %c9_i32 : i32
    %331 = arith.index_cast %330 : i32 to index
    %c0_86 = arith.constant 0 : index
    %332 = vector.load %arg6[%331, %c0_86] : memref<32x32xf32, #tpu.memory_space<vmem>>, vector<1x32xf32>
    %333 = tpu.concatenate %329, %332 in 0 : vector<1x32xf32>, vector<1x32xf32> -> vector<2x32xf32>
    %334 = arith.truncf %326 : vector<2x8xf32> to vector<2x8xbf16>
    %cst_87 = arith.constant dense<0.000000e+00> : vector<2x32xf32>
    %335 = tpu.matmul %334, %9, %cst_87 {dimension_numbers = #tpu.dot_dimension_numbers<[1], [0], [0], [1], [0, 0, 1, 1], [], []>} : vector<2x8xbf16>, vector<8x32xbf16>, vector<2x32xf32> -> vector<2x32xf32>
    %336 = arith.addf %333, %335 : vector<2x32xf32>
    %337 = vector.extract_strided_slice %336 {offsets = [0, 0], sizes = [2, 8], strides = [1, 1]} : vector<2x32xf32> to vector<2x8xf32>
    %338 = arith.negf %337 : vector<2x8xf32>
    %339 = math.exp %338 : vector<2x8xf32>
    %cst_88 = arith.constant 1.000000e+00 : f32
    %340 = vector.broadcast %cst_88 : f32 to vector<2x8xf32>
    %341 = arith.addf %340, %339 : vector<2x8xf32>
    %342 = arith.divf %340, %341 : vector<2x8xf32>
    %343 = vector.extract_strided_slice %336 {offsets = [0, 8], sizes = [2, 8], strides = [1, 1]} : vector<2x32xf32> to vector<2x8xf32>
    %344 = arith.negf %343 : vector<2x8xf32>
    %345 = math.exp %344 : vector<2x8xf32>
    %cst_89 = arith.constant 1.000000e+00 : f32
    %346 = vector.broadcast %cst_89 : f32 to vector<2x8xf32>
    %347 = arith.addf %346, %345 : vector<2x8xf32>
    %348 = arith.divf %346, %347 : vector<2x8xf32>
    %349 = vector.extract_strided_slice %336 {offsets = [0, 16], sizes = [2, 8], strides = [1, 1]} : vector<2x32xf32> to vector<2x8xf32>
    %350 = math.tanh %349 : vector<2x8xf32>
    %351 = vector.extract_strided_slice %336 {offsets = [0, 24], sizes = [2, 8], strides = [1, 1]} : vector<2x32xf32> to vector<2x8xf32>
    %352 = arith.negf %351 : vector<2x8xf32>
    %353 = math.exp %352 : vector<2x8xf32>
    %cst_90 = arith.constant 1.000000e+00 : f32
    %354 = vector.broadcast %cst_90 : f32 to vector<2x8xf32>
    %355 = arith.addf %354, %353 : vector<2x8xf32>
    %356 = arith.divf %354, %355 : vector<2x8xf32>
    %357 = arith.mulf %348, %324 : vector<2x8xf32>
    %358 = arith.mulf %342, %350 : vector<2x8xf32>
    %359 = arith.addf %357, %358 : vector<2x8xf32>
    %360 = math.tanh %359 : vector<2x8xf32>
    %361 = arith.mulf %356, %360 : vector<2x8xf32>
    %c10_i32 = arith.constant 10 : i32
    %c0_i32_91 = arith.constant 0 : i32
    %362 = arith.addi %c0_i32_91, %c10_i32 : i32
    %363 = arith.index_cast %362 : i32 to index
    %c0_92 = arith.constant 0 : index
    %364 = vector.load %arg6[%363, %c0_92] : memref<32x32xf32, #tpu.memory_space<vmem>>, vector<1x32xf32>
    %c16_i32_93 = arith.constant 16 : i32
    %365 = arith.addi %c16_i32_93, %c10_i32 : i32
    %366 = arith.index_cast %365 : i32 to index
    %c0_94 = arith.constant 0 : index
    %367 = vector.load %arg6[%366, %c0_94] : memref<32x32xf32, #tpu.memory_space<vmem>>, vector<1x32xf32>
    %368 = tpu.concatenate %364, %367 in 0 : vector<1x32xf32>, vector<1x32xf32> -> vector<2x32xf32>
    %369 = arith.truncf %361 : vector<2x8xf32> to vector<2x8xbf16>
    %cst_95 = arith.constant dense<0.000000e+00> : vector<2x32xf32>
    %370 = tpu.matmul %369, %9, %cst_95 {dimension_numbers = #tpu.dot_dimension_numbers<[1], [0], [0], [1], [0, 0, 1, 1], [], []>} : vector<2x8xbf16>, vector<8x32xbf16>, vector<2x32xf32> -> vector<2x32xf32>
    %371 = arith.addf %368, %370 : vector<2x32xf32>
    %372 = vector.extract_strided_slice %371 {offsets = [0, 0], sizes = [2, 8], strides = [1, 1]} : vector<2x32xf32> to vector<2x8xf32>
    %373 = arith.negf %372 : vector<2x8xf32>
    %374 = math.exp %373 : vector<2x8xf32>
    %cst_96 = arith.constant 1.000000e+00 : f32
    %375 = vector.broadcast %cst_96 : f32 to vector<2x8xf32>
    %376 = arith.addf %375, %374 : vector<2x8xf32>
    %377 = arith.divf %375, %376 : vector<2x8xf32>
    %378 = vector.extract_strided_slice %371 {offsets = [0, 8], sizes = [2, 8], strides = [1, 1]} : vector<2x32xf32> to vector<2x8xf32>
    %379 = arith.negf %378 : vector<2x8xf32>
    %380 = math.exp %379 : vector<2x8xf32>
    %cst_97 = arith.constant 1.000000e+00 : f32
    %381 = vector.broadcast %cst_97 : f32 to vector<2x8xf32>
    %382 = arith.addf %381, %380 : vector<2x8xf32>
    %383 = arith.divf %381, %382 : vector<2x8xf32>
    %384 = vector.extract_strided_slice %371 {offsets = [0, 16], sizes = [2, 8], strides = [1, 1]} : vector<2x32xf32> to vector<2x8xf32>
    %385 = math.tanh %384 : vector<2x8xf32>
    %386 = vector.extract_strided_slice %371 {offsets = [0, 24], sizes = [2, 8], strides = [1, 1]} : vector<2x32xf32> to vector<2x8xf32>
    %387 = arith.negf %386 : vector<2x8xf32>
    %388 = math.exp %387 : vector<2x8xf32>
    %cst_98 = arith.constant 1.000000e+00 : f32
    %389 = vector.broadcast %cst_98 : f32 to vector<2x8xf32>
    %390 = arith.addf %389, %388 : vector<2x8xf32>
    %391 = arith.divf %389, %390 : vector<2x8xf32>
    %392 = arith.mulf %383, %359 : vector<2x8xf32>
    %393 = arith.mulf %377, %385 : vector<2x8xf32>
    %394 = arith.addf %392, %393 : vector<2x8xf32>
    %395 = math.tanh %394 : vector<2x8xf32>
    %396 = arith.mulf %391, %395 : vector<2x8xf32>
    %c11_i32 = arith.constant 11 : i32
    %c0_i32_99 = arith.constant 0 : i32
    %397 = arith.addi %c0_i32_99, %c11_i32 : i32
    %398 = arith.index_cast %397 : i32 to index
    %c0_100 = arith.constant 0 : index
    %399 = vector.load %arg6[%398, %c0_100] : memref<32x32xf32, #tpu.memory_space<vmem>>, vector<1x32xf32>
    %c16_i32_101 = arith.constant 16 : i32
    %400 = arith.addi %c16_i32_101, %c11_i32 : i32
    %401 = arith.index_cast %400 : i32 to index
    %c0_102 = arith.constant 0 : index
    %402 = vector.load %arg6[%401, %c0_102] : memref<32x32xf32, #tpu.memory_space<vmem>>, vector<1x32xf32>
    %403 = tpu.concatenate %399, %402 in 0 : vector<1x32xf32>, vector<1x32xf32> -> vector<2x32xf32>
    %404 = arith.truncf %396 : vector<2x8xf32> to vector<2x8xbf16>
    %cst_103 = arith.constant dense<0.000000e+00> : vector<2x32xf32>
    %405 = tpu.matmul %404, %9, %cst_103 {dimension_numbers = #tpu.dot_dimension_numbers<[1], [0], [0], [1], [0, 0, 1, 1], [], []>} : vector<2x8xbf16>, vector<8x32xbf16>, vector<2x32xf32> -> vector<2x32xf32>
    %406 = arith.addf %403, %405 : vector<2x32xf32>
    %407 = vector.extract_strided_slice %406 {offsets = [0, 0], sizes = [2, 8], strides = [1, 1]} : vector<2x32xf32> to vector<2x8xf32>
    %408 = arith.negf %407 : vector<2x8xf32>
    %409 = math.exp %408 : vector<2x8xf32>
    %cst_104 = arith.constant 1.000000e+00 : f32
    %410 = vector.broadcast %cst_104 : f32 to vector<2x8xf32>
    %411 = arith.addf %410, %409 : vector<2x8xf32>
    %412 = arith.divf %410, %411 : vector<2x8xf32>
    %413 = vector.extract_strided_slice %406 {offsets = [0, 8], sizes = [2, 8], strides = [1, 1]} : vector<2x32xf32> to vector<2x8xf32>
    %414 = arith.negf %413 : vector<2x8xf32>
    %415 = math.exp %414 : vector<2x8xf32>
    %cst_105 = arith.constant 1.000000e+00 : f32
    %416 = vector.broadcast %cst_105 : f32 to vector<2x8xf32>
    %417 = arith.addf %416, %415 : vector<2x8xf32>
    %418 = arith.divf %416, %417 : vector<2x8xf32>
    %419 = vector.extract_strided_slice %406 {offsets = [0, 16], sizes = [2, 8], strides = [1, 1]} : vector<2x32xf32> to vector<2x8xf32>
    %420 = math.tanh %419 : vector<2x8xf32>
    %421 = vector.extract_strided_slice %406 {offsets = [0, 24], sizes = [2, 8], strides = [1, 1]} : vector<2x32xf32> to vector<2x8xf32>
    %422 = arith.negf %421 : vector<2x8xf32>
    %423 = math.exp %422 : vector<2x8xf32>
    %cst_106 = arith.constant 1.000000e+00 : f32
    %424 = vector.broadcast %cst_106 : f32 to vector<2x8xf32>
    %425 = arith.addf %424, %423 : vector<2x8xf32>
    %426 = arith.divf %424, %425 : vector<2x8xf32>
    %427 = arith.mulf %418, %394 : vector<2x8xf32>
    %428 = arith.mulf %412, %420 : vector<2x8xf32>
    %429 = arith.addf %427, %428 : vector<2x8xf32>
    %430 = math.tanh %429 : vector<2x8xf32>
    %431 = arith.mulf %426, %430 : vector<2x8xf32>
    %c12_i32 = arith.constant 12 : i32
    %c0_i32_107 = arith.constant 0 : i32
    %432 = arith.addi %c0_i32_107, %c12_i32 : i32
    %433 = arith.index_cast %432 : i32 to index
    %c0_108 = arith.constant 0 : index
    %434 = vector.load %arg6[%433, %c0_108] : memref<32x32xf32, #tpu.memory_space<vmem>>, vector<1x32xf32>
    %c16_i32_109 = arith.constant 16 : i32
    %435 = arith.addi %c16_i32_109, %c12_i32 : i32
    %436 = arith.index_cast %435 : i32 to index
    %c0_110 = arith.constant 0 : index
    %437 = vector.load %arg6[%436, %c0_110] : memref<32x32xf32, #tpu.memory_space<vmem>>, vector<1x32xf32>
    %438 = tpu.concatenate %434, %437 in 0 : vector<1x32xf32>, vector<1x32xf32> -> vector<2x32xf32>
    %439 = arith.truncf %431 : vector<2x8xf32> to vector<2x8xbf16>
    %cst_111 = arith.constant dense<0.000000e+00> : vector<2x32xf32>
    %440 = tpu.matmul %439, %9, %cst_111 {dimension_numbers = #tpu.dot_dimension_numbers<[1], [0], [0], [1], [0, 0, 1, 1], [], []>} : vector<2x8xbf16>, vector<8x32xbf16>, vector<2x32xf32> -> vector<2x32xf32>
    %441 = arith.addf %438, %440 : vector<2x32xf32>
    %442 = vector.extract_strided_slice %441 {offsets = [0, 0], sizes = [2, 8], strides = [1, 1]} : vector<2x32xf32> to vector<2x8xf32>
    %443 = arith.negf %442 : vector<2x8xf32>
    %444 = math.exp %443 : vector<2x8xf32>
    %cst_112 = arith.constant 1.000000e+00 : f32
    %445 = vector.broadcast %cst_112 : f32 to vector<2x8xf32>
    %446 = arith.addf %445, %444 : vector<2x8xf32>
    %447 = arith.divf %445, %446 : vector<2x8xf32>
    %448 = vector.extract_strided_slice %441 {offsets = [0, 8], sizes = [2, 8], strides = [1, 1]} : vector<2x32xf32> to vector<2x8xf32>
    %449 = arith.negf %448 : vector<2x8xf32>
    %450 = math.exp %449 : vector<2x8xf32>
    %cst_113 = arith.constant 1.000000e+00 : f32
    %451 = vector.broadcast %cst_113 : f32 to vector<2x8xf32>
    %452 = arith.addf %451, %450 : vector<2x8xf32>
    %453 = arith.divf %451, %452 : vector<2x8xf32>
    %454 = vector.extract_strided_slice %441 {offsets = [0, 16], sizes = [2, 8], strides = [1, 1]} : vector<2x32xf32> to vector<2x8xf32>
    %455 = math.tanh %454 : vector<2x8xf32>
    %456 = vector.extract_strided_slice %441 {offsets = [0, 24], sizes = [2, 8], strides = [1, 1]} : vector<2x32xf32> to vector<2x8xf32>
    %457 = arith.negf %456 : vector<2x8xf32>
    %458 = math.exp %457 : vector<2x8xf32>
    %cst_114 = arith.constant 1.000000e+00 : f32
    %459 = vector.broadcast %cst_114 : f32 to vector<2x8xf32>
    %460 = arith.addf %459, %458 : vector<2x8xf32>
    %461 = arith.divf %459, %460 : vector<2x8xf32>
    %462 = arith.mulf %453, %429 : vector<2x8xf32>
    %463 = arith.mulf %447, %455 : vector<2x8xf32>
    %464 = arith.addf %462, %463 : vector<2x8xf32>
    %465 = math.tanh %464 : vector<2x8xf32>
    %466 = arith.mulf %461, %465 : vector<2x8xf32>
    %c13_i32 = arith.constant 13 : i32
    %c0_i32_115 = arith.constant 0 : i32
    %467 = arith.addi %c0_i32_115, %c13_i32 : i32
    %468 = arith.index_cast %467 : i32 to index
    %c0_116 = arith.constant 0 : index
    %469 = vector.load %arg6[%468, %c0_116] : memref<32x32xf32, #tpu.memory_space<vmem>>, vector<1x32xf32>
    %c16_i32_117 = arith.constant 16 : i32
    %470 = arith.addi %c16_i32_117, %c13_i32 : i32
    %471 = arith.index_cast %470 : i32 to index
    %c0_118 = arith.constant 0 : index
    %472 = vector.load %arg6[%471, %c0_118] : memref<32x32xf32, #tpu.memory_space<vmem>>, vector<1x32xf32>
    %473 = tpu.concatenate %469, %472 in 0 : vector<1x32xf32>, vector<1x32xf32> -> vector<2x32xf32>
    %474 = arith.truncf %466 : vector<2x8xf32> to vector<2x8xbf16>
    %cst_119 = arith.constant dense<0.000000e+00> : vector<2x32xf32>
    %475 = tpu.matmul %474, %9, %cst_119 {dimension_numbers = #tpu.dot_dimension_numbers<[1], [0], [0], [1], [0, 0, 1, 1], [], []>} : vector<2x8xbf16>, vector<8x32xbf16>, vector<2x32xf32> -> vector<2x32xf32>
    %476 = arith.addf %473, %475 : vector<2x32xf32>
    %477 = vector.extract_strided_slice %476 {offsets = [0, 0], sizes = [2, 8], strides = [1, 1]} : vector<2x32xf32> to vector<2x8xf32>
    %478 = arith.negf %477 : vector<2x8xf32>
    %479 = math.exp %478 : vector<2x8xf32>
    %cst_120 = arith.constant 1.000000e+00 : f32
    %480 = vector.broadcast %cst_120 : f32 to vector<2x8xf32>
    %481 = arith.addf %480, %479 : vector<2x8xf32>
    %482 = arith.divf %480, %481 : vector<2x8xf32>
    %483 = vector.extract_strided_slice %476 {offsets = [0, 8], sizes = [2, 8], strides = [1, 1]} : vector<2x32xf32> to vector<2x8xf32>
    %484 = arith.negf %483 : vector<2x8xf32>
    %485 = math.exp %484 : vector<2x8xf32>
    %cst_121 = arith.constant 1.000000e+00 : f32
    %486 = vector.broadcast %cst_121 : f32 to vector<2x8xf32>
    %487 = arith.addf %486, %485 : vector<2x8xf32>
    %488 = arith.divf %486, %487 : vector<2x8xf32>
    %489 = vector.extract_strided_slice %476 {offsets = [0, 16], sizes = [2, 8], strides = [1, 1]} : vector<2x32xf32> to vector<2x8xf32>
    %490 = math.tanh %489 : vector<2x8xf32>
    %491 = vector.extract_strided_slice %476 {offsets = [0, 24], sizes = [2, 8], strides = [1, 1]} : vector<2x32xf32> to vector<2x8xf32>
    %492 = arith.negf %491 : vector<2x8xf32>
    %493 = math.exp %492 : vector<2x8xf32>
    %cst_122 = arith.constant 1.000000e+00 : f32
    %494 = vector.broadcast %cst_122 : f32 to vector<2x8xf32>
    %495 = arith.addf %494, %493 : vector<2x8xf32>
    %496 = arith.divf %494, %495 : vector<2x8xf32>
    %497 = arith.mulf %488, %464 : vector<2x8xf32>
    %498 = arith.mulf %482, %490 : vector<2x8xf32>
    %499 = arith.addf %497, %498 : vector<2x8xf32>
    %500 = math.tanh %499 : vector<2x8xf32>
    %501 = arith.mulf %496, %500 : vector<2x8xf32>
    %c14_i32 = arith.constant 14 : i32
    %c0_i32_123 = arith.constant 0 : i32
    %502 = arith.addi %c0_i32_123, %c14_i32 : i32
    %503 = arith.index_cast %502 : i32 to index
    %c0_124 = arith.constant 0 : index
    %504 = vector.load %arg6[%503, %c0_124] : memref<32x32xf32, #tpu.memory_space<vmem>>, vector<1x32xf32>
    %c16_i32_125 = arith.constant 16 : i32
    %505 = arith.addi %c16_i32_125, %c14_i32 : i32
    %506 = arith.index_cast %505 : i32 to index
    %c0_126 = arith.constant 0 : index
    %507 = vector.load %arg6[%506, %c0_126] : memref<32x32xf32, #tpu.memory_space<vmem>>, vector<1x32xf32>
    %508 = tpu.concatenate %504, %507 in 0 : vector<1x32xf32>, vector<1x32xf32> -> vector<2x32xf32>
    %509 = arith.truncf %501 : vector<2x8xf32> to vector<2x8xbf16>
    %cst_127 = arith.constant dense<0.000000e+00> : vector<2x32xf32>
    %510 = tpu.matmul %509, %9, %cst_127 {dimension_numbers = #tpu.dot_dimension_numbers<[1], [0], [0], [1], [0, 0, 1, 1], [], []>} : vector<2x8xbf16>, vector<8x32xbf16>, vector<2x32xf32> -> vector<2x32xf32>
    %511 = arith.addf %508, %510 : vector<2x32xf32>
    %512 = vector.extract_strided_slice %511 {offsets = [0, 0], sizes = [2, 8], strides = [1, 1]} : vector<2x32xf32> to vector<2x8xf32>
    %513 = arith.negf %512 : vector<2x8xf32>
    %514 = math.exp %513 : vector<2x8xf32>
    %cst_128 = arith.constant 1.000000e+00 : f32
    %515 = vector.broadcast %cst_128 : f32 to vector<2x8xf32>
    %516 = arith.addf %515, %514 : vector<2x8xf32>
    %517 = arith.divf %515, %516 : vector<2x8xf32>
    %518 = vector.extract_strided_slice %511 {offsets = [0, 8], sizes = [2, 8], strides = [1, 1]} : vector<2x32xf32> to vector<2x8xf32>
    %519 = arith.negf %518 : vector<2x8xf32>
    %520 = math.exp %519 : vector<2x8xf32>
    %cst_129 = arith.constant 1.000000e+00 : f32
    %521 = vector.broadcast %cst_129 : f32 to vector<2x8xf32>
    %522 = arith.addf %521, %520 : vector<2x8xf32>
    %523 = arith.divf %521, %522 : vector<2x8xf32>
    %524 = vector.extract_strided_slice %511 {offsets = [0, 16], sizes = [2, 8], strides = [1, 1]} : vector<2x32xf32> to vector<2x8xf32>
    %525 = math.tanh %524 : vector<2x8xf32>
    %526 = vector.extract_strided_slice %511 {offsets = [0, 24], sizes = [2, 8], strides = [1, 1]} : vector<2x32xf32> to vector<2x8xf32>
    %527 = arith.negf %526 : vector<2x8xf32>
    %528 = math.exp %527 : vector<2x8xf32>
    %cst_130 = arith.constant 1.000000e+00 : f32
    %529 = vector.broadcast %cst_130 : f32 to vector<2x8xf32>
    %530 = arith.addf %529, %528 : vector<2x8xf32>
    %531 = arith.divf %529, %530 : vector<2x8xf32>
    %532 = arith.mulf %523, %499 : vector<2x8xf32>
    %533 = arith.mulf %517, %525 : vector<2x8xf32>
    %534 = arith.addf %532, %533 : vector<2x8xf32>
    %535 = math.tanh %534 : vector<2x8xf32>
    %536 = arith.mulf %531, %535 : vector<2x8xf32>
    %c15_i32 = arith.constant 15 : i32
    %c0_i32_131 = arith.constant 0 : i32
    %537 = arith.addi %c0_i32_131, %c15_i32 : i32
    %538 = arith.index_cast %537 : i32 to index
    %c0_132 = arith.constant 0 : index
    %539 = vector.load %arg6[%538, %c0_132] : memref<32x32xf32, #tpu.memory_space<vmem>>, vector<1x32xf32>
    %c16_i32_133 = arith.constant 16 : i32
    %540 = arith.addi %c16_i32_133, %c15_i32 : i32
    %541 = arith.index_cast %540 : i32 to index
    %c0_134 = arith.constant 0 : index
    %542 = vector.load %arg6[%541, %c0_134] : memref<32x32xf32, #tpu.memory_space<vmem>>, vector<1x32xf32>
    %543 = tpu.concatenate %539, %542 in 0 : vector<1x32xf32>, vector<1x32xf32> -> vector<2x32xf32>
    %544 = arith.truncf %536 : vector<2x8xf32> to vector<2x8xbf16>
    %cst_135 = arith.constant dense<0.000000e+00> : vector<2x32xf32>
    %545 = tpu.matmul %544, %9, %cst_135 {dimension_numbers = #tpu.dot_dimension_numbers<[1], [0], [0], [1], [0, 0, 1, 1], [], []>} : vector<2x8xbf16>, vector<8x32xbf16>, vector<2x32xf32> -> vector<2x32xf32>
    %546 = arith.addf %543, %545 : vector<2x32xf32>
    %547 = vector.extract_strided_slice %546 {offsets = [0, 0], sizes = [2, 8], strides = [1, 1]} : vector<2x32xf32> to vector<2x8xf32>
    %548 = arith.negf %547 : vector<2x8xf32>
    %549 = math.exp %548 : vector<2x8xf32>
    %cst_136 = arith.constant 1.000000e+00 : f32
    %550 = vector.broadcast %cst_136 : f32 to vector<2x8xf32>
    %551 = arith.addf %550, %549 : vector<2x8xf32>
    %552 = arith.divf %550, %551 : vector<2x8xf32>
    %553 = vector.extract_strided_slice %546 {offsets = [0, 8], sizes = [2, 8], strides = [1, 1]} : vector<2x32xf32> to vector<2x8xf32>
    %554 = arith.negf %553 : vector<2x8xf32>
    %555 = math.exp %554 : vector<2x8xf32>
    %cst_137 = arith.constant 1.000000e+00 : f32
    %556 = vector.broadcast %cst_137 : f32 to vector<2x8xf32>
    %557 = arith.addf %556, %555 : vector<2x8xf32>
    %558 = arith.divf %556, %557 : vector<2x8xf32>
    %559 = vector.extract_strided_slice %546 {offsets = [0, 16], sizes = [2, 8], strides = [1, 1]} : vector<2x32xf32> to vector<2x8xf32>
    %560 = math.tanh %559 : vector<2x8xf32>
    %561 = vector.extract_strided_slice %546 {offsets = [0, 24], sizes = [2, 8], strides = [1, 1]} : vector<2x32xf32> to vector<2x8xf32>
    %562 = arith.negf %561 : vector<2x8xf32>
    %563 = math.exp %562 : vector<2x8xf32>
    %cst_138 = arith.constant 1.000000e+00 : f32
    %564 = vector.broadcast %cst_138 : f32 to vector<2x8xf32>
    %565 = arith.addf %564, %563 : vector<2x8xf32>
    %566 = arith.divf %564, %565 : vector<2x8xf32>
    %567 = arith.mulf %558, %534 : vector<2x8xf32>
    %568 = arith.mulf %552, %560 : vector<2x8xf32>
    %569 = arith.addf %567, %568 : vector<2x8xf32>
    %570 = math.tanh %569 : vector<2x8xf32>
    %571 = arith.mulf %566, %570 : vector<2x8xf32>
    %c16_i32_139 = arith.constant 16 : i32
    %c0_140 = arith.constant 0 : index
    %c0_141 = arith.constant 0 : index
    %572 = vector.load %arg5[%c0_140, %c0_141] : memref<2x8xf32, #tpu.memory_space<vmem>>, vector<2x8xf32>
    tpu.vector_store %arg5[%c0_140, %c0_141], %571 {strides = array<i32>} : memref<2x8xf32, #tpu.memory_space<vmem>>, vector<2x8xf32>,
    return
  }
  func.func @transform_0(%arg0: i32) -> (i32, i32, i32) {
    %c0_i32 = arith.constant 0 : i32
    %c0_i32_0 = arith.constant 0 : i32
    %c0_i32_1 = arith.constant 0 : i32
    %c0_i32_2 = arith.constant 0 : i32
    return %c0_i32, %c0_i32_0, %c0_i32_1 : i32, i32, i32
  }
  func.func @transform_1(%arg0: i32) -> (i32, i32) {
    %c0_i32 = arith.constant 0 : i32
    %c0_i32_0 = arith.constant 0 : i32
    %c0_i32_1 = arith.constant 0 : i32
    return %c0_i32, %c0_i32_0 : i32, i32
  }
  func.func @transform_2(%arg0: i32) -> (i32, i32) {
    %c0_i32 = arith.constant 0 : i32
    %c0_i32_0 = arith.constant 0 : i32
    %c0_i32_1 = arith.constant 0 : i32
    return %c0_i32, %c0_i32_0 : i32, i32
  }
  func.func @transform_3(%arg0: i32) -> (i32, i32) {
    %c0_i32 = arith.constant 0 : i32
    %c0_i32_0 = arith.constant 0 : i32
    %c0_i32_1 = arith.constant 0 : i32
    return %c0_i32, %c0_i32_0 : i32, i32
  }
  func.func @transform_4(%arg0: i32) -> (i32, i32) {
    %c0_i32 = arith.constant 0 : i32
    %c0_i32_0 = arith.constant 0 : i32
    %c0_i32_1 = arith.constant 0 : i32
    return %c0_i32, %c0_i32_0 : i32, i32
  }
}

module attributes {stable_mosaic.version = 11 : i64} {
  func.func @_attn_decoder_kernel(%arg0: i32, %arg1: memref<1x16x8xf32, #tpu.memory_space<vmem>>, %arg2: memref<8x12xbf16, #tpu.memory_space<vmem>>, %arg3: memref<12x8xf32, #tpu.memory_space<vmem>>, %arg4: memref<1x1x8xf32, #tpu.memory_space<vmem>>, %arg5: memref<16x8xbf16, #tpu.memory_space<vmem>>, %arg6: memref<1x8xf32, #tpu.memory_space<vmem>>, %arg7: memref<32x8xbf16, #tpu.memory_space<vmem>>, %arg8: memref<1x8xf32, #tpu.memory_space<vmem>>, %arg9: memref<128x16xbf16, #tpu.memory_space<vmem>>, %arg10: memref<1x16xf32, #tpu.memory_space<vmem>>, %arg11: memref<1x16x12xf32, #tpu.memory_space<vmem>>, %arg12: memref<1x16x16xf32, #tpu.memory_space<vmem>>) attributes {dimension_semantics = [#tpu.dimension_semantics<parallel>], iteration_bounds = array<i64: 2>, scalar_prefetch = 0 : i64, scratch_operands = 0 : i64, tpu.core_type = #tpu.core_type<tc>, window_params = [{transform_indices = @transform_0, window_bounds = array<i64: 1, 16, 8>}, {pipeline_mode = #tpu.pipeline_mode<synchronous>, transform_indices = @transform_1, window_bounds = array<i64: 8, 12>}, {pipeline_mode = #tpu.pipeline_mode<synchronous>, transform_indices = @transform_2, window_bounds = array<i64: 12, 8>}, {transform_indices = @transform_3, window_bounds = array<i64: 1, 1, 8>}, {pipeline_mode = #tpu.pipeline_mode<synchronous>, transform_indices = @transform_4, window_bounds = array<i64: 16, 8>}, {pipeline_mode = #tpu.pipeline_mode<synchronous>, transform_indices = @transform_5, window_bounds = array<i64: 1, 8>}, {pipeline_mode = #tpu.pipeline_mode<synchronous>, transform_indices = @transform_6, window_bounds = array<i64: 32, 8>}, {pipeline_mode = #tpu.pipeline_mode<synchronous>, transform_indices = @transform_7, window_bounds = array<i64: 1, 8>}, {pipeline_mode = #tpu.pipeline_mode<synchronous>, transform_indices = @transform_8, window_bounds = array<i64: 128, 16>}, {pipeline_mode = #tpu.pipeline_mode<synchronous>, transform_indices = @transform_9, window_bounds = array<i64: 1, 16>}, {transform_indices = @transform_10, window_bounds = array<i64: 1, 16, 12>}, {transform_indices = @transform_11, window_bounds = array<i64: 1, 16, 16>}]} {
    %c0 = arith.constant 0 : index
    %c0_0 = arith.constant 0 : index
    %c0_1 = arith.constant 0 : index
    %0 = vector.load %arg1[%c0, %c0_0, %c0_1] : memref<1x16x8xf32, #tpu.memory_space<vmem>>, vector<1x16x8xf32>
    %1 = vector.shape_cast %0 : vector<1x16x8xf32> to vector<16x8xf32>
    %2 = arith.truncf %1 : vector<16x8xf32> to vector<16x8xbf16>
    %c0_2 = arith.constant 0 : index
    %c0_3 = arith.constant 0 : index
    %3 = vector.load %arg2[%c0_2, %c0_3] : memref<8x12xbf16, #tpu.memory_space<vmem>>, vector<8x12xbf16>
    %cst = arith.constant dense<0.000000e+00> : vector<16x12xf32>
    %4 = tpu.matmul %2, %3, %cst {dimension_numbers = #tpu.dot_dimension_numbers<[1], [0], [0], [1], [0, 0, 1, 1], [], []>} : vector<16x8xbf16>, vector<8x12xbf16>, vector<16x12xf32> -> vector<16x12xf32>
    %cst_4 = arith.constant dense<0.000000e+00> : vector<16xf32>
    %5 = vector.multi_reduction <add>, %4, %cst_4 [1] : vector<16x12xf32> to vector<16xf32>
    %6 = vector.shape_cast %5 : vector<16xf32> to vector<16x1xf32>
    %7 = arith.mulf %4, %4 : vector<16x12xf32>
    %cst_5 = arith.constant dense<0.000000e+00> : vector<16xf32>
    %8 = vector.multi_reduction <add>, %7, %cst_5 [1] : vector<16x12xf32> to vector<16xf32>
    %9 = vector.shape_cast %8 : vector<16xf32> to vector<16x1xf32>
    %10 = arith.mulf %6, %6 : vector<16x1xf32>
    %cst_6 = arith.constant 0.0833333358 : f32
    %11 = vector.broadcast %cst_6 : f32 to vector<16x1xf32>
    %12 = arith.mulf %10, %11 : vector<16x1xf32>
    %13 = arith.subf %9, %12 : vector<16x1xf32>
    %cst_7 = arith.constant 0.000000e+00 : f32
    %14 = vector.broadcast %cst_7 : f32 to vector<16x1xf32>
    %15 = arith.maximumf %13, %14 : vector<16x1xf32>
    %cst_8 = arith.constant 0.0909090936 : f32
    %16 = vector.broadcast %cst_8 : f32 to vector<16x1xf32>
    %17 = arith.mulf %15, %16 : vector<16x1xf32>
    %18 = math.sqrt %17 : vector<16x1xf32>
    %cst_9 = arith.constant 9.99999974E-6 : f32
    %19 = vector.broadcast %cst_9 : f32 to vector<16x1xf32>
    %20 = arith.addf %18, %19 : vector<16x1xf32>
    %21 = tpu.reciprocal %20 {approx = true} : vector<16x1xf32> -> vector<16x1xf32>
    %22 = vector.broadcast %21 : vector<16x1xf32> to vector<16x12xf32>
    %23 = arith.mulf %4, %22 : vector<16x12xf32>
    %cst_10 = arith.constant dense<0xFF800000> : vector<16xf32>
    %24 = vector.multi_reduction <maximumf>, %23, %cst_10 [1] : vector<16x12xf32> to vector<16xf32>
    %25 = vector.shape_cast %24 : vector<16xf32> to vector<16x1xf32>
    %26 = vector.broadcast %25 : vector<16x1xf32> to vector<16x12xf32>
    %27 = arith.subf %23, %26 : vector<16x12xf32>
    %28 = math.exp %27 : vector<16x12xf32>
    %cst_11 = arith.constant dense<0.000000e+00> : vector<16xf32>
    %29 = vector.multi_reduction <add>, %28, %cst_11 [1] : vector<16x12xf32> to vector<16xf32>
    %30 = vector.shape_cast %29 : vector<16xf32> to vector<16x1xf32>
    %31 = vector.broadcast %30 : vector<16x1xf32> to vector<16x12xf32>
    %32 = arith.divf %28, %31 : vector<16x12xf32>
    %c0_12 = arith.constant 0 : index
    %c0_13 = arith.constant 0 : index
    %33 = vector.load %arg3[%c0_12, %c0_13] : memref<12x8xf32, #tpu.memory_space<vmem>>, vector<12x8xf32>
    %c0_14 = arith.constant 0 : index
    %c0_15 = arith.constant 0 : index
    %c0_16 = arith.constant 0 : index
    %34 = vector.load %arg4[%c0_14, %c0_15, %c0_16] : memref<1x1x8xf32, #tpu.memory_space<vmem>>, vector<1x1x8xf32>
    %35 = vector.shape_cast %34 : vector<1x1x8xf32> to vector<1x8xf32>
    %36 = vector.broadcast %35 : vector<1x8xf32> to vector<12x8xf32>
    %37 = arith.mulf %33, %36 : vector<12x8xf32>
    %38 = arith.truncf %37 : vector<12x8xf32> to vector<12x8xbf16>
    %39 = arith.truncf %32 : vector<16x12xf32> to vector<16x12xbf16>
    %cst_17 = arith.constant dense<0.000000e+00> : vector<16x8xf32>
    %40 = tpu.matmul %39, %38, %cst_17 {dimension_numbers = #tpu.dot_dimension_numbers<[1], [0], [0], [1], [0, 0, 1, 1], [], []>} : vector<16x12xbf16>, vector<12x8xbf16>, vector<16x8xf32> -> vector<16x8xf32>
    %c0_18 = arith.constant 0 : index
    %c0_19 = arith.constant 0 : index
    %41 = vector.load %arg5[%c0_18, %c0_19] : memref<16x8xbf16, #tpu.memory_space<vmem>>, vector<16x8xbf16>
    %c0_20 = arith.constant 0 : index
    %c0_21 = arith.constant 0 : index
    %42 = vector.load %arg6[%c0_20, %c0_21] : memref<1x8xf32, #tpu.memory_space<vmem>>, vector<1x8xf32>
    %43 = arith.truncf %40 : vector<16x8xf32> to vector<16x8xbf16>
    %44 = vector.extract_strided_slice %43 {offsets = [0, 0], sizes = [1, 8], strides = [1, 1]} : vector<16x8xbf16> to vector<1x8xbf16>
    %45 = vector.shape_cast %44 : vector<1x8xbf16> to vector<1x8xbf16>
    %46 = vector.broadcast %45 : vector<1x8xbf16> to vector<2x8xbf16>
    %47 = tpu.concatenate %46, %43 in 0 : vector<2x8xbf16>, vector<16x8xbf16> -> vector<18x8xbf16>
    %48 = vector.extract_strided_slice %47 {offsets = [0, 0], sizes = [16, 8], strides = [1, 1]} : vector<18x8xbf16> to vector<16x8xbf16>
    %49 = vector.extract_strided_slice %47 {offsets = [2, 0], sizes = [16, 8], strides = [1, 1]} : vector<18x8xbf16> to vector<16x8xbf16>
    %50 = tpu.concatenate %48, %49 in 1 : vector<16x8xbf16>, vector<16x8xbf16> -> vector<16x16xbf16>
    %cst_22 = arith.constant dense<0.000000e+00> : vector<16x8xf32>
    %51 = tpu.matmul %50, %41, %cst_22 {dimension_numbers = #tpu.dot_dimension_numbers<[1], [0], [0], [1], [0, 0, 1, 1], [], []>} : vector<16x16xbf16>, vector<16x8xbf16>, vector<16x8xf32> -> vector<16x8xf32>
    %52 = vector.broadcast %42 : vector<1x8xf32> to vector<16x8xf32>
    %53 = arith.addf %51, %52 : vector<16x8xf32>
    %cst_23 = arith.constant 0.000000e+00 : f32
    %54 = vector.broadcast %cst_23 : f32 to vector<16x8xf32>
    %55 = arith.maximumf %53, %54 : vector<16x8xf32>
    %c0_24 = arith.constant 0 : index
    %c0_25 = arith.constant 0 : index
    %56 = vector.load %arg7[%c0_24, %c0_25] : memref<32x8xbf16, #tpu.memory_space<vmem>>, vector<32x8xbf16>
    %c0_26 = arith.constant 0 : index
    %c0_27 = arith.constant 0 : index
    %57 = vector.load %arg8[%c0_26, %c0_27] : memref<1x8xf32, #tpu.memory_space<vmem>>, vector<1x8xf32>
    %58 = arith.truncf %55 : vector<16x8xf32> to vector<16x8xbf16>
    %59 = vector.extract_strided_slice %58 {offsets = [0, 0], sizes = [1, 8], strides = [1, 1]} : vector<16x8xbf16> to vector<1x8xbf16>
    %60 = vector.shape_cast %59 : vector<1x8xbf16> to vector<1x8xbf16>
    %61 = vector.broadcast %60 : vector<1x8xbf16> to vector<12x8xbf16>
    %62 = tpu.concatenate %61, %58 in 0 : vector<12x8xbf16>, vector<16x8xbf16> -> vector<28x8xbf16>
    %63 = vector.extract_strided_slice %62 {offsets = [0, 0], sizes = [16, 8], strides = [1, 1]} : vector<28x8xbf16> to vector<16x8xbf16>
    %64 = vector.extract_strided_slice %62 {offsets = [4, 0], sizes = [16, 8], strides = [1, 1]} : vector<28x8xbf16> to vector<16x8xbf16>
    %65 = vector.extract_strided_slice %62 {offsets = [8, 0], sizes = [16, 8], strides = [1, 1]} : vector<28x8xbf16> to vector<16x8xbf16>
    %66 = vector.extract_strided_slice %62 {offsets = [12, 0], sizes = [16, 8], strides = [1, 1]} : vector<28x8xbf16> to vector<16x8xbf16>
    %67 = tpu.concatenate %63, %64, %65, %66 in 1 : vector<16x8xbf16>, vector<16x8xbf16>, vector<16x8xbf16>, vector<16x8xbf16> -> vector<16x32xbf16>
    %cst_28 = arith.constant dense<0.000000e+00> : vector<16x8xf32>
    %68 = tpu.matmul %67, %56, %cst_28 {dimension_numbers = #tpu.dot_dimension_numbers<[1], [0], [0], [1], [0, 0, 1, 1], [], []>} : vector<16x32xbf16>, vector<32x8xbf16>, vector<16x8xf32> -> vector<16x8xf32>
    %69 = vector.broadcast %57 : vector<1x8xf32> to vector<16x8xf32>
    %70 = arith.addf %68, %69 : vector<16x8xf32>
    %cst_29 = arith.constant 0.000000e+00 : f32
    %71 = vector.broadcast %cst_29 : f32 to vector<16x8xf32>
    %72 = arith.maximumf %70, %71 : vector<16x8xf32>
    %73 = tpu.concatenate %72, %40 in 1 : vector<16x8xf32>, vector<16x8xf32> -> vector<16x16xf32>
    %74 = arith.truncf %73 : vector<16x16xf32> to vector<16x16xbf16>
    %75 = vector.extract_strided_slice %74 {offsets = [0, 0], sizes = [1, 16], strides = [1, 1]} : vector<16x16xbf16> to vector<1x16xbf16>
    %76 = vector.shape_cast %75 : vector<1x16xbf16> to vector<1x16xbf16>
    %77 = vector.broadcast %76 : vector<1x16xbf16> to vector<56x16xbf16>
    %78 = tpu.concatenate %77, %74 in 0 : vector<56x16xbf16>, vector<16x16xbf16> -> vector<72x16xbf16>
    %79 = vector.extract_strided_slice %78 {offsets = [0, 0], sizes = [16, 16], strides = [1, 1]} : vector<72x16xbf16> to vector<16x16xbf16>
    %80 = vector.extract_strided_slice %78 {offsets = [8, 0], sizes = [16, 16], strides = [1, 1]} : vector<72x16xbf16> to vector<16x16xbf16>
    %81 = vector.extract_strided_slice %78 {offsets = [16, 0], sizes = [16, 16], strides = [1, 1]} : vector<72x16xbf16> to vector<16x16xbf16>
    %82 = vector.extract_strided_slice %78 {offsets = [24, 0], sizes = [16, 16], strides = [1, 1]} : vector<72x16xbf16> to vector<16x16xbf16>
    %83 = vector.extract_strided_slice %78 {offsets = [32, 0], sizes = [16, 16], strides = [1, 1]} : vector<72x16xbf16> to vector<16x16xbf16>
    %84 = vector.extract_strided_slice %78 {offsets = [40, 0], sizes = [16, 16], strides = [1, 1]} : vector<72x16xbf16> to vector<16x16xbf16>
    %85 = vector.extract_strided_slice %78 {offsets = [48, 0], sizes = [16, 16], strides = [1, 1]} : vector<72x16xbf16> to vector<16x16xbf16>
    %86 = vector.extract_strided_slice %78 {offsets = [56, 0], sizes = [16, 16], strides = [1, 1]} : vector<72x16xbf16> to vector<16x16xbf16>
    %87 = tpu.concatenate %79, %80, %81, %82, %83, %84, %85, %86 in 1 : vector<16x16xbf16>, vector<16x16xbf16>, vector<16x16xbf16>, vector<16x16xbf16>, vector<16x16xbf16>, vector<16x16xbf16>, vector<16x16xbf16>, vector<16x16xbf16> -> vector<16x128xbf16>
    %c0_30 = arith.constant 0 : index
    %c0_31 = arith.constant 0 : index
    %88 = vector.load %arg9[%c0_30, %c0_31] : memref<128x16xbf16, #tpu.memory_space<vmem>>, vector<128x16xbf16>
    %cst_32 = arith.constant dense<0.000000e+00> : vector<16x16xf32>
    %89 = tpu.matmul %87, %88, %cst_32 {dimension_numbers = #tpu.dot_dimension_numbers<[1], [0], [0], [1], [0, 0, 1, 1], [], []>} : vector<16x128xbf16>, vector<128x16xbf16>, vector<16x16xf32> -> vector<16x16xf32>
    %c0_33 = arith.constant 0 : index
    %c0_34 = arith.constant 0 : index
    %90 = vector.load %arg10[%c0_33, %c0_34] : memref<1x16xf32, #tpu.memory_space<vmem>>, vector<1x16xf32>
    %91 = vector.broadcast %90 : vector<1x16xf32> to vector<16x16xf32>
    %92 = arith.addf %89, %91 : vector<16x16xf32>
    %c0_35 = arith.constant 0 : index
    %c0_36 = arith.constant 0 : index
    %c0_37 = arith.constant 0 : index
    %93 = vector.load %arg12[%c0_35, %c0_36, %c0_37] : memref<1x16x16xf32, #tpu.memory_space<vmem>>, vector<1x16x16xf32>
    %94 = vector.shape_cast %93 : vector<1x16x16xf32> to vector<16x16xf32>
    %95 = vector.shape_cast %92 : vector<16x16xf32> to vector<1x16x16xf32>
    tpu.vector_store %arg12[%c0_35, %c0_36, %c0_37], %95 {strides = array<i32>} : memref<1x16x16xf32, #tpu.memory_space<vmem>>, vector<1x16x16xf32>,
    %c0_38 = arith.constant 0 : index
    %c0_39 = arith.constant 0 : index
    %c0_40 = arith.constant 0 : index
    %96 = vector.load %arg11[%c0_38, %c0_39, %c0_40] : memref<1x16x12xf32, #tpu.memory_space<vmem>>, vector<1x16x12xf32>
    %97 = vector.shape_cast %96 : vector<1x16x12xf32> to vector<16x12xf32>
    %98 = vector.shape_cast %32 : vector<16x12xf32> to vector<1x16x12xf32>
    tpu.vector_store %arg11[%c0_38, %c0_39, %c0_40], %98 {strides = array<i32>} : memref<1x16x12xf32, #tpu.memory_space<vmem>>, vector<1x16x12xf32>,
    return
  }
  func.func @transform_0(%arg0: i32) -> (i32, i32, i32) {
    %c0_i32 = arith.constant 0 : i32
    %c0_i32_0 = arith.constant 0 : i32
    %c0_i32_1 = arith.constant 0 : i32
    return %arg0, %c0_i32, %c0_i32_0 : i32, i32, i32
  }
  func.func @transform_1(%arg0: i32) -> (i32, i32) {
    %c0_i32 = arith.constant 0 : i32
    %c0_i32_0 = arith.constant 0 : i32
    %c0_i32_1 = arith.constant 0 : i32
    return %c0_i32, %c0_i32_0 : i32, i32
  }
  func.func @transform_2(%arg0: i32) -> (i32, i32) {
    %c0_i32 = arith.constant 0 : i32
    %c0_i32_0 = arith.constant 0 : i32
    %c0_i32_1 = arith.constant 0 : i32
    return %c0_i32, %c0_i32_0 : i32, i32
  }
  func.func @transform_3(%arg0: i32) -> (i32, i32, i32) {
    %c0_i32 = arith.constant 0 : i32
    %c0_i32_0 = arith.constant 0 : i32
    %c0_i32_1 = arith.constant 0 : i32
    return %arg0, %c0_i32, %c0_i32_0 : i32, i32, i32
  }
  func.func @transform_4(%arg0: i32) -> (i32, i32) {
    %c0_i32 = arith.constant 0 : i32
    %c0_i32_0 = arith.constant 0 : i32
    %c0_i32_1 = arith.constant 0 : i32
    return %c0_i32, %c0_i32_0 : i32, i32
  }
  func.func @transform_5(%arg0: i32) -> (i32, i32) {
    %c0_i32 = arith.constant 0 : i32
    %c0_i32_0 = arith.constant 0 : i32
    %c0_i32_1 = arith.constant 0 : i32
    return %c0_i32, %c0_i32_0 : i32, i32
  }
  func.func @transform_6(%arg0: i32) -> (i32, i32) {
    %c0_i32 = arith.constant 0 : i32
    %c0_i32_0 = arith.constant 0 : i32
    %c0_i32_1 = arith.constant 0 : i32
    return %c0_i32, %c0_i32_0 : i32, i32
  }
  func.func @transform_7(%arg0: i32) -> (i32, i32) {
    %c0_i32 = arith.constant 0 : i32
    %c0_i32_0 = arith.constant 0 : i32
    %c0_i32_1 = arith.constant 0 : i32
    return %c0_i32, %c0_i32_0 : i32, i32
  }
  func.func @transform_8(%arg0: i32) -> (i32, i32) {
    %c0_i32 = arith.constant 0 : i32
    %c0_i32_0 = arith.constant 0 : i32
    %c0_i32_1 = arith.constant 0 : i32
    return %c0_i32, %c0_i32_0 : i32, i32
  }
  func.func @transform_9(%arg0: i32) -> (i32, i32) {
    %c0_i32 = arith.constant 0 : i32
    %c0_i32_0 = arith.constant 0 : i32
    %c0_i32_1 = arith.constant 0 : i32
    return %c0_i32, %c0_i32_0 : i32, i32
  }
  func.func @transform_10(%arg0: i32) -> (i32, i32, i32) {
    %c0_i32 = arith.constant 0 : i32
    %c0_i32_0 = arith.constant 0 : i32
    %c0_i32_1 = arith.constant 0 : i32
    return %arg0, %c0_i32, %c0_i32_0 : i32, i32, i32
  }
  func.func @transform_11(%arg0: i32) -> (i32, i32, i32) {
    %c0_i32 = arith.constant 0 : i32
    %c0_i32_0 = arith.constant 0 : i32
    %c0_i32_1 = arith.constant 0 : i32
    return %arg0, %c0_i32, %c0_i32_0 : i32, i32, i32
  }
}

</mosaic_0001>

<bundles_post_ra>
// kernel: speech_autoencoder_forward.3
= control target key start
LH: loop header
LB: loop body
LE: loop exit
PB: predicated region body
PF: predicated region fallthrough
CT: control target
= control target key end

     0   :  { %s1406_s30 = smov 0   ;;  %s1408_s10 = smov 0   ;;  %s1559_s0 = inlined_call_operand.vmem [shape: f32[2,2,16,16], index: 0, kind: input, shape index: {}]   ;;  %s1560_s1 = inlined_call_operand.vmem [shape: bf16[2,16,8], index: 1, kind: input, shape index: {}]   ;;  %s1561_s2 = inlined_call_operand.vmem [shape: f32[2,1,8], index: 2, kind: input, shape index: {}]   ;;  %s1562_s3 = inlined_call_operand.vmem [shape: bf16[2,64,8], index: 3, kind: input, shape index: {}]   ;;  %s1563_s4 = inlined_call_operand.vmem [shape: f32[2,1,8], index: 4, kind: input, shape index: {}]   ;;  %s1564_s5 = inlined_call_operand.vmem [shape: bf16[2,32,8], index: 5, kind: input, shape index: {}]   ;;  %s1565_s6 = inlined_call_operand.vmem [shape: f32[2,1,8], index: 6, kind: input, shape index: {}]   ;;  %s1566_s7 = inlined_call_operand.vmem [shape: bf16[2,80,8], index: 7, kind: input, shape index: {}]   ;;  %s1567_s8 = inlined_call_operand.vmem [shape: f32[2,1,8], index: 8, kind: input, shape index: {}]   ;;  %s1568_s9 = inlined_call_operand.vmem [shape: f32[2,2,16,8], index: 9, kind: output, shape index: {}]  }
   0x1   :  { %s1410_s11 = smov 0   ;;  %s1412_s12 = smov 0  }
   0x2   :  { %s1414_s13 = smov 0  }
   0x3 LB: > { %s28_s14 = sadd.s32 1, %s1337_s11  ;;  %s31_s15 = sadd.s32 1, %s1341_s12  ;;  %s1345_s13 = sphi %s1414_s13, %s19_s13   ;;  %s1341_s12 = sphi %s1412_s12, %s1572_s12   ;;  %s1337_s11 = sphi %s1410_s11, %s1571_s11   ;;  %s1333_s10 = sphi %s1408_s10, %s1570_s10   ;;  %s1329_s30 = sphi %s1406_s30, %s1569_s30  }
   0x4   : > { %p29_p0 = scmp.ge.s32.totalorder %s28_s14, 2  ;;  %p1150_p1 = scmp.ge.s32.totalorder %s1345_s13, 1 }
   0x5   : > { %p379_p2 = scmp.lt.s32.totalorder %s1345_s13, 5 }
   0x6   : > { %s1574_s14 = smov (%p29_p0, %s28_s14), 0  ;;  %s1576_s15 = smov (!%p29_p0, %s31_s15), %s1341_s12 }
   0x7   : > { %p380_p3 = pnand %p1150_p1, %p379_p2  ;;  %p33_p4 = scmp.ge.s32.totalorder %s1576_s15, 2 }
   0x8   : > { %p455_p5 = scmp.lt.s32.totalorder (!%p380_p3), %s1333_s10, 1  ;;  %p457_p6 = scmp.lt.s32.totalorder (!%p380_p3), %s1329_s30, 1 }
   0x9   : > { %s1578_s15 = smov (%p33_p4, %s1576_s15), 0  ;;  %383 = sbr.rel (%p380_p3) target bundleno = 1220 (0x4c4), region = 56 }
   0xa   : > { %s1349_s19 = smov (!%p380_p3), 16   ;;  %s1352_s24 = smov (!%p380_p3), 24  }
   0xb   : > { %s1353_s25 = smov (!%p380_p3), 40  }
   0xe   : > { %v1347_v0 = vmov 0.0   ;;  %vm1348_vm0 = vmmov 0   ;;  %s1580_s10 = smov (!%p455_p5, %s1333_s10), 1  ;;  %s1582_s30 = smov (!%p457_p6, %s1329_s30), 1  ;;  %vm524_vm1 = vcmask 130048   ;;  %v573_v6 = vlaneseq }
   0xf   : > { %1205 = vmatprep.subr.bf16.mxu0 %v1347_v0  ;;  %1207 = vmatprep.mubr.msk.bf16.mxu0 %vm1348_vm0, %v1347_v0  ;;  %s1186_s16 = sshll.u32 %s1580_s10, 3  ;;  %s1152_s17 = sshll.u32 %s1580_s10, 2  ;;  %vm588_vm2 = vcmask 1045504   ;;  %vm595_vm3 = vcmask 1043456   ;;  %vm619_vm4 = vcmask 64512   ;;  %vm624_vm5 = vcmask 195584  }
  0x10   : > { %1211 = vmatprep.subr.bf16.mxu1 %v1347_v0  ;;  %1219 = vmatprep.mubr.msk.bf16.mxu1 %vm1348_vm0, %v1347_v0  ;;  %s468_s20 = scalar_lea.vmem %s1560_s1, %s1186_s16  ;;  %s1151_s21 = sshll.u32 %s1582_s30, 1  ;;  %v1470_v11 = vshrl.u32 %v573_v6, 7  ;;  %vm627_vm6 = vcmask 261120   ;;  %vm630_vm7 = vcmask 326656   ;;  %vm633_vm8 = vcmask 392192  }
  0x11   : > { %v1295_v1 = vld [vmem:[%s468_s20] sm:$0xff]   ;;  %s1449_s22 = sadd.s32 %s1152_s17, %s1151_s21  ;;  %s1187_s27 = sshll.u32 %s1580_s10, 5  ;;  %vm636_vm9 = vcmask 457728   ;;  %vm678_vm10 = vcmask 523264   ;;  %vm746_vm11 = vcmask 1042432   ;;  %vm765_vm12 = vcmask 1041408  }
  0x12   : > { %s1153_s23 = sshll.u32 %s1449_s22, 3  ;;  %1206 = vmatpush3.bf16.msra.mxu0 %v1295_v1  ;;  %s476_s30 = scalar_lea.vmem %s1562_s3, %s1187_s27  ;;  %v575_v18 = vsub.s32 0, %v1470_v11  ;;  %v582_v21 = vsub.s32 7, %v1470_v11  ;;  %vm853_vm13 = vcmask 1040384   ;;  %vm854_vm14 = vsmask.f32 256 }
  0x13   : > { %s463_s26 = scalar_lea.vmem %s1559_s0, %s1153_s23  ;;  %1231 = vmatprep.subr.bf16.mxu0 %v1347_v0  ;;  %v1296_v5 = vld [vmem:[%s476_s30 + $0x18] sm:$0xff]   ;;  %s471_s18 = scalar_lea.vmem %s1561_s2, %s1580_s10  ;;  %v1297_v8 = vld [vmem:[%s476_s30 + $0x10] sm:$0xff]   ;;  %v1298_v15 = vld [vmem:[%s476_s30 + $0x8] sm:$0xff]  }
  0x14   : > { %v506_v2 = vld [vmem:[%s463_s26] sm:$0xff]  ;;  %v507_v3 = vld [vmem:[%s463_s26 + $0x8] sm:$0xff]  ;;  %1212 = vmatpush3.bf16.msra.mxu1 %v1296_v5  ;;  %s1350_s20 = smov 32   ;;  %s1351_s21 = smov 8   ;;  %vm855_vm15 = vmand %vm853_vm13, %vm854_vm14 }
  0x15   : > { %v508_v4 = vpack.c.bf16 %v507_v3, %v506_v2  ;;  %1213 = vmatprep.subr.bf16.mxu1 %v1347_v0  ;;  %v1164_v9 = vld [vmem:[%s471_s18] ss:$0 sm:$0xff]  ;;  %s1354_s26 = smov 48   ;;  %s1355_s27 = smov 56  }
  0x16   : > { %v1299_v22 = vld [vmem:[%s476_s30] sm:$0xff]   ;;  %s1188_s28 = sshll.u32 %s1580_s10, 4  ;;  %s487_s29 = scalar_lea.vmem %s1565_s6, %s1580_s10 }
  0x17   : > { %1208 = vmatmul.mubr.msk.bf16.vlgmr.msra.gmra.mxu0 %vm524_vm1, %v508_v4  ;;  %s484_s16 = scalar_lea.vmem %s1564_s5, %s1188_s28  ;;  %s495_s17 = scalar_lea.vmem %s1567_s8, %s1580_s10 }
  0x18   : > { %1241 = vmatprep.mubr.msk.bf16.mxu0 %vm1348_vm0, %v1347_v0  ;;  %1214 = vmatpush3.bf16.msra.mxu1 %v1297_v8  ;;  %v1300_v50 = vld [vmem:[%s484_s16 + $0x8] sm:$0xff]   ;;  %v1301_v60 = vld [vmem:[%s484_s16] sm:$0xff]  }
  0x19   : > { %1215 = vmatprep.subr.bf16.mxu1 %v1347_v0 }
  0x1c   : > { %1216 = vmatpush3.bf16.msra.mxu1 %v1298_v15 }
  0x1d   : > { %1217 = vmatprep.subr.bf16.mxu1 %v1347_v0 }
  0x20   : > { %1218 = vmatpush3.bf16.msra.mxu1 %v1299_v22 }
  0x21   : > { %1223 = vmatprep.subr.bf16.mxu1 %v1347_v0 }
  0xd7   : > { %v562_v7 = vpop.f32.mrf.mxu0 }
  0xd8   : > { %v563_v13 = vadd.f32 %v1164_v9, %v562_v7 }
  0xd9   : > { %v1209_v10 = vpop.f32.mrf.mxu0 }
  0xdb   : > { %v565_v12 = vpop.f32.mrf.mxu0 }
  0xdc   : > { %v566_v14 = vadd.f32 %v1164_v9, %v565_v12 }
  0xdd   : > { %v1210_v16 = vpop.f32.mrf.mxu0 }
  0xde   : > { %v569_v17 = vpack.c.bf16 %v566_v14, %v563_v13 }
  0xe0   : > { %v577_v19 = vshrl.u32 %v569_v17, 16  ;;  %v571_v20 = vpack.i.b16 %v569_v17, %v569_v17  ;;  %v586_v24 = vrot.slane %v569_v17, 2 }
  0xe2   : > { %v576_v23 = vrot.slane %v571_v20, %v575_v18  ;;  %v578_v25 = vpack.i.b16 %v577_v19, %v577_v19 }
  0xe4   : > { %v591_v26 = vsel %vm588_vm2, %v576_v23, %v586_v24  ;;  %v583_v27 = vrot.slane %v578_v25, %v582_v21  ;;  %v596_v28 = vrot.slane %v576_v23, 4 }
  0xe5   : > { %601 = vrot.lane.b32.xlu0 %v591_v26, %s1349_s19  ;;  %v597_v29 = vrot.slane %v591_v26, 4 }
  0xe6   : > { %v593_v30 = vsel %vm588_vm2, %v586_v24, %v583_v27  ;;  %v610_v33 = vrot.slane %v583_v27, 4 }
  0xe7   : > { %608 = vrot.lane.b32.xlu1 %v593_v30, %s1350_s20  ;;  %v604_v31 = vrot.slane %v593_v30, 4  ;;  %v598_v32 = vsel %vm595_vm3, %v596_v28, %v597_v29  ;;  %s479_s20 = scalar_lea.vmem %s1563_s4, %s1580_s10 }
  0xe8   : > { %v1167_v51 = vld [vmem:[%s479_s20] ss:$0 sm:$0xff] }
  0xe9   : > { %599 = vrot.lane.b32.xlu0 %v598_v32, %s1351_s21  ;;  %v605_v34 = vsel %vm595_vm3, %v597_v29, %v604_v31  ;;  %v611_v35 = vsel %vm595_vm3, %v604_v31, %v610_v33 }
  0xeb   : > { %606 = vrot.lane.b32.xlu1 %v605_v34, %s1352_s24 }
  0xed   : > { %612 = vrot.lane.b32.xlu0 %v611_v35, %s1353_s25  ;;  %s1245_s25 = smul.u32 40, %s1580_s10 }
  0xef   : > { %614 = vrot.lane.b32.xlu1 %v583_v27, %s1354_s26  ;;  %s492_s28 = scalar_lea.vmem %s1566_s7, %s1245_s25  ;;  %v1173_v27 = vld [vmem:[%s487_s29] ss:$0 sm:$0xff]  ;;  %s504_s25 = scalar_lea.vmem %s1568_s9, %s1153_s23 }
  0xf0   : > { %v1302_v22 = vld [vmem:[%s492_s28 + $0x20] sm:$0xff]   ;;  %v1304_v24 = vld [vmem:[%s492_s28 + $0x10] sm:$0xff]   ;;  %v1305_v25 = vld [vmem:[%s492_s28 + $0x8] sm:$0xff]  }
  0xf1   : > { %617 = vrot.lane.b32.xlu0 %v610_v33, %s1355_s27  ;;  %1232 = vmatpush3.bf16.msra.mxu0 %v1302_v22  ;;  %v1306_v26 = vld [vmem:[%s492_s28] sm:$0xff]  }
  0xf2   : > { %1233 = vmatprep.subr.bf16.mxu0 %v1347_v0 }
 0x157   : > { %v602_v36 = vpop.permute.xlu0 %601 }
 0x159   : > { %v609_v37 = vpop.permute.xlu1 %608 }
 0x15b   : > { %v600_v38 = vpop.permute.xlu0 %599 }
 0x15c   : > { %v621_v39 = vsel %vm619_vm4, %v576_v23, %v600_v38  ;;  %v1303_v23 = vld [vmem:[%s492_s28 + $0x18] sm:$0xff]  }
 0x15d   : > { %v607_v40 = vpop.permute.xlu1 %606  ;;  %v623_v41 = vsel %vm524_vm1, %v621_v39, %v602_v36  ;;  %1234 = vmatpush3.bf16.msra.mxu0 %v1303_v23 }
 0x15e   : > { %v626_v42 = vsel %vm624_vm5, %v623_v41, %v607_v40  ;;  %1235 = vmatprep.subr.bf16.mxu0 %v1347_v0 }
 0x15f   : > { %v629_v43 = vsel %vm627_vm6, %v626_v42, %v609_v37  ;;  %v613_v44 = vpop.permute.xlu0 %612 }
 0x160   : > { %v632_v45 = vsel %vm630_vm7, %v629_v43, %v613_v44 }
 0x161   : > { %v615_v46 = vpop.permute.xlu1 %614  ;;  %1236 = vmatpush3.bf16.msra.mxu0 %v1304_v24 }
 0x162   : > { %v635_v47 = vsel %vm633_vm8, %v632_v45, %v615_v46  ;;  %1237 = vmatprep.subr.bf16.mxu0 %v1347_v0 }
 0x163   : > { %v618_v48 = vpop.permute.xlu0 %617 }
 0x164   : > { %v638_v49 = vsel %vm636_vm9, %v635_v47, %v618_v48 }
 0x165   : > { %1220 = vmatmul.mubr.msk.bf16.vlgmr.msra.gmra.mxu1 %vm678_vm10, %v638_v49  ;;  %1238 = vmatpush3.bf16.msra.mxu0 %v1305_v25 }
 0x166   : > { %1227 = vmatprep.mubr.msk.bf16.mxu1 %vm1348_vm0, %v1347_v0  ;;  %1224 = vmatpush3.bf16.msra.mxu1 %v1300_v50  ;;  %vm860_vm0 = vcmask 1046528   ;;  %v1177_v50 = vld [vmem:[%s495_s17] ss:$0 sm:$0xff] }
 0x167   : > { %1225 = vmatprep.subr.bf16.mxu1 %v1347_v0  ;;  %1239 = vmatprep.subr.bf16.mxu0 %v1347_v0 }
 0x169   : > { %1240 = vmatpush3.bf16.msra.mxu0 %v1306_v26 }
 0x16a   : > { %1226 = vmatpush3.bf16.msra.mxu1 %v1301_v60 }
 0x225   : > { %v715_v52 = vpop.f32.mrf.mxu1 }
 0x226   : > { %v716_v54 = vadd.f32 %v1167_v51, %v715_v52 }
 0x227   : > { %v1221_v53 = vpop.f32.mrf.mxu1 }
 0x228   : > { %v722_v58 = vmax.f32 %v716_v54, 0.0 }
 0x229   : > { %v718_v55 = vpop.f32.mrf.mxu1 }
 0x22a   : > { %v719_v56 = vadd.f32 %v1167_v51, %v718_v55 }
 0x22b   : > { %v1222_v57 = vpop.f32.mrf.mxu1 }
 0x22c   : > { %v723_v59 = vmax.f32 %v719_v56, 0.0 }
 0x22e   : > { %v729_v61 = vpack.c.bf16 %v723_v59, %v722_v58 }
 0x230   : > { %v731_v62 = vpack.i.b16 %v729_v61, %v729_v61  ;;  %v737_v63 = vshrl.u32 %v729_v61, 16  ;;  %v745_v3 = vrot.slane %v729_v61, 5 }
 0x232   : > { %v736_v1 = vrot.slane %v731_v62, %v575_v18  ;;  %v738_v2 = vpack.i.b16 %v737_v63, %v737_v63 }
 0x234   : > { %v743_v4 = vrot.slane %v738_v2, %v582_v21  ;;  %v749_v5 = vsel %vm746_vm11, %v736_v1, %v745_v3 }
 0x235   : > { %v760_v7 = vrot.slane %v749_v5, 4  ;;  %v755_v9 = vrot.slane %v749_v5, 2  ;;  %v766_v15 = vrot.slane %v749_v5, 6 }
 0x236   : > { %v751_v6 = vsel %vm746_vm11, %v745_v3, %v743_v4 }
 0x237   : > { %v761_v8 = vrot.slane %v751_v6, 4  ;;  %v756_v10 = vrot.slane %v751_v6, 2  ;;  %v767_v14 = vrot.slane %v751_v6, 6 }
 0x239   : > { %v762_v12 = vsel %vm595_vm3, %v760_v7, %v761_v8  ;;  %v757_v13 = vsel %vm588_vm2, %v755_v9, %v756_v10  ;;  %v768_v11 = vsel %vm765_vm12, %v766_v15, %v767_v14  ;;  %vm921_vm2 = vcmask 654336  }
 0x23a   : > { %763 = vrot.lane.b32.xlu0 %v762_v12, %s1349_s19  ;;  %758 = vrot.lane.b32.xlu1 %v757_v13, %s1351_s21 }
 0x23e   : > { %769 = vrot.lane.b32.xlu1 %v768_v11, %s1352_s24 }
 0x242   : > { %870 = vrot.lane.b32.xlu1 %v638_v49, %s1349_s19 }
 0x2ac   : > { %v759_v16 = vpop.permute.xlu1 %758  ;;  %v764_v17 = vpop.permute.xlu0 %763 }
 0x2ad   : > { %v772_v18 = vsel %vm619_vm4, %v749_v5, %v759_v16 }
 0x2ae   : > { %v774_v19 = vsel %vm524_vm1, %v772_v18, %v764_v17 }
 0x2b0   : > { %v770_v20 = vpop.permute.xlu1 %769 }
 0x2b1   : > { %v776_v21 = vsel %vm624_vm5, %v774_v19, %v770_v20 }
 0x2b2   : > { %1228 = vmatmul.mubr.msk.bf16.vlgmr.msra.gmra.mxu1 %vm627_vm6, %v776_v21 }
 0x2b4   : > { %v871_v47 = vpop.permute.xlu1 %870 }
 0x372   : > { %v831_v28 = vpop.f32.mrf.mxu1 }
 0x373   : > { %v832_v30 = vadd.f32 %v1173_v27, %v831_v28 }
 0x374   : > { %v1229_v29 = vpop.f32.mrf.mxu1 }
 0x375   : > { %v838_v34 = vmax.f32 %v832_v30, 0.0 }
 0x376   : > { %v834_v31 = vpop.f32.mrf.mxu1 }
 0x377   : > { %v835_v32 = vadd.f32 %v1173_v27, %v834_v31 }
 0x378   : > { %v1230_v33 = vpop.f32.mrf.mxu1 }
 0x379   : > { %v839_v35 = vmax.f32 %v835_v32, 0.0 }
 0x37b   : > { %v840_v36 = vpack.c.bf16 %v839_v35, %v838_v34 }
 0x37d   : > { %v842_v37 = vshrl.u32 %v840_v36, 16  ;;  %v845_v0 = vshll.u32 %v840_v36, 16  ;;  %v851_v39 = vrot.slane %v840_v36, 7 }
 0x37f   : > { %v844_v38 = vrot.slane %v842_v37, 7 }
 0x381   : > { %v847_v40 = vor.u32 %v845_v0, %v844_v38  ;;  %v857_v41 = vsel %vm855_vm15, %v844_v38, %v851_v39 }
 0x382   : > { %v862_v44 = vrot.slane %v857_v41, 1 }
 0x383   : > { %v856_v42 = vsel %vm855_vm15, %v840_v36, %v847_v40 }
 0x384   : > { %v861_v43 = vrot.slane %v856_v42, 1 }
 0x386   : > { %v863_v45 = vsel %vm860_vm0, %v861_v43, %v862_v44 }
 0x387   : > { %864 = vrot.lane.b32.xlu0 %v863_v45, %s1351_s21 }
 0x3f9   : > { %v865_v46 = vpop.permute.xlu0 %864 }
 0x3fa   : > { %v868_v48 = vsel %vm619_vm4, %v856_v42, %v865_v46 }
 0x3fb   : > { %v873_v49 = vsel %vm524_vm1, %v868_v48, %v871_v47 }
 0x3fc   : > { %1242 = vmatmul.mubr.msk.bf16.vlgmr.msra.gmra.mxu0 %vm921_vm2, %v873_v49 }
 0x4bc   : > { %v958_v51 = vpop.f32.mrf.mxu0 }
 0x4bd   : > { %v959_v52 = vadd.f32 %v1177_v50, %v958_v51 }
 0x4be   : > { %v1243_v53 = vpop.f32.mrf.mxu0 }
 0x4bf   : > { %965 = vst.msk [vmem:[%s504_s25] sm:$0xff] %vm619_vm4, %v959_v52 }
 0x4c0   : > { %v961_v54 = vpop.f32.mrf.mxu0 }
 0x4c1   : > { %v962_v55 = vadd.f32 %v1177_v50, %v961_v54 }
 0x4c2   : > { %v1244_v56 = vpop.f32.mrf.mxu0 }
 0x4c3   : > { %966 = vst.msk [vmem:[%s504_s25 + $0x8] sm:$0xff] %vm619_vm4, %v962_v55 }
 0x4c4 PF: > { %s19_s13 = sadd.s32 1, %s1345_s13   ;;  %s1569_s30 = smov %s1337_s11 }
 0x4c5   : > { %p16_p7 = scmp.ge.s32.totalorder %s19_s13, 6   ;;  %s1570_s10 = smov %s1341_s12 }
 0x4c6   : > { %s1571_s11 = smov %s1574_s14  ;;  %s1572_s12 = smov %s1578_s15 }
 0x4c7   :  { %18 = sbr.rel (!%p16_p7) target bundleno = 3 (0x3), region = 110 }

// kernel: speech_autoencoder_forward.5
= control target key start
LH: loop header
LB: loop body
LE: loop exit
PB: predicated region body
PF: predicated region fallthrough
CT: control target
= control target key end

     0   :  { %s1635_s0 = inlined_call_operand.vmem [shape: f32[2,16,8], index: 0, kind: input, shape index: {}]   ;;  %s1636_s1 = inlined_call_operand.vmem [shape: bf16[8,12], index: 1, kind: input, shape index: {}]   ;;  %s1637_s2 = inlined_call_operand.vmem [shape: f32[12,8], index: 2, kind: input, shape index: {}]   ;;  %s1638_s3 = inlined_call_operand.vmem [shape: f32[2,1,8], index: 3, kind: input, shape index: {}]   ;;  %s1639_s4 = inlined_call_operand.vmem [shape: bf16[16,8], index: 4, kind: input, shape index: {}]   ;;  %s1640_s5 = inlined_call_operand.vmem [shape: f32[1,8], index: 5, kind: input, shape index: {}]   ;;  %s1641_s6 = inlined_call_operand.vmem [shape: bf16[32,8], index: 6, kind: input, shape index: {}]   ;;  %s1642_s7 = inlined_call_operand.vmem [shape: f32[1,8], index: 7, kind: input, shape index: {}]   ;;  %s1643_s8 = inlined_call_operand.vmem [shape: bf16[128,16], index: 8, kind: input, shape index: {}]   ;;  %s1644_s9 = inlined_call_operand.vmem [shape: f32[1,16], index: 9, kind: input, shape index: {}]   ;;  %s1645_s10 = inlined_call_operand.vmem [shape: f32[2,16,12], index: 10, kind: output, shape index: {0}]   ;;  %s1646_s11 = inlined_call_operand.hbm [shape: f32[2,16,16], index: 11, kind: output, shape index: {1}]  }
   0x1   :  { %1648 = sst [smem:[#allocation5_spill]] %s1635_s0 }
   0x2   :  { %17 = vsyncpa [#allocation3], 0 }
   0x3   :  { %19 = vsyncpa [#allocation3 + $0x1], 0  ;;  %s1403_s17 = smov 0   ;;  %s1405_s18 = smov 0  }
   0x4   :  { %s1407_s19 = smov 0   ;;  %s1409_s20 = smov 0  }
   0x5 LB: > { %s1424_s21 = sadd.s32 4294967295, %s1328_s20   ;;  %s1085_s22 = sadd.s32 4294967294, %s1328_s20   ;;  %s1328_s20 = sphi %s1409_s20, %s1656_s20   ;;  %s1324_s19 = sphi %s1407_s19, %s1655_s19   ;;  %s1320_s18 = sphi %s1405_s18, %s1654_s18   ;;  %s1316_s17 = sphi %s1403_s17, %s1653_s17  }
   0x6   : > { %s1428_s23 = sadd.s32 1, %s1328_s20   ;;  %s278_s24 = sadd.s32 1, %s1324_s19 }
   0x7   : > { %s275_s25 = ssub.s32 %s1328_s20, %s1428_s23  ;;  %p288_p0 = scmp.ne.s32.totalorder %s1324_s19, %s1320_s18 }
   0x8   : > { %p276_p1 = scmp.eq.s32.totalorder %s275_s25, 0  ;;  %p289_p2 = scmp.eq.s32.totalorder %s1424_s21, 1 }
   0x9   : > { %p294_p3 = scmp.ne.s32.totalorder %s1320_s18, %s1316_s17  ;;  %p295_p4 = scmp.eq.s32.totalorder %s1085_s22, 1 }
   0xa   : > { %s1439_s26 = scalar_select %p276_p1, %s1324_s19, %s278_s24  }
   0xb   : > { %p1441_p5 = por %p289_p2, %p288_p0  ;;  %p1445_p6 = por %p295_p4, %p294_p3 }
   0xc   : > { %p1088_p7 = scmp.ge.s32.totalorder %s1328_s20, 1  ;;  %p351_p8 = scmp.lt.s32.totalorder %s1328_s20, 3 }
   0xe   : > { %p352_p9 = pnand %p1088_p7, %p351_p8 }
   0xf   : > { %p399_p10 = scmp.lt.s32.totalorder (!%p352_p9), %s1424_s21, 1  ;;  %s1651_s0 = sld [smem:[#allocation5_spill]] (!%p352_p9) }
  0x10   : > { %355 = sbr.rel (%p352_p9) target bundleno = 1933 (0x78d), region = 60  ;;  %s1335_s30 = smov (!%p352_p9), 32  }
  0x11   : > { %s1336_s14 = smov (!%p352_p9), 64   ;;  %s1337_s15 = smov (!%p352_p9), 48  }
  0x12   : > { %s1339_s22 = smov (!%p352_p9), 80  }
  0x15   : > { %v416_v0 = vld [vmem:[%s1636_s1] sm:$0xf]  ;;  %vm421_vm0 = vcmask 1043456   ;;  %v1330_v1 = vmov 0.0   ;;  %vm1331_vm1 = vmmov 0   ;;  %s1460_s12 = scalar_select %p399_p10, %s1424_s21, 1 }
  0x16   : > { %1139 = vmatprep.subr.bf16.mxu1 %v1330_v1  ;;  %v423_v2 = vsel %vm421_vm0, %v416_v0, 0  ;;  %1141 = vmatprep.mubr.msk.bf16.mxu1 %vm1331_vm1, %v1330_v1  ;;  %vm417_vm2 = vcmask 64512   ;;  %vm466_vm3 = vcmask 97280   ;;  %v533_v58 = vld [vmem:[%s1637_s2] sm:$0xff]  ;;  %v534_v59 = vld [vmem:[%s1637_s2 + $0x8] sm:$0xf] }
  0x17   : > { %1140 = vmatpush3.bf16.msra.mxu1 %v423_v2  ;;  %1165 = vmatprep.subr.bf16.mxu0 %v1330_v1  ;;  %s1118_s13 = sshll.u32 %s1460_s12, 4  ;;  %s406_s25 = scalar_lea.vmem %s1638_s3, %s1460_s12  ;;  %vm549_vm8 = vcmask 1045504   ;;  %vm607_vm9 = vcmask 1040384   ;;  %vm612_vm10 = vcmask 1046528   ;;  %vm632_vm11 = vcmask 130048  }
  0x18   : > { %1145 = vmatprep.subr.bf16.mxu1 %v1330_v1  ;;  %1181 = vmatprep.mubr.msk.bf16.mxu0 %vm1331_vm1, %v1330_v1  ;;  %s403_s16 = scalar_lea.vmem %s1651_s0, %s1118_s13  ;;  %v1095_v60 = vld [vmem:[%s406_s25] ss:$0 sm:$0xff]  ;;  %s411_s24 = scalar_lea.vmem %s1645_s10, %s1118_s13  ;;  %vm709_vm12 = vcmask 1041408   ;;  %vm719_vm13 = vcmask 195584   ;;  %vm740_vm14 = vcmask 261120   ;;  %vm835_vm15 = vcmask 392192  }
  0x19   : > { %v413_v3 = vld [vmem:[%s403_s16] sm:$0xff]  ;;  %v414_v4 = vld [vmem:[%s403_s16 + $0x8] sm:$0xff]  ;;  %v542_v61 = vmul.f32 %v1095_v60, %v533_v58  ;;  %v543_v62 = vmul.f32 %v1095_v60, %v534_v59  ;;  %s1647_s12 = smov 8   ;;  %s1334_s25 = smov 24   ;;  %v1244_v59 = vld [vmem:[%s1643_s8 + $0x38] sm:$0xff]  }
  0x1a   : > { %v415_v5 = vpack.c.bf16 %v414_v4, %v413_v3  ;;  %1166 = vmatpush3.bf16.msra.mxu0 %v1244_v59  ;;  %v1245_v60 = vld [vmem:[%s1643_s8 + $0x30] sm:$0xff]   ;;  %s1338_s16 = smov 96  }
  0x1b   : > { %v544_v63 = vpack.c.bf16 %v543_v62, %v542_v61  ;;  %1167 = vmatprep.subr.bf16.mxu0 %v1330_v1  ;;  %v1246_v61 = vld [vmem:[%s1643_s8 + $0x28] sm:$0xff]   ;;  %v1247_v62 = vld [vmem:[%s1643_s8 + $0x20] sm:$0xff]  }
  0x1c   : > { %1142 = vmatmul.mubr.msk.bf16.vlgmr.msra.gmra.mxu1 %vm417_vm2, %v415_v5 }
  0x1d   : > { %1147 = vmatprep.mubr.msk.bf16.mxu1 %vm1331_vm1, %v1330_v1  ;;  %v551_v0 = vsel %vm549_vm8, %v544_v63, 0  ;;  %v1100_v63 = vld [vmem:[%s1642_s7] ss:$0 sm:$0xff] }
  0x1e   : > { %1146 = vmatpush3.bf16.msra.mxu1 %v551_v0  ;;  %1168 = vmatpush3.bf16.msra.mxu0 %v1245_v60 }
  0x1f   : > { %1151 = vmatprep.subr.bf16.mxu1 %v1330_v1  ;;  %1169 = vmatprep.subr.bf16.mxu0 %v1330_v1 }
  0x22   : > { %1170 = vmatpush3.bf16.msra.mxu0 %v1246_v61 }
  0x23   : > { %1171 = vmatprep.subr.bf16.mxu0 %v1330_v1 }
  0x26   : > { %1172 = vmatpush3.bf16.msra.mxu0 %v1247_v62 }
  0x27   : > { %1173 = vmatprep.subr.bf16.mxu0 %v1330_v1 }
  0xdc   : > { %v459_v6 = vpop.f32.mrf.mxu1 }
  0xdd   : > { %v467_v7 = vsel %vm466_vm3, %v459_v6, 0.0  ;;  %v473_v8 = vmul.f32 %v459_v6, %v459_v6 }
  0xde   : > { %468 = vadd.xlane.f32.xlu0 %v467_v7  ;;  %v1143_v9 = vpop.f32.mrf.mxu1 }
  0xdf   : > { %v475_v10 = vsel %vm466_vm3, %v473_v8, 0.0  ;;  %v1241_v9 = vld [vmem:[%s1639_s4] sm:$0xff]  }
  0xe0   : > { %476 = vadd.xlane.f32.xlu1 %v475_v10  ;;  %v462_v11 = vpop.f32.mrf.mxu1  ;;  %v601_v10 = vlaneseq }
  0xe1   : > { %v470_v12 = vsel %vm466_vm3, %v462_v11, 0.0  ;;  %v474_v13 = vmul.f32 %v462_v11, %v462_v11 }
  0xe2   : > { %471 = vadd.xlane.f32.xlu0 %v470_v12  ;;  %v1144_v14 = vpop.f32.mrf.mxu1  ;;  %v602_v12 = vshrl.u32 %v601_v10, 7  ;;  %v1249_v10 = vld [vmem:[%s1643_s8 + $0x10] sm:$0xff]  }
  0xe3   : > { %v478_v15 = vsel %vm466_vm3, %v474_v13, 0.0 }
  0xe4   : > { %479 = vadd.xlane.f32.xlu1 %v478_v15  ;;  %v1509_v15 = vsub.s32 0, %v602_v12 }
 0x167   : > { %v469_v16 = vpop.xlane.xlu0 %468 }
 0x168   : > { %v481_v17 = vmul.f32 %v469_v16, %v469_v16 }
 0x169   : > { %v477_v18 = vpop.xlane.xlu1 %476 }
 0x16a   : > { %v483_v19 = vmul.f32 0.083333336, %v481_v17 }
 0x16b   : > { %v472_v20 = vpop.xlane.xlu0 %471 }
 0x16c   : > { %v485_v21 = vsub.f32 %v477_v18, %v483_v19  ;;  %v482_v22 = vmul.f32 %v472_v20, %v472_v20 }
 0x16d   : > { %v480_v25 = vpop.xlane.xlu1 %479 }
 0x16e   : > { %v487_v23 = vmax.f32 %v485_v21, 0.0  ;;  %v484_v24 = vmul.f32 0.083333336, %v482_v22 }
 0x170   : > { %v489_v26 = vmul.f32 0.09090909, %v487_v23  ;;  %v486_v27 = vsub.f32 %v480_v25, %v484_v24 }
 0x172   : > { %1252 = vrsqrt.f32 %v489_v26  ;;  %v488_v28 = vmax.f32 %v486_v27, 0.0  ;;  %vm493_vm4 = vcmp.eq.f32.partialorder %v489_v26, inf  ;;  %v496_v32 = vand.u32 2147483648, %v489_v26 }
 0x173   : > { %vm495_vm5 = vcmp.eq.f32.partialorder %v489_v26, 0.0 }
 0x174   : > { %v490_v29 = vmul.f32 0.09090909, %v488_v28  ;;  %v1097_v28 = vld [vmem:[%s1640_s5] ss:$0 sm:$0xff] }
 0x176   : > { %1254 = vrsqrt.f32 %v490_v29  ;;  %vm500_vm6 = vcmp.eq.f32.partialorder %v490_v29, inf  ;;  %v503_v38 = vand.u32 2147483648, %v490_v29  ;;  %vm502_vm7 = vcmp.eq.f32.partialorder %v490_v29, 0.0 }
 0x17f   : > { %v1253_v30 = vpop.eup %1252 }
 0x180   : > { %v492_v31 = vmul.f32 %v1253_v30, %v489_v26 }
 0x182   : > { %v494_v33 = vsel %vm493_vm4, %v489_v26, %v492_v31 }
 0x183   : > { %v1255_v34 = vpop.eup %1254  ;;  %v497_v35 = vsel %vm495_vm5, %v496_v32, %v494_v33 }
 0x184   : > { %v499_v36 = vmul.f32 %v1255_v34, %v490_v29  ;;  %v505_v37 = vadd.f32 1e-05, %v497_v35  ;;  %v1242_v35 = vld [vmem:[%s1641_s6 + $0x8] sm:$0xff]  }
 0x186   : > { %1256 = vrcp.f32 %v505_v37  ;;  %v501_v39 = vsel %vm500_vm6, %v490_v29, %v499_v36 }
 0x187   : > { %v504_v40 = vsel %vm502_vm7, %v503_v38, %v501_v39  ;;  %v1243_v39 = vld [vmem:[%s1641_s6] sm:$0xff]  }
 0x188   : > { %v506_v41 = vadd.f32 1e-05, %v504_v40 }
 0x18a   : > { %1258 = vrcp.f32 %v506_v41 }
 0x193   : > { %v1257_v42 = vpop.eup %1256 }
 0x194   : > { %v509_v43 = vmul.f32 %v1257_v42, %v459_v6 }
 0x196   : > { %v511_v44 = vsel %vm466_vm3, %v509_v43, -inf }
 0x197   : > { %v1259_v45 = vpop.eup %1258  ;;  %512 = vmax.xlane.f32.xlu0 %v511_v44 }
 0x198   : > { %v510_v46 = vmul.f32 %v1259_v45, %v462_v11 }
 0x19a   : > { %v514_v47 = vsel %vm466_vm3, %v510_v46, -inf }
 0x19b   : > { %515 = vmax.xlane.f32.xlu1 %v514_v47 }
 0x220   : > { %v513_v48 = vpop.xlane.xlu0 %512 }
 0x221   : > { %v517_v49 = vsub.f32 %v509_v43, %v513_v48 }
 0x223   : > { %v519_v50 = vmul.f32 1.442695, %v517_v49 }
 0x224   : > { %v516_v51 = vpop.xlane.xlu1 %515 }
 0x225   : > { %1260 = vpow2.f32 %v519_v50  ;;  %v518_v52 = vsub.f32 %v510_v46, %v516_v51 }
 0x227   : > { %v521_v53 = vmul.f32 1.442695, %v518_v52 }
 0x229   : > { %1262 = vpow2.f32 %v521_v53 }
 0x232   : > { %v1261_v54 = vpop.eup %1260 }
 0x233   : > { %v523_v55 = vsel %vm466_vm3, %v1261_v54, 0.0 }
 0x234   : > { %524 = vadd.xlane.f32.xlu0 %v523_v55 }
 0x236   : > { %v1263_v56 = vpop.eup %1262 }
 0x237   : > { %v526_v57 = vsel %vm466_vm3, %v1263_v56, 0.0 }
 0x238   : > { %527 = vadd.xlane.f32.xlu1 %v526_v57 }
 0x2bd   : > { %v525_v2 = vpop.xlane.xlu0 %524 }
 0x2be   : > { %1264 = vrcp.f32 %v525_v2 }
 0x2c1   : > { %v528_v3 = vpop.xlane.xlu1 %527 }
 0x2c2   : > { %1266 = vrcp.f32 %v528_v3 }
 0x2cb   : > { %v1265_v4 = vpop.eup %1264 }
 0x2cc   : > { %v530_v5 = vmul.f32 %v1265_v4, %v1261_v54  ;;  %v1248_v4 = vld [vmem:[%s1643_s8 + $0x18] sm:$0xff]  }
 0x2cd   : > { %1174 = vmatpush3.bf16.msra.mxu0 %v1248_v4 }
 0x2ce   : > { %965 = vst.msk [vmem:[%s411_s24] sm:$0xff] %vm466_vm3, %v530_v5  ;;  %1175 = vmatprep.subr.bf16.mxu0 %v1330_v1 }
 0x2cf   : > { %v1267_v6 = vpop.eup %1266 }
 0x2d0   : > { %v532_v7 = vmul.f32 %v1267_v6, %v1263_v56 }
 0x2d1   : > { %1176 = vmatpush3.bf16.msra.mxu0 %v1249_v10 }
 0x2d2   : > { %v545_v8 = vpack.c.bf16 %v532_v7, %v530_v5  ;;  %966 = vst.msk [vmem:[%s411_s24 + $0x8] sm:$0xff] %vm466_vm3, %v532_v7  ;;  %s1333_s24 = smov 16   ;;  %1177 = vmatprep.subr.bf16.mxu0 %v1330_v1 }
 0x2d4   : > { %1148 = vmatmul.mubr.msk.bf16.vlgmr.msra.gmra.mxu1 %vm466_vm3, %v545_v8  ;;  %vm847_vm3 = vcmask 916480  }
 0x2d5   : > { %1153 = vmatprep.mubr.msk.bf16.mxu1 %vm1331_vm1, %v1330_v1  ;;  %1152 = vmatpush3.bf16.msra.mxu1 %v1241_v9 }
 0x2d6   : > { %1157 = vmatprep.subr.bf16.mxu1 %v1330_v1 }
 0x394   : > { %v587_v11 = vpop.f32.mrf.mxu1 }
 0x396   : > { %v1149_v13 = vpop.f32.mrf.mxu1 }
 0x398   : > { %v590_v14 = vpop.f32.mrf.mxu1 }
 0x399   : > { %v597_v16 = vpack.c.bf16 %v590_v14, %v587_v11  ;;  %v1236_v25 = vpack.i.bf16 %v590_v14, %v587_v11 }
 0x39a   : > { %v1150_v17 = vpop.f32.mrf.mxu1 }
 0x39b   : > { %v599_v18 = vpack.i.b16 %v597_v16, %v597_v16  ;;  %v606_v19 = vrot.slane %v597_v16, 7 }
 0x39d   : > { %v604_v20 = vrot.slane %v599_v18, %v1509_v15  ;;  %v614_v22 = vrot.slane %v606_v19, 1  ;;  %v1250_v18 = vld [vmem:[%s1643_s8 + $0x8] sm:$0xff]  }
 0x39e   : > { %1178 = vmatpush3.bf16.msra.mxu0 %v1250_v18 }
 0x39f   : > { %v610_v21 = vsel %vm607_vm9, %v604_v20, %v606_v19  ;;  %1179 = vmatprep.subr.bf16.mxu0 %v1330_v1  ;;  %v1251_v20 = vld [vmem:[%s1643_s8] sm:$0xff]  }
 0x3a0   : > { %v613_v23 = vrot.slane %v610_v21, 1 }
 0x3a2   : > { %v615_v24 = vsel %vm612_vm10, %v613_v23, %v614_v22  ;;  %1180 = vmatpush3.bf16.msra.mxu0 %v1251_v20 }
 0x3a3   : > { %616 = vrot.lane.b32.xlu0 %v615_v24, %s1647_s12 }
 0x3a7   : > { %1237 = vrot.lane.b32.xlu0 %v1236_v25, %s1647_s12 }
 0x415   : > { %v617_v26 = vpop.permute.xlu0 %616 }
 0x416   : > { %v619_v27 = vsel %vm417_vm2, %v610_v21, %v617_v26 }
 0x417   : > { %1154 = vmatmul.mubr.msk.bf16.vlgmr.msra.gmra.mxu1 %vm632_vm11, %v619_v27 }
 0x418   : > { %1161 = vmatprep.mubr.msk.bf16.mxu1 %vm1331_vm1, %v1330_v1  ;;  %1158 = vmatpush3.bf16.msra.mxu1 %v1242_v35  ;;  %vm838_vm1 = vcmask 523264  }
 0x419   : > { %1159 = vmatprep.subr.bf16.mxu1 %v1330_v1  ;;  %v1238_v5 = vpop.permute.xlu0 %1237 }
 0x41a   : > { %v1240_v11 = vunpack.i.h.bf16 %v1238_v5  ;;  %v1239_v12 = vunpack.i.l.bf16 %v1238_v5 }
 0x41c   : > { %1160 = vmatpush3.bf16.msra.mxu1 %v1243_v39 }
 0x4d7   : > { %v669_v29 = vpop.f32.mrf.mxu1 }
 0x4d8   : > { %v670_v31 = vadd.f32 %v1097_v28, %v669_v29 }
 0x4d9   : > { %v1155_v30 = vpop.f32.mrf.mxu1 }
 0x4da   : > { %v676_v36 = vmax.f32 %v670_v31, 0.0 }
 0x4db   : > { %v672_v32 = vpop.f32.mrf.mxu1 }
 0x4dc   : > { %v673_v33 = vadd.f32 %v1097_v28, %v672_v32 }
 0x4dd   : > { %v1156_v34 = vpop.f32.mrf.mxu1 }
 0x4de   : > { %v677_v37 = vmax.f32 %v673_v33, 0.0 }
 0x4e0   : > { %v683_v38 = vpack.c.bf16 %v677_v37, %v676_v36 }
 0x4e2   : > { %v685_v40 = vpack.i.b16 %v683_v38, %v683_v38  ;;  %v692_v41 = vrot.slane %v683_v38, 2 }
 0x4e4   : > { %v690_v42 = vrot.slane %v685_v40, %v1509_v15  ;;  %v699_v45 = vrot.slane %v692_v41, 2  ;;  %v705_v48 = vrot.slane %v692_v41, 4  ;;  %v711_v51 = vrot.slane %v692_v41, 6 }
 0x4e6   : > { %v695_v43 = vsel %vm549_vm8, %v690_v42, %v692_v41  ;;  %v1104_v41 = vld [vmem:[%s1644_s9] ss:$0 sm:$0xff] }
 0x4e7   : > { %v698_v44 = vrot.slane %v695_v43, 2  ;;  %v704_v47 = vrot.slane %v695_v43, 4  ;;  %v710_v50 = vrot.slane %v695_v43, 6 }
 0x4e9   : > { %v700_v46 = vsel %vm549_vm8, %v698_v44, %v699_v45  ;;  %v706_v49 = vsel %vm421_vm0, %v704_v47, %v705_v48  ;;  %v712_v52 = vsel %vm709_vm12, %v710_v50, %v711_v51 }
 0x4ea   : > { %701 = vrot.lane.b32.xlu1 %v700_v46, %s1647_s12 }
 0x4ee   : > { %707 = vrot.lane.b32.xlu1 %v706_v49, %s1333_s24 }
 0x4f2   : > { %713 = vrot.lane.b32.xlu1 %v712_v52, %s1334_s25  ;;  %s1340_s25 = smov 112  }
 0x55c   : > { %v702_v53 = vpop.permute.xlu1 %701 }
 0x55d   : > { %v716_v55 = vsel %vm417_vm2, %v695_v43, %v702_v53 }
 0x560   : > { %v708_v54 = vpop.permute.xlu1 %707 }
 0x561   : > { %v718_v56 = vsel %vm632_vm11, %v716_v55, %v708_v54 }
 0x564   : > { %v714_v57 = vpop.permute.xlu1 %713 }
 0x565   : > { %v721_v58 = vsel %vm719_vm13, %v718_v56, %v714_v57 }
 0x566   : > { %1162 = vmatmul.mubr.msk.bf16.vlgmr.msra.gmra.mxu1 %vm740_vm14, %v721_v58 }
 0x626   : > { %v777_v0 = vpop.f32.mrf.mxu1 }
 0x627   : > { %v778_v2 = vadd.f32 %v1100_v63, %v777_v0 }
 0x628   : > { %v1163_v3 = vpop.f32.mrf.mxu1 }
 0x629   : > { %v784_v7 = vmax.f32 %v778_v2, 0.0 }
 0x62a   : > { %v780_v6 = vpop.f32.mrf.mxu1 }
 0x62b   : > { %v781_v8 = vadd.f32 %v1100_v63, %v780_v6  ;;  %v794_v14 = vsel %vm417_vm2, %v784_v7, %v1239_v12 }
 0x62c   : > { %v1164_v9 = vpop.f32.mrf.mxu1 }
 0x62d   : > { %v785_v13 = vmax.f32 %v781_v8, 0.0 }
 0x62f   : > { %v795_v16 = vsel %vm417_vm2, %v785_v13, %v1240_v11  ;;  %vm841_vm2 = vcmask 654336  }
 0x630   : > { %v796_v17 = vpack.c.bf16 %v795_v16, %v794_v14 }
 0x632   : > { %v798_v19 = vpack.i.b16 %v796_v17, %v796_v17  ;;  %v806_v23 = vrot.slane %v796_v17, 4 }
 0x634   : > { %v803_v21 = vrot.slane %v798_v19, %v1509_v15  ;;  %v827_v15 = vrot.slane %v806_v23, 4 }
 0x636   : > { %814 = vrot.lane.b32.xlu0 %v803_v21, %s1335_s30  ;;  %v810_v22 = vrot.slane %v803_v21, 4  ;;  %v809_v24 = vsel %vm421_vm0, %v803_v21, %v806_v23  ;;  %s1341_s30 = smov [#allocation2]  }
 0x637   : > { %v821_v25 = vrot.slane %v809_v24, 4  ;;  %s1272_s12 = sshll.u32 %s1341_s30, 4  ;;  %s1273_s12 = int_to_ptr.vmem [resolvable:$false] %s1272_s12 }
 0x638   : > { %812 = vrot.lane.b32.xlu1 %v810_v22, %s1333_s24  ;;  %s396_s24 = sand.u32 1, %s1320_s18   ;;  %s1274_s0 = scalar_lea.vmem %s1273_s12, 512 }
 0x639   : > { %v822_v1 = vsel %vm421_vm0, %v810_v22, %v821_v25  ;;  %v828_v26 = vsel %vm421_vm0, %v821_v25, %v827_v15  ;;  %vm844_vm0 = vcmask 785408   ;;  %s1089_s29 = sshll.u32 %s396_s24, 4 }
 0x63a   : > { %818 = vrot.lane.b32.xlu0 %v803_v21, %s1336_s14  ;;  %s398_s14 = scalar_lea.vmem [#allocation2], %s1089_s29  ;;  %s1594_s29 = scalar_lea.sflag [#allocation3], %s396_s24 }
 0x63c   : > { %816 = vrot.lane.b32.xlu1 %v810_v22, %s1337_s15  ;;  %s989_s15 = sshll.u32 %s398_s14, 4  ;;  %s1586_s15 = int_to_ptr.vmem [resolvable:$true] %s989_s15 }
 0x63d   : > { %p1275_p0 = scmp.lt.s32.totalorder %s1586_s15, %s1273_s12 }
 0x63e   : > { %825 = vrot.lane.b32.xlu0 %v809_v24, %s1338_s16  ;;  %s1120_s16 = sshll.u32 %s1424_s21, 8  ;;  %s1268_s21 = scalar_lea.vmem %s1586_s15, 256 }
 0x63f   : > { %s1591_s13 = scalar_lea.hbm %s1646_s11, %s1120_s16  ;;  %p1269_p11 = scmp.ne.s32.totalorder %s1586_s15, %s1268_s21 }
 0x640   : > { %823 = vrot.lane.b32.xlu1 %v822_v1, %s1339_s22  ;;  %p1276_p1 = scmp.lt.s32.totalorder %s1274_s0, %s1268_s21 }
 0x641   : > { %p1270_p12 = pnand %p1269_p11, %p1441_p5 }
 0x642   : > { %p1277_p2 = por %p1276_p1, %p1275_p0 }
 0x643   : > { %p1271_p13 = pneg %p1270_p12 }
 0x644   : > { %829 = vrot.lane.b32.xlu1 %v828_v26, %s1340_s25 }
 0x645   : > { %p1278_p3 = pnand %p1277_p2, %p1271_p13 }
 0x6a8   : > { %v815_v27 = vpop.permute.xlu0 %814 }
 0x6aa   : > { %v813_v28 = vpop.permute.xlu1 %812 }
 0x6ab   : > { %v832_v29 = vsel %vm632_vm11, %v803_v21, %v813_v28 }
 0x6ac   : > { %v834_v30 = vsel %vm740_vm14, %v832_v29, %v815_v27  ;;  %v819_v32 = vpop.permute.xlu0 %818 }
 0x6ae   : > { %v817_v31 = vpop.permute.xlu1 %816 }
 0x6af   : > { %v837_v33 = vsel %vm835_vm15, %v834_v30, %v817_v31 }
 0x6b0   : > { %v840_v34 = vsel %vm838_vm1, %v837_v33, %v819_v32  ;;  %v826_v37 = vpop.permute.xlu0 %825 }
 0x6b2   : > { %v824_v35 = vpop.permute.xlu1 %823 }
 0x6b3   : > { %v843_v36 = vsel %vm841_vm2, %v840_v34, %v824_v35 }
 0x6b4   : > { %v846_v39 = vsel %vm844_vm0, %v843_v36, %v826_v37 }
 0x6b6   : > { %v830_v38 = vpop.permute.xlu1 %829 }
 0x6b7   : > { %v849_v40 = vsel %vm847_vm3, %v846_v39, %v830_v38 }
 0x6b8   : > { %1182 = vmatmul.mubr.bf16.vlgmr.msra.gmra.mxu0 %v849_v40 }
 0x778   : > { %v956_v42 = vpop.f32.mrf.mxu0 }
 0x779   : > { %v957_v43 = vadd.f32 %v1104_v41, %v956_v42 }
 0x77a   : > { %v1183_v44 = vpop.f32.mrf.mxu0 }
 0x77b   : > { %963 = vst.msk [vmem:[%s398_s14] sm:$0xff] %vm632_vm11, %v957_v43 }
 0x77c   : > { %v959_v45 = vpop.f32.mrf.mxu0 }
 0x77d   : > { %v960_v46 = vadd.f32 %v1104_v41, %v959_v45 }
 0x77e   : > { %v1184_v47 = vpop.f32.mrf.mxu0 }
 0x77f   : > { %964 = vst.msk [vmem:[%s398_s14 + $0x8] sm:$0xff] %vm632_vm11, %v960_v46 }
 0x780   : > { %1281 = shalt.err (!%p1278_p3)
}
 0x781   : > { %s1282_s24 = scalar_lea.hbm %s1591_s13, 256  ;;  %s1286_s22 = scalar_lea.hbm %s1646_s11, 512 }
 0x782   : > { %p1283_p4 = scmp.ne.s32.totalorder %s1591_s13, %s1282_s24  ;;  %p1287_p9 = scmp.lt.s32.totalorder %s1591_s13, %s1646_s11 }
 0x783   : > { %p1288_p10 = scmp.lt.s32.totalorder %s1286_s22, %s1282_s24 }
 0x784   : > { %p1284_p7 = pnand %p1283_p4, %p1441_p5 }
 0x785   : > { %p1289_p11 = por %p1288_p10, %p1287_p9 }
 0x786   : > { %p1285_p8 = pneg %p1284_p7 }
 0x788   : > { %p1290_p12 = pnand %p1289_p11, %p1285_p8 }
 0x78a   : > { %1293 = shalt.err (!%p1290_p12)
}
 0x78b   : > { %s1342_s0 = smov 128   ;;  %s1652_s12 = smov 8  }
 0x78c   : > { %1185 = dma.vmem_to_hbm [thread:$0]  (%p1441_p5), %s1586_s15, 256, %s1591_s13, %s1594_s29, %s1342_s0, %s1342_s0, %s1652_s12  }
 0x78d PF: > { %p1191_p13 = scmp.ge.s32.totalorder %s1328_s20, 2  ;;  %s1012_s21 = sand.u32 1, %s1316_s17  }
 0x78e   : > { %s1013_s24 = scalar_lea.sflag [#allocation3], %s1012_s21 }
 0x78f   : > { %p1188_p0 = pnand %p1191_p13, %p1445_p6 }
 0x791   : > { %p1189_p1 = pneg %p1188_p0 }
 0x793   : > { %1311 = dma.done.wait (%p1189_p1), %s1013_s24, 256  }
 0x794   : > { %1313 = vsyncadd (%p1189_p1), %s1013_s24, 4294967040  ;;  %p22_p2 = scmp.ge.s32.totalorder %s1428_s23, 4   ;;  %s1653_s17 = smov %s1320_s18 }
 0x795   : > { %s1654_s18 = smov %s1324_s19  ;;  %s1655_s19 = smov %s1439_s26 }
 0x796   : > { %s1656_s20 = smov %s1428_s23  ;;  %24 = sbr.rel (!%p22_p2) target bundleno = 5 (0x5), region = 110 }
 0x79b   :  { %1018 = vsyncpa [#allocation3], 1 }
 0x79c   :  { %1020 = vsyncpa [#allocation3 + $0x1], 1 }

// kernel: speech_autoencoder_forward.4
= control target key start
LH: loop header
LB: loop body
LE: loop exit
PB: predicated region body
PF: predicated region fallthrough
CT: control target
= control target key end

     0   :  { %vm39_vm0 = vcmask 1043456   ;;  %v1663_v3 = vmov 0.0   ;;  %vm1664_vm1 = vmmov 0   ;;  %vm32_vm2 = vcmask 64512   ;;  %s1667_s26 = smov 8   ;;  %s1668_s27 = smov 16   ;;  %s1882_s1 = inlined_call_operand.vmem [shape: bf16[8,32], index: 1, kind: input, shape index: {}]   ;;  %s1883_s2 = inlined_call_operand.vmem [shape: bf16[8,32], index: 2, kind: input, shape index: {}]   ;;  %s1884_s0 = inlined_call_operand.vmem [shape: f32[2,16,8], index: 0, kind: input, shape index: {}]   ;;  %s1885_s3 = inlined_call_operand.vmem [shape: f32[1,32], index: 3, kind: input, shape index: {}]   ;;  %s1886_s4 = inlined_call_operand.vmem [shape: f32[2,8], index: 4, kind: output, shape index: {}]  }
   0x1   :  { %v24_v0 = vld [vmem:[%s1882_s1] sm:$0xf]  ;;  %1431 = vmatprep.subr.bf16.mxu1 %v1663_v3  ;;  %1433 = vmatprep.mubr.msk.bf16.mxu1 %vm1664_vm1, %v1663_v3  ;;  %v19_v6 = vld [vmem:[%s1884_s0 + $0x8] sm:$0xff]  ;;  %v20_v7 = vld [vmem:[%s1884_s0 + $0x10] sm:$0xff]  ;;  %v1665_v11 = vmov 0   ;;  %vm92_vm3 = vcmask 261120  }
   0x2   :  { %v97_v1 = vld [vmem:[%s1883_s2] sm:$0xf]  ;;  %1527 = vmatprep.subr.msk.bf16.mxu0 %vm39_vm0, %v24_v0  ;;  %v41_v5 = vsel %vm39_vm0, %v24_v0, 0  ;;  %v21_v8 = vld [vmem:[%s1884_s0 + $0x18] sm:$0xff]  ;;  %vm103_vm4 = vcmask 1040384   ;;  %s1669_s28 = smov 104  }
   0x3   :  { %v18_v2 = vld [vmem:[%s1884_s0] sm:$0xff]  ;;  %v1707_v4 = vsel %vm39_vm0, %v97_v1, 0  ;;  %1426 = vmatpush3.bf16.msra.mxu0 %v41_v5  ;;  %v23_v10 = vpack.c.bf16 %v21_v8, %v20_v7  ;;  %vm1350_vm5 = vcmask 58368  }
   0x4   :  { %v22_v9 = vpack.c.bf16 %v19_v6, %v18_v2  ;;  %1432 = vmatpush3.bf16.msra.mxu1 %v1707_v4  ;;  %1437 = vmatprep.subr.bf16.mxu0 %v1663_v3  ;;  %v1356_v12 = vld [vmem:[%s1885_s3] ss:$0 sm:$0xff]  ;;  %s1666_s3 = smov 112  }
   0x5   :  { %1443 = vmatprep.subr.bf16.mxu1 %v1663_v3 }
   0x6   :  { %1427 = vmatprep.mubr.msk.bf16.mxu0 %vm32_vm2, %v22_v9 }
   0x7   :  { %1428 = vmatmul.mubr.msk.bf16.vlgmr.msra.gmra.mxu0 %vm32_vm2, %v23_v10  ;;  %1434 = vmatmul.mubr.bf16.vlgmr.msra.gmra.mxu1 %v1665_v11 }
   0x8   :  { %1438 = vmatpush3.bf16.msra.mxu0 %v1707_v4  ;;  %1439 = vmatprep.mubr.msk.bf16.mxu0 %vm1664_vm1, %v1663_v3 }
   0x9   :  { %1444 = vmatpush3.bf16.msra.mxu1 %v1707_v4  ;;  %1445 = vmatprep.mubr.msk.bf16.mxu1 %vm1664_vm1, %v1663_v3 }
   0xa   :  { %1449 = vmatprep.subr.bf16.mxu0 %v1663_v3  ;;  %1455 = vmatprep.subr.bf16.mxu1 %v1663_v3 }
  0xc7   :  { %v1429_v13 = vpop.f32.mrf.mxu0  ;;  %v145_v14 = vpop.f32.mrf.mxu1 }
  0xc8   :  { %v86_v15 = vadd.f32 %v1429_v13, %v1356_v12 }
  0xc9   :  { %v77_v16 = vpop.f32.mrf.mxu0  ;;  %v1435_v17 = vpop.f32.mrf.mxu1 }
  0xca   :  { %95 = vst.msk [vmem:[#allocation2 + $0x10] sm:$0xff] %vm92_vm3, %v86_v15  ;;  %v78_v18 = vadd.f32 %v1356_v12, %v77_v16 }
  0xcb   :  { %v1430_v19 = vpop.f32.mrf.mxu0  ;;  %v148_v20 = vpop.f32.mrf.mxu1 }
  0xcc   :  { %93 = vst.msk [vmem:[#allocation2] sm:$0xff] %vm92_vm3, %v78_v18  ;;  %v89_v21 = vadd.f32 %v1430_v19, %v1356_v12 }
  0xcd   :  { %v80_v22 = vpop.f32.mrf.mxu0  ;;  %v1436_v23 = vpop.f32.mrf.mxu1 }
  0xce   :  { %96 = vst.msk [vmem:[#allocation2 + $0x18] sm:$0xff] %vm92_vm3, %v89_v21  ;;  %v81_v24 = vadd.f32 %v1356_v12, %v80_v22 }
  0xd0   :  { %94 = vst.msk [vmem:[#allocation2 + $0x8] sm:$0xff] %vm92_vm3, %v81_v24 }
  0xd1   :  { %v99_v25 = vld [vmem:[#allocation2 + $0x10] sm:$0x1]  ;;  %v177_v45 = vld [vmem:[#allocation2 + $0x11] sm:$0x1]  ;;  %v255_v7 = vld [vmem:[#allocation2 + $0x12] sm:$0x1] }
  0xd2   :  { %v101_v26 = vrot.slane %v99_v25, 7  ;;  %v179_v46 = vrot.slane %v177_v45, 7  ;;  %v257_v8 = vrot.slane %v255_v7, 7 }
  0xd3   :  { %v98_v27 = vld [vmem:[#allocation2] sm:$0x1]  ;;  %v176_v47 = vld [vmem:[#allocation2 + $0x1] sm:$0x1]  ;;  %v254_v9 = vld [vmem:[#allocation2 + $0x2] sm:$0x1] }
  0xd4   :  { %v104_v28 = vsel %vm103_vm4, %v98_v27, %v101_v26  ;;  %v181_v48 = vsel %vm103_vm4, %v176_v47, %v179_v46  ;;  %v259_v10 = vsel %vm103_vm4, %v254_v9, %v257_v8 }
  0xd5   :  { %v151_v29 = vadd.f32 %v145_v14, %v104_v28 }
  0xd7   :  { %1535 = vtanh.f32 %v151_v29  ;;  %v1359_v31 = vmul.f32 -1.442695, %v151_v29 }
  0xd9   :  { %1537 = vpow2.f32 %v1359_v31  ;;  %v333_v31 = vld [vmem:[#allocation2 + $0x13] sm:$0x1] }
  0xe4   :  { %v1536_v30 = vpop.eup %1535 }
  0xe5   :  { %161 = vrot.lane.b32.xlu0 %v1536_v30, %s1666_s3 }
  0xe6   :  { %v1538_v32 = vpop.eup %1537 }
  0xe7   :  { %v155_v33 = vadd.f32 1.0, %v1538_v32  ;;  %v335_v32 = vrot.slane %v333_v31, 7 }
  0xe9   :  { %1539 = vrcp.f32 %v155_v33  ;;  %v332_v33 = vld [vmem:[#allocation2 + $0x3] sm:$0x1] }
  0xf6   :  { %v1540_v34 = vpop.eup %1539 }
  0xf7   :  { %v159_v37 = vmul.f32 0.0, %v1540_v34 }
 0x157   :  { %v162_v35 = vpop.permute.xlu0 %161 }
 0x158   :  { %v164_v36 = vmul.f32 %v1540_v34, %v162_v35 }
 0x15a   :  { %166 = vrot.lane.b32.xlu0 %v164_v36, %s1667_s26 }
 0x1cc   :  { %v167_v38 = vpop.permute.xlu0 %166 }
 0x1cd   :  { %v169_v39 = vadd.f32 %v167_v38, %v159_v37 }
 0x1cf   :  { %1541 = vtanh.f32 %v169_v39 }
 0x1dc   :  { %v1542_v40 = vpop.eup %1541 }
 0x1dd   :  { %172 = vrot.lane.b32.xlu1 %v1542_v40, %s1668_s27 }
 0x24f   :  { %v173_v41 = vpop.permute.xlu1 %172 }
 0x250   :  { %v175_v42 = vmul.f32 %v1540_v34, %v173_v41  ;;  %v337_v34 = vsel %vm103_vm4, %v332_v33, %v335_v32 }
 0x252   :  { %v182_v43 = vpack.c.bf16 %v175_v42, %v175_v42 }
 0x254   :  { %184 = vrot.lane.b32.xlu1 %v182_v43, %s1669_s28 }
 0x2c6   :  { %v185_v44 = vpop.permute.xlu1 %184 }
 0x2c7   :  { %1440 = vmatmul.mubr.msk.bf16.vlgmr.msra.gmra.mxu0 %vm32_vm2, %v185_v44 }
 0x2c8   :  { %1450 = vmatpush3.bf16.msra.mxu0 %v1707_v4  ;;  %1451 = vmatprep.mubr.msk.bf16.mxu0 %vm1664_vm1, %v1663_v3 }
 0x2c9   :  { %1461 = vmatprep.subr.bf16.mxu0 %v1663_v3 }
 0x387   :  { %v223_v49 = vpop.f32.mrf.mxu0 }
 0x388   :  { %v229_v50 = vadd.f32 %v223_v49, %v181_v48 }
 0x389   :  { %v1441_v51 = vpop.f32.mrf.mxu0 }
 0x38a   :  { %1543 = vtanh.f32 %v229_v50  ;;  %v1361_v55 = vmul.f32 -1.442695, %v229_v50 }
 0x38b   :  { %v226_v52 = vpop.f32.mrf.mxu0 }
 0x38c   :  { %1545 = vpow2.f32 %v1361_v55  ;;  %v411_v55 = vld [vmem:[#allocation2 + $0x14] sm:$0x1] }
 0x38d   :  { %v1442_v53 = vpop.f32.mrf.mxu0 }
 0x397   :  { %v1544_v54 = vpop.eup %1543 }
 0x398   :  { %239 = vrot.lane.b32.xlu0 %v1544_v54, %s1666_s3 }
 0x399   :  { %v1546_v56 = vpop.eup %1545 }
 0x39a   :  { %v233_v57 = vadd.f32 1.0, %v1546_v56  ;;  %v413_v56 = vrot.slane %v411_v55, 7 }
 0x39c   :  { %1547 = vrcp.f32 %v233_v57  ;;  %v410_v57 = vld [vmem:[#allocation2 + $0x4] sm:$0x1] }
 0x3a9   :  { %v1548_v58 = vpop.eup %1547 }
 0x3aa   :  { %v237_v61 = vmul.f32 %v1548_v58, %v169_v39 }
 0x40a   :  { %v240_v59 = vpop.permute.xlu0 %239 }
 0x40b   :  { %v242_v60 = vmul.f32 %v1548_v58, %v240_v59 }
 0x40d   :  { %244 = vrot.lane.b32.xlu1 %v242_v60, %s1667_s26 }
 0x47f   :  { %v245_v62 = vpop.permute.xlu1 %244 }
 0x480   :  { %v247_v63 = vadd.f32 %v245_v62, %v237_v61 }
 0x482   :  { %1549 = vtanh.f32 %v247_v63 }
 0x48f   :  { %v1550_v0 = vpop.eup %1549 }
 0x490   :  { %250 = vrot.lane.b32.xlu0 %v1550_v0, %s1668_s27 }
 0x502   :  { %v251_v1 = vpop.permute.xlu0 %250 }
 0x503   :  { %v253_v2 = vmul.f32 %v1548_v58, %v251_v1  ;;  %v415_v58 = vsel %vm103_vm4, %v410_v57, %v413_v56 }
 0x505   :  { %v260_v5 = vpack.c.bf16 %v253_v2, %v253_v2 }
 0x507   :  { %262 = vrot.lane.b32.xlu1 %v260_v5, %s1669_s28 }
 0x579   :  { %v263_v6 = vpop.permute.xlu1 %262 }
 0x57a   :  { %1446 = vmatmul.mubr.msk.bf16.vlgmr.msra.gmra.mxu1 %vm32_vm2, %v263_v6 }
 0x57b   :  { %1456 = vmatpush3.bf16.msra.mxu1 %v1707_v4  ;;  %1457 = vmatprep.mubr.msk.bf16.mxu1 %vm1664_vm1, %v1663_v3 }
 0x57c   :  { %1467 = vmatprep.subr.bf16.mxu1 %v1663_v3 }
 0x63a   :  { %v301_v11 = vpop.f32.mrf.mxu1 }
 0x63b   :  { %v307_v12 = vadd.f32 %v301_v11, %v259_v10 }
 0x63c   :  { %v1447_v13 = vpop.f32.mrf.mxu1 }
 0x63d   :  { %1551 = vtanh.f32 %v307_v12  ;;  %v1363_v17 = vmul.f32 -1.442695, %v307_v12 }
 0x63e   :  { %v304_v14 = vpop.f32.mrf.mxu1 }
 0x63f   :  { %1553 = vpow2.f32 %v1363_v17  ;;  %v489_v17 = vld [vmem:[#allocation2 + $0x15] sm:$0x1] }
 0x640   :  { %v1448_v15 = vpop.f32.mrf.mxu1 }
 0x64a   :  { %v1552_v16 = vpop.eup %1551 }
 0x64b   :  { %317 = vrot.lane.b32.xlu0 %v1552_v16, %s1666_s3 }
 0x64c   :  { %v1554_v18 = vpop.eup %1553 }
 0x64d   :  { %v311_v19 = vadd.f32 1.0, %v1554_v18  ;;  %v491_v18 = vrot.slane %v489_v17, 7 }
 0x64f   :  { %1555 = vrcp.f32 %v311_v19  ;;  %v488_v19 = vld [vmem:[#allocation2 + $0x5] sm:$0x1] }
 0x65c   :  { %v1556_v20 = vpop.eup %1555 }
 0x65d   :  { %v315_v23 = vmul.f32 %v1556_v20, %v247_v63 }
 0x6bd   :  { %v318_v21 = vpop.permute.xlu0 %317 }
 0x6be   :  { %v320_v22 = vmul.f32 %v1556_v20, %v318_v21 }
 0x6c0   :  { %322 = vrot.lane.b32.xlu1 %v320_v22, %s1667_s26 }
 0x732   :  { %v323_v24 = vpop.permute.xlu1 %322 }
 0x733   :  { %v325_v25 = vadd.f32 %v323_v24, %v315_v23 }
 0x735   :  { %1557 = vtanh.f32 %v325_v25 }
 0x742   :  { %v1558_v26 = vpop.eup %1557 }
 0x743   :  { %328 = vrot.lane.b32.xlu0 %v1558_v26, %s1668_s27 }
 0x7b5   :  { %v329_v27 = vpop.permute.xlu0 %328 }
 0x7b6   :  { %v331_v28 = vmul.f32 %v1556_v20, %v329_v27  ;;  %v493_v20 = vsel %vm103_vm4, %v488_v19, %v491_v18 }
 0x7b8   :  { %v338_v29 = vpack.c.bf16 %v331_v28, %v331_v28 }
 0x7ba   :  { %340 = vrot.lane.b32.xlu1 %v338_v29, %s1669_s28 }
 0x82c   :  { %v341_v30 = vpop.permute.xlu1 %340 }
 0x82d   :  { %1452 = vmatmul.mubr.msk.bf16.vlgmr.msra.gmra.mxu0 %vm32_vm2, %v341_v30 }
 0x82e   :  { %1462 = vmatpush3.bf16.msra.mxu0 %v1707_v4  ;;  %1463 = vmatprep.mubr.msk.bf16.mxu0 %vm1664_vm1, %v1663_v3 }
 0x82f   :  { %1473 = vmatprep.subr.bf16.mxu0 %v1663_v3 }
 0x8ed   :  { %v379_v35 = vpop.f32.mrf.mxu0 }
 0x8ee   :  { %v385_v36 = vadd.f32 %v379_v35, %v337_v34 }
 0x8ef   :  { %v1453_v37 = vpop.f32.mrf.mxu0 }
 0x8f0   :  { %1559 = vtanh.f32 %v385_v36  ;;  %v1365_v41 = vmul.f32 -1.442695, %v385_v36 }
 0x8f1   :  { %v382_v38 = vpop.f32.mrf.mxu0 }
 0x8f2   :  { %1561 = vpow2.f32 %v1365_v41  ;;  %v567_v41 = vld [vmem:[#allocation2 + $0x16] sm:$0x1] }
 0x8f3   :  { %v1454_v39 = vpop.f32.mrf.mxu0 }
 0x8fd   :  { %v1560_v40 = vpop.eup %1559 }
 0x8fe   :  { %395 = vrot.lane.b32.xlu0 %v1560_v40, %s1666_s3 }
 0x8ff   :  { %v1562_v42 = vpop.eup %1561 }
 0x900   :  { %v389_v43 = vadd.f32 1.0, %v1562_v42  ;;  %v569_v42 = vrot.slane %v567_v41, 7 }
 0x902   :  { %1563 = vrcp.f32 %v389_v43  ;;  %v566_v43 = vld [vmem:[#allocation2 + $0x6] sm:$0x1] }
 0x90f   :  { %v1564_v44 = vpop.eup %1563 }
 0x910   :  { %v393_v47 = vmul.f32 %v1564_v44, %v325_v25 }
 0x970   :  { %v396_v45 = vpop.permute.xlu0 %395 }
 0x971   :  { %v398_v46 = vmul.f32 %v1564_v44, %v396_v45 }
 0x973   :  { %400 = vrot.lane.b32.xlu1 %v398_v46, %s1667_s26 }
 0x9e5   :  { %v401_v48 = vpop.permute.xlu1 %400 }
 0x9e6   :  { %v403_v49 = vadd.f32 %v401_v48, %v393_v47 }
 0x9e8   :  { %1565 = vtanh.f32 %v403_v49 }
 0x9f5   :  { %v1566_v50 = vpop.eup %1565 }
 0x9f6   :  { %406 = vrot.lane.b32.xlu0 %v1566_v50, %s1668_s27 }
 0xa68   :  { %v407_v51 = vpop.permute.xlu0 %406 }
 0xa69   :  { %v409_v52 = vmul.f32 %v1564_v44, %v407_v51  ;;  %v571_v44 = vsel %vm103_vm4, %v566_v43, %v569_v42 }
 0xa6b   :  { %v416_v53 = vpack.c.bf16 %v409_v52, %v409_v52 }
 0xa6d   :  { %418 = vrot.lane.b32.xlu1 %v416_v53, %s1669_s28 }
 0xadf   :  { %v419_v54 = vpop.permute.xlu1 %418 }
 0xae0   :  { %1458 = vmatmul.mubr.msk.bf16.vlgmr.msra.gmra.mxu1 %vm32_vm2, %v419_v54 }
 0xae1   :  { %1468 = vmatpush3.bf16.msra.mxu1 %v1707_v4  ;;  %1469 = vmatprep.mubr.msk.bf16.mxu1 %vm1664_vm1, %v1663_v3 }
 0xae2   :  { %1479 = vmatprep.subr.bf16.mxu1 %v1663_v3 }
 0xba0   :  { %v457_v59 = vpop.f32.mrf.mxu1 }
 0xba1   :  { %v463_v60 = vadd.f32 %v457_v59, %v415_v58 }
 0xba2   :  { %v1459_v61 = vpop.f32.mrf.mxu1 }
 0xba3   :  { %1567 = vtanh.f32 %v463_v60  ;;  %v1367_v1 = vmul.f32 -1.442695, %v463_v60 }
 0xba4   :  { %v460_v62 = vpop.f32.mrf.mxu1 }
 0xba5   :  { %1569 = vpow2.f32 %v1367_v1  ;;  %v645_v1 = vld [vmem:[#allocation2 + $0x17] sm:$0x1] }
 0xba6   :  { %v1460_v63 = vpop.f32.mrf.mxu1 }
 0xbb0   :  { %v1568_v0 = vpop.eup %1567 }
 0xbb1   :  { %473 = vrot.lane.b32.xlu0 %v1568_v0, %s1666_s3 }
 0xbb2   :  { %v1570_v2 = vpop.eup %1569 }
 0xbb3   :  { %v467_v5 = vadd.f32 1.0, %v1570_v2  ;;  %v647_v2 = vrot.slane %v645_v1, 7 }
 0xbb5   :  { %1571 = vrcp.f32 %v467_v5  ;;  %v644_v5 = vld [vmem:[#allocation2 + $0x7] sm:$0x1] }
 0xbc2   :  { %v1572_v6 = vpop.eup %1571 }
 0xbc3   :  { %v471_v9 = vmul.f32 %v1572_v6, %v403_v49 }
 0xc23   :  { %v474_v7 = vpop.permute.xlu0 %473 }
 0xc24   :  { %v476_v8 = vmul.f32 %v1572_v6, %v474_v7 }
 0xc26   :  { %478 = vrot.lane.b32.xlu1 %v476_v8, %s1667_s26 }
 0xc98   :  { %v479_v10 = vpop.permute.xlu1 %478 }
 0xc99   :  { %v481_v11 = vadd.f32 %v479_v10, %v471_v9 }
 0xc9b   :  { %1573 = vtanh.f32 %v481_v11 }
 0xca8   :  { %v1574_v12 = vpop.eup %1573 }
 0xca9   :  { %484 = vrot.lane.b32.xlu0 %v1574_v12, %s1668_s27 }
 0xd1b   :  { %v485_v13 = vpop.permute.xlu0 %484 }
 0xd1c   :  { %v487_v14 = vmul.f32 %v1572_v6, %v485_v13  ;;  %v649_v6 = vsel %vm103_vm4, %v644_v5, %v647_v2 }
 0xd1e   :  { %v494_v15 = vpack.c.bf16 %v487_v14, %v487_v14 }
 0xd20   :  { %496 = vrot.lane.b32.xlu1 %v494_v15, %s1669_s28 }
 0xd92   :  { %v497_v16 = vpop.permute.xlu1 %496 }
 0xd93   :  { %1464 = vmatmul.mubr.msk.bf16.vlgmr.msra.gmra.mxu0 %vm32_vm2, %v497_v16 }
 0xd94   :  { %1474 = vmatpush3.bf16.msra.mxu0 %v1707_v4  ;;  %1475 = vmatprep.mubr.msk.bf16.mxu0 %vm1664_vm1, %v1663_v3 }
 0xd95   :  { %1485 = vmatprep.subr.bf16.mxu0 %v1663_v3 }
 0xe53   :  { %v535_v21 = vpop.f32.mrf.mxu0 }
 0xe54   :  { %v541_v22 = vadd.f32 %v535_v21, %v493_v20 }
 0xe55   :  { %v1465_v23 = vpop.f32.mrf.mxu0 }
 0xe56   :  { %1575 = vtanh.f32 %v541_v22  ;;  %v1369_v27 = vmul.f32 -1.442695, %v541_v22 }
 0xe57   :  { %v538_v24 = vpop.f32.mrf.mxu0 }
 0xe58   :  { %1577 = vpow2.f32 %v1369_v27  ;;  %v723_v27 = vld [vmem:[#allocation2 + $0x18] sm:$0x1] }
 0xe59   :  { %v1466_v25 = vpop.f32.mrf.mxu0 }
 0xe63   :  { %v1576_v26 = vpop.eup %1575 }
 0xe64   :  { %551 = vrot.lane.b32.xlu0 %v1576_v26, %s1666_s3 }
 0xe65   :  { %v1578_v28 = vpop.eup %1577 }
 0xe66   :  { %v545_v29 = vadd.f32 1.0, %v1578_v28  ;;  %v725_v28 = vrot.slane %v723_v27, 7 }
 0xe68   :  { %1579 = vrcp.f32 %v545_v29  ;;  %v722_v29 = vld [vmem:[#allocation2 + $0x8] sm:$0x1] }
 0xe75   :  { %v1580_v30 = vpop.eup %1579 }
 0xe76   :  { %v549_v33 = vmul.f32 %v1580_v30, %v481_v11 }
 0xed6   :  { %v552_v31 = vpop.permute.xlu0 %551 }
 0xed7   :  { %v554_v32 = vmul.f32 %v1580_v30, %v552_v31 }
 0xed9   :  { %556 = vrot.lane.b32.xlu1 %v554_v32, %s1667_s26 }
 0xf4b   :  { %v557_v34 = vpop.permute.xlu1 %556 }
 0xf4c   :  { %v559_v35 = vadd.f32 %v557_v34, %v549_v33 }
 0xf4e   :  { %1581 = vtanh.f32 %v559_v35 }
 0xf5b   :  { %v1582_v36 = vpop.eup %1581 }
 0xf5c   :  { %562 = vrot.lane.b32.xlu0 %v1582_v36, %s1668_s27 }
 0xfce   :  { %v563_v37 = vpop.permute.xlu0 %562 }
 0xfcf   :  { %v565_v38 = vmul.f32 %v1580_v30, %v563_v37  ;;  %v727_v30 = vsel %vm103_vm4, %v722_v29, %v725_v28 }
 0xfd1   :  { %v572_v39 = vpack.c.bf16 %v565_v38, %v565_v38 }
 0xfd3   :  { %574 = vrot.lane.b32.xlu1 %v572_v39, %s1669_s28 }
0x1045   :  { %v575_v40 = vpop.permute.xlu1 %574 }
0x1046   :  { %1470 = vmatmul.mubr.msk.bf16.vlgmr.msra.gmra.mxu1 %vm32_vm2, %v575_v40 }
0x1047   :  { %1480 = vmatpush3.bf16.msra.mxu1 %v1707_v4  ;;  %1481 = vmatprep.mubr.msk.bf16.mxu1 %vm1664_vm1, %v1663_v3 }
0x1048   :  { %1491 = vmatprep.subr.bf16.mxu1 %v1663_v3 }
0x1106   :  { %v613_v45 = vpop.f32.mrf.mxu1 }
0x1107   :  { %v619_v46 = vadd.f32 %v613_v45, %v571_v44 }
0x1108   :  { %v1471_v47 = vpop.f32.mrf.mxu1 }
0x1109   :  { %1583 = vtanh.f32 %v619_v46  ;;  %v1371_v51 = vmul.f32 -1.442695, %v619_v46 }
0x110a   :  { %v616_v48 = vpop.f32.mrf.mxu1 }
0x110b   :  { %1585 = vpow2.f32 %v1371_v51  ;;  %v801_v51 = vld [vmem:[#allocation2 + $0x19] sm:$0x1] }
0x110c   :  { %v1472_v49 = vpop.f32.mrf.mxu1 }
0x1116   :  { %v1584_v50 = vpop.eup %1583 }
0x1117   :  { %629 = vrot.lane.b32.xlu0 %v1584_v50, %s1666_s3 }
0x1118   :  { %v1586_v52 = vpop.eup %1585 }
0x1119   :  { %v623_v53 = vadd.f32 1.0, %v1586_v52  ;;  %v803_v52 = vrot.slane %v801_v51, 7 }
0x111b   :  { %1587 = vrcp.f32 %v623_v53  ;;  %v800_v53 = vld [vmem:[#allocation2 + $0x9] sm:$0x1] }
0x1128   :  { %v1588_v54 = vpop.eup %1587 }
0x1129   :  { %v627_v57 = vmul.f32 %v1588_v54, %v559_v35 }
0x1189   :  { %v630_v55 = vpop.permute.xlu0 %629 }
0x118a   :  { %v632_v56 = vmul.f32 %v1588_v54, %v630_v55 }
0x118c   :  { %634 = vrot.lane.b32.xlu1 %v632_v56, %s1667_s26 }
0x11fe   :  { %v635_v58 = vpop.permute.xlu1 %634 }
0x11ff   :  { %v637_v59 = vadd.f32 %v635_v58, %v627_v57 }
0x1201   :  { %1589 = vtanh.f32 %v637_v59 }
0x120e   :  { %v1590_v60 = vpop.eup %1589 }
0x120f   :  { %640 = vrot.lane.b32.xlu0 %v1590_v60, %s1668_s27 }
0x1281   :  { %v641_v61 = vpop.permute.xlu0 %640 }
0x1282   :  { %v643_v62 = vmul.f32 %v1588_v54, %v641_v61  ;;  %v805_v54 = vsel %vm103_vm4, %v800_v53, %v803_v52 }
0x1284   :  { %v650_v63 = vpack.c.bf16 %v643_v62, %v643_v62 }
0x1286   :  { %652 = vrot.lane.b32.xlu1 %v650_v63, %s1669_s28 }
0x12f8   :  { %v653_v0 = vpop.permute.xlu1 %652 }
0x12f9   :  { %1476 = vmatmul.mubr.msk.bf16.vlgmr.msra.gmra.mxu0 %vm32_vm2, %v653_v0 }
0x12fa   :  { %1486 = vmatpush3.bf16.msra.mxu0 %v1707_v4  ;;  %1487 = vmatprep.mubr.msk.bf16.mxu0 %vm1664_vm1, %v1663_v3 }
0x12fb   :  { %1497 = vmatprep.subr.bf16.mxu0 %v1663_v3 }
0x13b9   :  { %v691_v7 = vpop.f32.mrf.mxu0 }
0x13ba   :  { %v697_v8 = vadd.f32 %v691_v7, %v649_v6 }
0x13bb   :  { %v1477_v9 = vpop.f32.mrf.mxu0 }
0x13bc   :  { %1591 = vtanh.f32 %v697_v8  ;;  %v1373_v13 = vmul.f32 -1.442695, %v697_v8 }
0x13bd   :  { %v694_v10 = vpop.f32.mrf.mxu0 }
0x13be   :  { %1593 = vpow2.f32 %v1373_v13  ;;  %v879_v13 = vld [vmem:[#allocation2 + $0x1a] sm:$0x1] }
0x13bf   :  { %v1478_v11 = vpop.f32.mrf.mxu0 }
0x13c9   :  { %v1592_v12 = vpop.eup %1591 }
0x13ca   :  { %707 = vrot.lane.b32.xlu0 %v1592_v12, %s1666_s3 }
0x13cb   :  { %v1594_v14 = vpop.eup %1593 }
0x13cc   :  { %v701_v15 = vadd.f32 1.0, %v1594_v14  ;;  %v881_v14 = vrot.slane %v879_v13, 7 }
0x13ce   :  { %1595 = vrcp.f32 %v701_v15  ;;  %v878_v15 = vld [vmem:[#allocation2 + $0xa] sm:$0x1] }
0x13db   :  { %v1596_v16 = vpop.eup %1595 }
0x13dc   :  { %v705_v19 = vmul.f32 %v1596_v16, %v637_v59 }
0x143c   :  { %v708_v17 = vpop.permute.xlu0 %707 }
0x143d   :  { %v710_v18 = vmul.f32 %v1596_v16, %v708_v17 }
0x143f   :  { %712 = vrot.lane.b32.xlu1 %v710_v18, %s1667_s26 }
0x14b1   :  { %v713_v20 = vpop.permute.xlu1 %712 }
0x14b2   :  { %v715_v21 = vadd.f32 %v713_v20, %v705_v19 }
0x14b4   :  { %1597 = vtanh.f32 %v715_v21 }
0x14c1   :  { %v1598_v22 = vpop.eup %1597 }
0x14c2   :  { %718 = vrot.lane.b32.xlu0 %v1598_v22, %s1668_s27 }
0x1534   :  { %v719_v23 = vpop.permute.xlu0 %718 }
0x1535   :  { %v721_v24 = vmul.f32 %v1596_v16, %v719_v23  ;;  %v883_v16 = vsel %vm103_vm4, %v878_v15, %v881_v14 }
0x1537   :  { %v728_v25 = vpack.c.bf16 %v721_v24, %v721_v24 }
0x1539   :  { %730 = vrot.lane.b32.xlu1 %v728_v25, %s1669_s28 }
0x15ab   :  { %v731_v26 = vpop.permute.xlu1 %730 }
0x15ac   :  { %1482 = vmatmul.mubr.msk.bf16.vlgmr.msra.gmra.mxu1 %vm32_vm2, %v731_v26 }
0x15ad   :  { %1492 = vmatpush3.bf16.msra.mxu1 %v1707_v4  ;;  %1493 = vmatprep.mubr.msk.bf16.mxu1 %vm1664_vm1, %v1663_v3 }
0x15ae   :  { %1503 = vmatprep.subr.bf16.mxu1 %v1663_v3 }
0x166c   :  { %v769_v31 = vpop.f32.mrf.mxu1 }
0x166d   :  { %v775_v32 = vadd.f32 %v769_v31, %v727_v30 }
0x166e   :  { %v1483_v33 = vpop.f32.mrf.mxu1 }
0x166f   :  { %1599 = vtanh.f32 %v775_v32  ;;  %v1375_v37 = vmul.f32 -1.442695, %v775_v32 }
0x1670   :  { %v772_v34 = vpop.f32.mrf.mxu1 }
0x1671   :  { %1601 = vpow2.f32 %v1375_v37  ;;  %v957_v37 = vld [vmem:[#allocation2 + $0x1b] sm:$0x1] }
0x1672   :  { %v1484_v35 = vpop.f32.mrf.mxu1 }
0x167c   :  { %v1600_v36 = vpop.eup %1599 }
0x167d   :  { %785 = vrot.lane.b32.xlu0 %v1600_v36, %s1666_s3 }
0x167e   :  { %v1602_v38 = vpop.eup %1601 }
0x167f   :  { %v779_v39 = vadd.f32 1.0, %v1602_v38  ;;  %v959_v38 = vrot.slane %v957_v37, 7 }
0x1681   :  { %1603 = vrcp.f32 %v779_v39  ;;  %v956_v39 = vld [vmem:[#allocation2 + $0xb] sm:$0x1] }
0x168e   :  { %v1604_v40 = vpop.eup %1603 }
0x168f   :  { %v783_v43 = vmul.f32 %v1604_v40, %v715_v21 }
0x16ef   :  { %v786_v41 = vpop.permute.xlu0 %785 }
0x16f0   :  { %v788_v42 = vmul.f32 %v1604_v40, %v786_v41 }
0x16f2   :  { %790 = vrot.lane.b32.xlu1 %v788_v42, %s1667_s26 }
0x1764   :  { %v791_v44 = vpop.permute.xlu1 %790 }
0x1765   :  { %v793_v45 = vadd.f32 %v791_v44, %v783_v43 }
0x1767   :  { %1605 = vtanh.f32 %v793_v45 }
0x1774   :  { %v1606_v46 = vpop.eup %1605 }
0x1775   :  { %796 = vrot.lane.b32.xlu0 %v1606_v46, %s1668_s27 }
0x17e7   :  { %v797_v47 = vpop.permute.xlu0 %796 }
0x17e8   :  { %v799_v48 = vmul.f32 %v1604_v40, %v797_v47  ;;  %v961_v40 = vsel %vm103_vm4, %v956_v39, %v959_v38 }
0x17ea   :  { %v806_v49 = vpack.c.bf16 %v799_v48, %v799_v48 }
0x17ec   :  { %808 = vrot.lane.b32.xlu1 %v806_v49, %s1669_s28 }
0x185e   :  { %v809_v50 = vpop.permute.xlu1 %808 }
0x185f   :  { %1488 = vmatmul.mubr.msk.bf16.vlgmr.msra.gmra.mxu0 %vm32_vm2, %v809_v50 }
0x1860   :  { %1498 = vmatpush3.bf16.msra.mxu0 %v1707_v4  ;;  %1499 = vmatprep.mubr.msk.bf16.mxu0 %vm1664_vm1, %v1663_v3 }
0x1861   :  { %1509 = vmatprep.subr.bf16.mxu0 %v1663_v3 }
0x191f   :  { %v847_v55 = vpop.f32.mrf.mxu0 }
0x1920   :  { %v853_v56 = vadd.f32 %v847_v55, %v805_v54 }
0x1921   :  { %v1489_v57 = vpop.f32.mrf.mxu0 }
0x1922   :  { %1607 = vtanh.f32 %v853_v56  ;;  %v1377_v61 = vmul.f32 -1.442695, %v853_v56 }
0x1923   :  { %v850_v58 = vpop.f32.mrf.mxu0 }
0x1924   :  { %1609 = vpow2.f32 %v1377_v61  ;;  %v1035_v61 = vld [vmem:[#allocation2 + $0x1c] sm:$0x1] }
0x1925   :  { %v1490_v59 = vpop.f32.mrf.mxu0 }
0x192f   :  { %v1608_v60 = vpop.eup %1607 }
0x1930   :  { %863 = vrot.lane.b32.xlu0 %v1608_v60, %s1666_s3 }
0x1931   :  { %v1610_v62 = vpop.eup %1609 }
0x1932   :  { %v857_v63 = vadd.f32 1.0, %v1610_v62  ;;  %v1037_v62 = vrot.slane %v1035_v61, 7 }
0x1934   :  { %1611 = vrcp.f32 %v857_v63  ;;  %v1034_v63 = vld [vmem:[#allocation2 + $0xc] sm:$0x1] }
0x1941   :  { %v1612_v0 = vpop.eup %1611 }
0x1942   :  { %v861_v5 = vmul.f32 %v1612_v0, %v793_v45 }
0x19a2   :  { %v864_v1 = vpop.permute.xlu0 %863 }
0x19a3   :  { %v866_v2 = vmul.f32 %v1612_v0, %v864_v1 }
0x19a5   :  { %868 = vrot.lane.b32.xlu1 %v866_v2, %s1667_s26 }
0x1a17   :  { %v869_v6 = vpop.permute.xlu1 %868 }
0x1a18   :  { %v871_v7 = vadd.f32 %v869_v6, %v861_v5 }
0x1a1a   :  { %1613 = vtanh.f32 %v871_v7 }
0x1a27   :  { %v1614_v8 = vpop.eup %1613 }
0x1a28   :  { %874 = vrot.lane.b32.xlu0 %v1614_v8, %s1668_s27 }
0x1a9a   :  { %v875_v9 = vpop.permute.xlu0 %874 }
0x1a9b   :  { %v877_v10 = vmul.f32 %v1612_v0, %v875_v9  ;;  %v1039_v0 = vsel %vm103_vm4, %v1034_v63, %v1037_v62 }
0x1a9d   :  { %v884_v11 = vpack.c.bf16 %v877_v10, %v877_v10 }
0x1a9f   :  { %886 = vrot.lane.b32.xlu1 %v884_v11, %s1669_s28 }
0x1b11   :  { %v887_v12 = vpop.permute.xlu1 %886 }
0x1b12   :  { %1494 = vmatmul.mubr.msk.bf16.vlgmr.msra.gmra.mxu1 %vm32_vm2, %v887_v12 }
0x1b13   :  { %1504 = vmatpush3.bf16.msra.mxu1 %v1707_v4  ;;  %1505 = vmatprep.mubr.msk.bf16.mxu1 %vm1664_vm1, %v1663_v3 }
0x1b14   :  { %1515 = vmatprep.subr.bf16.mxu1 %v1663_v3 }
0x1bd2   :  { %v925_v17 = vpop.f32.mrf.mxu1 }
0x1bd3   :  { %v931_v18 = vadd.f32 %v925_v17, %v883_v16 }
0x1bd4   :  { %v1495_v19 = vpop.f32.mrf.mxu1 }
0x1bd5   :  { %1615 = vtanh.f32 %v931_v18  ;;  %v1379_v23 = vmul.f32 -1.442695, %v931_v18 }
0x1bd6   :  { %v928_v20 = vpop.f32.mrf.mxu1 }
0x1bd7   :  { %1617 = vpow2.f32 %v1379_v23  ;;  %v1113_v23 = vld [vmem:[#allocation2 + $0x1d] sm:$0x1] }
0x1bd8   :  { %v1496_v21 = vpop.f32.mrf.mxu1 }
0x1be2   :  { %v1616_v22 = vpop.eup %1615 }
0x1be3   :  { %941 = vrot.lane.b32.xlu0 %v1616_v22, %s1666_s3 }
0x1be4   :  { %v1618_v24 = vpop.eup %1617 }
0x1be5   :  { %v935_v25 = vadd.f32 1.0, %v1618_v24  ;;  %v1115_v24 = vrot.slane %v1113_v23, 7 }
0x1be7   :  { %1619 = vrcp.f32 %v935_v25  ;;  %v1112_v25 = vld [vmem:[#allocation2 + $0xd] sm:$0x1] }
0x1bf4   :  { %v1620_v26 = vpop.eup %1619 }
0x1bf5   :  { %v939_v29 = vmul.f32 %v1620_v26, %v871_v7 }
0x1c55   :  { %v942_v27 = vpop.permute.xlu0 %941 }
0x1c56   :  { %v944_v28 = vmul.f32 %v1620_v26, %v942_v27 }
0x1c58   :  { %946 = vrot.lane.b32.xlu1 %v944_v28, %s1667_s26 }
0x1cca   :  { %v947_v30 = vpop.permute.xlu1 %946 }
0x1ccb   :  { %v949_v31 = vadd.f32 %v947_v30, %v939_v29 }
0x1ccd   :  { %1621 = vtanh.f32 %v949_v31 }
0x1cda   :  { %v1622_v32 = vpop.eup %1621 }
0x1cdb   :  { %952 = vrot.lane.b32.xlu0 %v1622_v32, %s1668_s27 }
0x1d4d   :  { %v953_v33 = vpop.permute.xlu0 %952 }
0x1d4e   :  { %v955_v34 = vmul.f32 %v1620_v26, %v953_v33  ;;  %v1117_v26 = vsel %vm103_vm4, %v1112_v25, %v1115_v24 }
0x1d50   :  { %v962_v35 = vpack.c.bf16 %v955_v34, %v955_v34 }
0x1d52   :  { %964 = vrot.lane.b32.xlu1 %v962_v35, %s1669_s28 }
0x1dc4   :  { %v965_v36 = vpop.permute.xlu1 %964 }
0x1dc5   :  { %1500 = vmatmul.mubr.msk.bf16.vlgmr.msra.gmra.mxu0 %vm32_vm2, %v965_v36 }
0x1dc6   :  { %1510 = vmatpush3.bf16.msra.mxu0 %v1707_v4  ;;  %1511 = vmatprep.mubr.msk.bf16.mxu0 %vm1664_vm1, %v1663_v3 }
0x1dc7   :  { %1521 = vmatprep.subr.bf16.mxu0 %v1663_v3 }
0x1e85   :  { %v1003_v41 = vpop.f32.mrf.mxu0 }
0x1e86   :  { %v1009_v42 = vadd.f32 %v1003_v41, %v961_v40 }
0x1e87   :  { %v1501_v43 = vpop.f32.mrf.mxu0 }
0x1e88   :  { %1623 = vtanh.f32 %v1009_v42  ;;  %v1381_v47 = vmul.f32 -1.442695, %v1009_v42 }
0x1e89   :  { %v1006_v44 = vpop.f32.mrf.mxu0 }
0x1e8a   :  { %1625 = vpow2.f32 %v1381_v47  ;;  %v1190_v47 = vld [vmem:[#allocation2 + $0xe] sm:$0x1] }
0x1e8b   :  { %v1502_v45 = vpop.f32.mrf.mxu0 }
0x1e8c   :  { %v1191_v45 = vld [vmem:[#allocation2 + $0x1e] sm:$0x1] }
0x1e95   :  { %v1624_v46 = vpop.eup %1623 }
0x1e96   :  { %1019 = vrot.lane.b32.xlu0 %v1624_v46, %s1666_s3  ;;  %v1193_v46 = vrot.slane %v1191_v45, 7 }
0x1e97   :  { %v1626_v48 = vpop.eup %1625 }
0x1e98   :  { %v1013_v49 = vadd.f32 1.0, %v1626_v48  ;;  %v1195_v48 = vsel %vm103_vm4, %v1190_v47, %v1193_v46 }
0x1e9a   :  { %1627 = vrcp.f32 %v1013_v49 }
0x1ea7   :  { %v1628_v50 = vpop.eup %1627 }
0x1ea8   :  { %v1017_v53 = vmul.f32 %v1628_v50, %v949_v31 }
0x1f08   :  { %v1020_v51 = vpop.permute.xlu0 %1019 }
0x1f09   :  { %v1022_v52 = vmul.f32 %v1628_v50, %v1020_v51 }
0x1f0b   :  { %1024 = vrot.lane.b32.xlu1 %v1022_v52, %s1667_s26 }
0x1f7d   :  { %v1025_v54 = vpop.permute.xlu1 %1024 }
0x1f7e   :  { %v1027_v55 = vadd.f32 %v1025_v54, %v1017_v53 }
0x1f80   :  { %1629 = vtanh.f32 %v1027_v55 }
0x1f8d   :  { %v1630_v56 = vpop.eup %1629 }
0x1f8e   :  { %1030 = vrot.lane.b32.xlu0 %v1630_v56, %s1668_s27 }
0x2000   :  { %v1031_v57 = vpop.permute.xlu0 %1030 }
0x2001   :  { %v1033_v58 = vmul.f32 %v1628_v50, %v1031_v57 }
0x2003   :  { %v1040_v59 = vpack.c.bf16 %v1033_v58, %v1033_v58 }
0x2005   :  { %1042 = vrot.lane.b32.xlu1 %v1040_v59, %s1669_s28 }
0x2077   :  { %v1043_v60 = vpop.permute.xlu1 %1042 }
0x2078   :  { %1506 = vmatmul.mubr.msk.bf16.vlgmr.msra.gmra.mxu1 %vm32_vm2, %v1043_v60 }
0x2079   :  { %1516 = vmatpush3.bf16.msra.mxu1 %v1707_v4  ;;  %1517 = vmatprep.mubr.msk.bf16.mxu1 %vm1664_vm1, %v1663_v3 }
0x2138   :  { %v1081_v1 = vpop.f32.mrf.mxu1 }
0x2139   :  { %v1087_v2 = vadd.f32 %v1081_v1, %v1039_v0 }
0x213a   :  { %v1507_v5 = vpop.f32.mrf.mxu1 }
0x213b   :  { %1631 = vtanh.f32 %v1087_v2  ;;  %v1383_v9 = vmul.f32 -1.442695, %v1087_v2 }
0x213c   :  { %v1084_v6 = vpop.f32.mrf.mxu1 }
0x213d   :  { %1633 = vpow2.f32 %v1383_v9  ;;  %v1268_v9 = vld [vmem:[#allocation2 + $0xf] sm:$0x1] }
0x213e   :  { %v1508_v7 = vpop.f32.mrf.mxu1 }
0x213f   :  { %v1269_v7 = vld [vmem:[#allocation2 + $0x1f] sm:$0x1] }
0x2148   :  { %v1632_v8 = vpop.eup %1631 }
0x2149   :  { %1097 = vrot.lane.b32.xlu0 %v1632_v8, %s1666_s3  ;;  %v1271_v8 = vrot.slane %v1269_v7, 7 }
0x214a   :  { %v1634_v10 = vpop.eup %1633 }
0x214b   :  { %v1091_v11 = vadd.f32 1.0, %v1634_v10  ;;  %v1273_v10 = vsel %vm103_vm4, %v1268_v9, %v1271_v8 }
0x214d   :  { %1635 = vrcp.f32 %v1091_v11 }
0x215a   :  { %v1636_v12 = vpop.eup %1635 }
0x215b   :  { %v1095_v15 = vmul.f32 %v1636_v12, %v1027_v55 }
0x21bb   :  { %v1098_v13 = vpop.permute.xlu0 %1097 }
0x21bc   :  { %v1100_v14 = vmul.f32 %v1636_v12, %v1098_v13 }
0x21be   :  { %1102 = vrot.lane.b32.xlu1 %v1100_v14, %s1667_s26 }
0x2230   :  { %v1103_v16 = vpop.permute.xlu1 %1102 }
0x2231   :  { %v1105_v17 = vadd.f32 %v1103_v16, %v1095_v15 }
0x2233   :  { %1637 = vtanh.f32 %v1105_v17 }
0x2240   :  { %v1638_v18 = vpop.eup %1637 }
0x2241   :  { %1108 = vrot.lane.b32.xlu0 %v1638_v18, %s1668_s27 }
0x22b3   :  { %v1109_v19 = vpop.permute.xlu0 %1108 }
0x22b4   :  { %v1111_v20 = vmul.f32 %v1636_v12, %v1109_v19 }
0x22b6   :  { %v1118_v21 = vpack.c.bf16 %v1111_v20, %v1111_v20 }
0x22b8   :  { %1120 = vrot.lane.b32.xlu1 %v1118_v21, %s1669_s28 }
0x232a   :  { %v1121_v22 = vpop.permute.xlu1 %1120 }
0x232b   :  { %1512 = vmatmul.mubr.msk.bf16.vlgmr.msra.gmra.mxu0 %vm32_vm2, %v1121_v22 }
0x232c   :  { %1522 = vmatpush3.bf16.msra.mxu0 %v1707_v4  ;;  %1523 = vmatprep.mubr.msk.bf16.mxu0 %vm1664_vm1, %v1663_v3 }
0x23eb   :  { %v1159_v27 = vpop.f32.mrf.mxu0 }
0x23ec   :  { %v1165_v28 = vadd.f32 %v1159_v27, %v1117_v26 }
0x23ed   :  { %v1513_v29 = vpop.f32.mrf.mxu0 }
0x23ee   :  { %1639 = vtanh.f32 %v1165_v28  ;;  %v1385_v33 = vmul.f32 -1.442695, %v1165_v28 }
0x23ef   :  { %v1162_v30 = vpop.f32.mrf.mxu0 }
0x23f0   :  { %1641 = vpow2.f32 %v1385_v33 }
0x23f1   :  { %v1514_v31 = vpop.f32.mrf.mxu0 }
0x23fb   :  { %v1640_v32 = vpop.eup %1639 }
0x23fc   :  { %1175 = vrot.lane.b32.xlu0 %v1640_v32, %s1666_s3 }
0x23fd   :  { %v1642_v4 = vpop.eup %1641 }
0x23fe   :  { %v1169_v34 = vadd.f32 1.0, %v1642_v4 }
0x2400   :  { %1643 = vrcp.f32 %v1169_v34 }
0x240d   :  { %v1644_v3 = vpop.eup %1643 }
0x240e   :  { %v1173_v37 = vmul.f32 %v1644_v3, %v1105_v17 }
0x246e   :  { %v1176_v35 = vpop.permute.xlu0 %1175 }
0x246f   :  { %v1178_v36 = vmul.f32 %v1644_v3, %v1176_v35 }
0x2471   :  { %1180 = vrot.lane.b32.xlu1 %v1178_v36, %s1667_s26 }
0x24e3   :  { %v1181_v38 = vpop.permute.xlu1 %1180 }
0x24e4   :  { %v1183_v39 = vadd.f32 %v1181_v38, %v1173_v37 }
0x24e6   :  { %1645 = vtanh.f32 %v1183_v39 }
0x24f3   :  { %v1646_v40 = vpop.eup %1645 }
0x24f4   :  { %1186 = vrot.lane.b32.xlu0 %v1646_v40, %s1668_s27 }
0x2566   :  { %v1187_v41 = vpop.permute.xlu0 %1186 }
0x2567   :  { %v1189_v42 = vmul.f32 %v1644_v3, %v1187_v41 }
0x2569   :  { %v1196_v43 = vpack.c.bf16 %v1189_v42, %v1189_v42 }
0x256b   :  { %1198 = vrot.lane.b32.xlu1 %v1196_v43, %s1669_s28 }
0x25dd   :  { %v1199_v44 = vpop.permute.xlu1 %1198 }
0x25de   :  { %1518 = vmatmul.mubr.msk.bf16.vlgmr.msra.gmra.mxu1 %vm32_vm2, %v1199_v44 }
0x269e   :  { %v1237_v49 = vpop.f32.mrf.mxu1 }
0x269f   :  { %v1243_v50 = vadd.f32 %v1237_v49, %v1195_v48 }
0x26a0   :  { %v1519_v51 = vpop.f32.mrf.mxu1 }
0x26a1   :  { %1647 = vtanh.f32 %v1243_v50  ;;  %v1387_v55 = vmul.f32 -1.442695, %v1243_v50 }
0x26a2   :  { %v1240_v52 = vpop.f32.mrf.mxu1 }
0x26a3   :  { %1649 = vpow2.f32 %v1387_v55 }
0x26a4   :  { %v1520_v53 = vpop.f32.mrf.mxu1 }
0x26ae   :  { %v1648_v54 = vpop.eup %1647 }
0x26af   :  { %1253 = vrot.lane.b32.xlu0 %v1648_v54, %s1666_s3 }
0x26b0   :  { %v1650_v56 = vpop.eup %1649 }
0x26b1   :  { %v1247_v57 = vadd.f32 1.0, %v1650_v56 }
0x26b3   :  { %1651 = vrcp.f32 %v1247_v57 }
0x26c0   :  { %v1652_v58 = vpop.eup %1651 }
0x26c1   :  { %v1251_v61 = vmul.f32 %v1652_v58, %v1183_v39 }
0x2721   :  { %v1254_v59 = vpop.permute.xlu0 %1253 }
0x2722   :  { %v1256_v60 = vmul.f32 %v1652_v58, %v1254_v59 }
0x2724   :  { %1258 = vrot.lane.b32.xlu1 %v1256_v60, %s1667_s26 }
0x2796   :  { %v1259_v62 = vpop.permute.xlu1 %1258 }
0x2797   :  { %v1261_v63 = vadd.f32 %v1259_v62, %v1251_v61 }
0x2799   :  { %1653 = vtanh.f32 %v1261_v63 }
0x27a6   :  { %v1654_v0 = vpop.eup %1653 }
0x27a7   :  { %1264 = vrot.lane.b32.xlu0 %v1654_v0, %s1668_s27 }
0x2819   :  { %v1265_v1 = vpop.permute.xlu0 %1264 }
0x281a   :  { %v1267_v2 = vmul.f32 %v1652_v58, %v1265_v1 }
0x281c   :  { %v1274_v5 = vpack.c.bf16 %v1267_v2, %v1267_v2 }
0x281e   :  { %1276 = vrot.lane.b32.xlu1 %v1274_v5, %s1669_s28 }
0x2890   :  { %v1277_v6 = vpop.permute.xlu1 %1276 }
0x2891   :  { %1524 = vmatmul.mubr.msk.bf16.vlgmr.msra.gmra.mxu0 %vm32_vm2, %v1277_v6 }
0x2951   :  { %v1315_v11 = vpop.f32.mrf.mxu0 }
0x2952   :  { %v1321_v12 = vadd.f32 %v1315_v11, %v1273_v10 }
0x2953   :  { %v1525_v13 = vpop.f32.mrf.mxu0 }
0x2954   :  { %1655 = vtanh.f32 %v1321_v12  ;;  %v1389_v17 = vmul.f32 -1.442695, %v1321_v12 }
0x2955   :  { %v1318_v14 = vpop.f32.mrf.mxu0 }
0x2956   :  { %1657 = vpow2.f32 %v1389_v17 }
0x2957   :  { %v1526_v15 = vpop.f32.mrf.mxu0 }
0x2961   :  { %v1656_v16 = vpop.eup %1655 }
0x2962   :  { %1331 = vrot.lane.b32.xlu0 %v1656_v16, %s1666_s3 }
0x2963   :  { %v1658_v18 = vpop.eup %1657 }
0x2964   :  { %v1325_v19 = vadd.f32 1.0, %v1658_v18 }
0x2966   :  { %1659 = vrcp.f32 %v1325_v19 }
0x2973   :  { %v1660_v20 = vpop.eup %1659 }
0x2974   :  { %v1329_v23 = vmul.f32 %v1660_v20, %v1261_v63 }
0x29d4   :  { %v1332_v21 = vpop.permute.xlu0 %1331 }
0x29d5   :  { %v1334_v22 = vmul.f32 %v1660_v20, %v1332_v21 }
0x29d7   :  { %1336 = vrot.lane.b32.xlu1 %v1334_v22, %s1667_s26 }
0x2a49   :  { %v1337_v24 = vpop.permute.xlu1 %1336 }
0x2a4a   :  { %v1339_v25 = vadd.f32 %v1337_v24, %v1329_v23 }
0x2a4c   :  { %1661 = vtanh.f32 %v1339_v25 }
0x2a59   :  { %v1662_v26 = vpop.eup %1661 }
0x2a5a   :  { %1342 = vrot.lane.b32.xlu0 %v1662_v26, %s1668_s27 }
0x2acc   :  { %v1343_v27 = vpop.permute.xlu0 %1342 }
0x2acd   :  { %v1345_v28 = vmul.f32 %v1660_v20, %v1343_v27 }
0x2acf   :  { %1347 = vrot.lane.b32.xlu1 %v1345_v28, %s1669_s28 }
0x2b41   :  { %v1348_v29 = vpop.permute.xlu1 %1347 }
0x2b42   :  { %1351 = vst.msk [vmem:[%s1886_s4] sm:$0x3] %vm1350_vm5, %v1348_v29 }

</bundles_post_ra>
